<compile_context>
chip_gen: v7x
topology: tpu7x:2x2x1
jax: 0.10.0
libtpu: 0.0.40
codegen_flags: <defaults>
</compile_context>

<pallas_src>
import math
import functools

import jax
import jax.numpy as jnp
from jax.experimental import pallas as pl
from jax.experimental.pallas import tpu as pltpu


_GELU_C = math.sqrt(2.0 / math.pi)
_LN_EPS = 1e-5


# ----------------------------------------------------------------------------
# Pallas kernels
# ----------------------------------------------------------------------------

def _layernorm(x, g, b):
    mu = jnp.mean(x, axis=-1, keepdims=True)
    var = jnp.mean((x - mu) * (x - mu), axis=-1, keepdims=True)
    return (x - mu) * jax.lax.rsqrt(var + _LN_EPS) * g + b


def _gelu(x):
    return 0.5 * x * (1.0 + jnp.tanh(_GELU_C * (x + 0.044715 * x * x * x)))


def _embed_kernel(x_ref, w_ref, b_ref, pos_ref, o_ref):
    # x: (1, T, C) f32 -> (1, T, H) bf16.  Tiny K (=C); keep matmul in f32.
    x = x_ref[0]                                              # (T, C)
    y = jnp.dot(x, w_ref[...], preferred_element_type=jnp.float32)
    y = y + b_ref[...] + pos_ref[...]
    o_ref[0] = y.astype(o_ref.dtype)


@functools.lru_cache(maxsize=None)
def _block_kernel_factory(heads, dh):
    H = heads * dh

    def kernel(h_ref, ln1g, ln1b, ln2g, ln2b,
               wqkv, bqkv, wo, bo, w1, b1, w2, b2, o_ref):
        h = h_ref[0].astype(jnp.float32)                      # (T, H)

        # --- attention sublayer: x + WO @ MHA(LN1(x)) ---
        hn = _layernorm(h, ln1g[...], ln1b[...])
        qkv = jnp.dot(hn.astype(jnp.bfloat16), wqkv[...],
                      preferred_element_type=jnp.float32) + bqkv[...]   # (T, 3H)
        q = qkv[:, 0 * H:1 * H]      # 1/sqrt(dh) already folded into wqkv/bqkv
        k = qkv[:, 1 * H:2 * H]
        v = qkv[:, 2 * H:3 * H]

        head_outs = []
        for hd in range(heads):                               # unrolled, static slices
            lo, hi = hd * dh, (hd + 1) * dh
            qh = q[:, lo:hi].astype(jnp.bfloat16)             # (T, dh)
            kh = k[:, lo:hi].astype(jnp.bfloat16)
            vh = v[:, lo:hi].astype(jnp.bfloat16)
            # QK^T via dot_general contracting on dh (no materialized transpose)
            s = jax.lax.dot_general(qh, kh, (((1,), (1,)), ((), ())),
                                    preferred_element_type=jnp.float32)  # (T, T)
            s = s - jnp.max(s, axis=-1, keepdims=True)
            p = jnp.exp(s)
            p = p * pl.reciprocal(jnp.sum(p, axis=-1, keepdims=True), approx=True)
            head_outs.append(jnp.dot(p.astype(jnp.bfloat16), vh,
                                     preferred_element_type=jnp.float32))
        attn = jnp.concatenate(head_outs, axis=-1)            # (T, H)

        proj = jnp.dot(attn.astype(jnp.bfloat16), wo[...],
                       preferred_element_type=jnp.float32) + bo[...]
        h = h + proj

        # --- feed-forward sublayer: x + W2 @ GELU(W1 @ LN2(x)) ---
        hn = _layernorm(h, ln2g[...], ln2b[...])
        f = jnp.dot(hn.astype(jnp.bfloat16), w1[...],
                    preferred_element_type=jnp.float32) + b1[...]
        f = _gelu(f)
        f = jnp.dot(f.astype(jnp.bfloat16), w2[...],
                    preferred_element_type=jnp.float32) + b2[...]
        h = h + f

        o_ref[0] = h.astype(o_ref.dtype)

    return kernel


def _head_kernel(x_ref, w_ref, b_ref, o_ref):
    y = jnp.dot(x_ref[...].astype(jnp.bfloat16), w_ref[...],
                preferred_element_type=jnp.float32) + b_ref[...]
    o_ref[...] = y.astype(o_ref.dtype)


# ----------------------------------------------------------------------------
# Pallas wrappers
# ----------------------------------------------------------------------------

def _rep_spec(shape):
    n = len(shape)
    return pl.BlockSpec(shape, lambda i, _n=n: (0,) * _n)


def pallas_embed(x3d, w, b, pos):
    BN, T, C = x3d.shape
    H = w.shape[1]
    return pl.pallas_call(
        _embed_kernel,
        out_shape=jax.ShapeDtypeStruct((BN, T, H), jnp.bfloat16),
        grid=(BN,),
        in_specs=[
            pl.BlockSpec((1, T, C), lambda i: (i, 0, 0)),
            _rep_spec((C, H)),
            _rep_spec((1, H)),
            _rep_spec((T, H)),
        ],
        out_specs=pl.BlockSpec((1, T, H), lambda i: (i, 0, 0)),
        compiler_params=pltpu.CompilerParams(dimension_semantics=("parallel",)),
    )(x3d, w, b, pos)


def pallas_transformer_block(h, p, attn_heads):
    BN, T, H = h.shape
    dh = H // attn_heads
    FF = p["w1"].shape[1]
    kernel = _block_kernel_factory(attn_heads, dh)
    return pl.pallas_call(
        kernel,
        out_shape=jax.ShapeDtypeStruct((BN, T, H), jnp.bfloat16),
        grid=(BN,),
        in_specs=[
            pl.BlockSpec((1, T, H), lambda i: (i, 0, 0)),
            _rep_spec((1, H)), _rep_spec((1, H)),           # ln1 g/b
            _rep_spec((1, H)), _rep_spec((1, H)),           # ln2 g/b
            _rep_spec((H, 3 * H)), _rep_spec((1, 3 * H)),   # fused QKV
            _rep_spec((H, H)), _rep_spec((1, H)),           # output proj
            _rep_spec((H, FF)), _rep_spec((1, FF)),         # FFN W1
            _rep_spec((FF, H)), _rep_spec((1, H)),          # FFN W2
        ],
        out_specs=pl.BlockSpec((1, T, H), lambda i: (i, 0, 0)),
        compiler_params=pltpu.CompilerParams(dimension_semantics=("parallel",)),
    )(h, p["ln1_g"], p["ln1_b"], p["ln2_g"], p["ln2_b"],
      p["wqkv"], p["bqkv"], p["wo"], p["bo"],
      p["w1"], p["b1"], p["w2"], p["b2"])


def pallas_head(x2d, w, b):
    M, H = x2d.shape
    P = w.shape[1]
    return pl.pallas_call(
        _head_kernel,
        out_shape=jax.ShapeDtypeStruct((M, P), jnp.float32),
        grid=(1,),
        in_specs=[_rep_spec((M, H)), _rep_spec((H, P)), _rep_spec((1, P))],
        out_specs=pl.BlockSpec((M, P), lambda i: (0, 0)),
    )(x2d, w, b)


# ----------------------------------------------------------------------------
# Parameters (deterministic)
# ----------------------------------------------------------------------------

def sinusoidal_pos_emb(max_len, d_model):
    pos = jnp.arange(max_len, dtype=jnp.float32)[:, None]
    i = jnp.arange(d_model // 2, dtype=jnp.float32)[None, :]
    div = jnp.exp(-(2.0 * i / d_model) * math.log(10000.0))
    pe = jnp.zeros((max_len, d_model), jnp.float32)
    pe = pe.at[:, 0::2].set(jnp.sin(pos * div))
    pe = pe.at[:, 1::2].set(jnp.cos(pos * div))
    return pe


def init_params(key, *, inp_channels, hidden, n_layers, attn_heads,
                num_joints, max_len):
    """Build kernel-ready params: fused bf16 QKV weight with q-scale folded in,
    lane-padded head projection, (1, F) biases / LN params."""
    def dense(k, fan_in, fan_out, scale=0.02):
        return scale * jax.random.normal(k, (fan_in, fan_out), jnp.float32)

    dh = hidden // attn_heads
    q_scale = 1.0 / math.sqrt(dh)
    ff = hidden * 2
    out_pad = 128  # lane-dense head output (3*num_joints <= 128), sliced outside

    keys = jax.random.split(key, 2 + n_layers)
    head_w = dense(keys[1], hidden, num_joints * 3)
    head_b = jnp.zeros((num_joints * 3,), jnp.float32)
    head_w = jnp.pad(head_w, ((0, 0), (0, out_pad - num_joints * 3)))
    head_b = jnp.pad(head_b, (0, out_pad - num_joints * 3))

    params = {
        "emb_w": dense(keys[0], inp_channels, hidden),                  # f32 (tiny K)
        "emb_b": jnp.zeros((1, hidden), jnp.float32),
        "pos_emb": sinusoidal_pos_emb(max_len, hidden),
        "head_w": head_w.astype(jnp.bfloat16),
        "head_b": head_b.reshape(1, out_pad),
        "layers": [],
    }

    for li in range(n_layers):
        ks = jax.random.split(keys[2 + li], 6)
        wq = dense(ks[0], hidden, hidden) * q_scale     # fold 1/sqrt(dh) into Q
        wk = dense(ks[1], hidden, hidden)
        wv = dense(ks[2], hidden, hidden)
        bq = jnp.zeros((hidden,), jnp.float32) * q_scale
        bk = jnp.zeros((hidden,), jnp.float32)
        bv = jnp.zeros((hidden,), jnp.float32)
        params["layers"].append({
            "ln1_g": jnp.ones((1, hidden), jnp.float32),
            "ln1_b": jnp.zeros((1, hidden), jnp.float32),
            "ln2_g": jnp.ones((1, hidden), jnp.float32),
            "ln2_b": jnp.zeros((1, hidden), jnp.float32),
            "wqkv": jnp.concatenate([wq, wk, wv], axis=1).astype(jnp.bfloat16),
            "bqkv": jnp.concatenate([bq, bk, bv]).reshape(1, 3 * hidden),
            "wo": dense(ks[3], hidden, hidden).astype(jnp.bfloat16),
            "bo": jnp.zeros((1, hidden), jnp.float32),
            "w1": dense(ks[4], hidden, ff).astype(jnp.bfloat16),
            "b1": jnp.zeros((1, ff), jnp.float32),
            "w2": dense(ks[5], ff, hidden).astype(jnp.bfloat16),
            "b2": jnp.zeros((1, hidden), jnp.float32),
        })
    return params


# ----------------------------------------------------------------------------
# Model forward (glue in JAX under jit, compute in Pallas)
# ----------------------------------------------------------------------------

def bert_forward(x, params, *, attn_heads, num_joints):
    # x: (B, a, b, T, N)
    B, ca, cb, T, N = x.shape
    C = ca * cb
    x = x.reshape(B, C, T, N)
    x = jnp.transpose(x, (0, 3, 2, 1))           # (B, N, T, C)
    x = x.reshape(B * N, T, C).astype(jnp.float32)
    BN = B * N

    # BERTEmbedding: linear projection + sinusoidal positional embedding
    h = pallas_embed(x, params["emb_w"], params["emb_b"], params["pos_emb"][:T])

    # Transformer blocks (one fused Pallas kernel each)
    for lp in params["layers"]:
        h = pallas_transformer_block(h, lp, attn_heads)

    # Head: centre frame, 1x1 Conv1d == dense over channels (lane-padded output)
    mid = h[:, T // 2, :]                        # (BN, H) bf16
    out = pallas_head(mid, params["head_w"], params["head_b"])   # (BN, 128)
    out = out[:, : num_joints * 3].reshape(BN, 1, num_joints, 3)

    # final reshape / permute of BERT.forward
    out = out.reshape(B, N, 1, num_joints, 3)
    out = jnp.transpose(out, (0, 2, 3, 4, 1))    # (B, 1, J, 3, N)
    return out


# ----------------------------------------------------------------------------
# Main
# ----------------------------------------------------------------------------

if __name__ == "__main__":
    # Small, consistent configuration
    B, N = 2, 3               # batch, number of "views" along the last axis
    T = 9                     # temporal frames (matches default T=9)
    ca, cb = 2, 5             # ca*cb = inp_channels = 10
    inp_channels = ca * cb
    hidden = 128              # lane-dense hidden (multiple of 128)
    n_layers = 2
    attn_heads = 4
    num_joints = 17

    key = jax.random.PRNGKey(0)
    kx, kp = jax.random.split(key)

    x = jax.random.normal(kx, (B, ca, cb, T, N), jnp.float32)
    params = init_params(kp, inp_channels=inp_channels, hidden=hidden,
                         n_layers=n_layers, attn_heads=attn_heads,
                         num_joints=num_joints, max_len=T)

    fwd = jax.jit(functools.partial(bert_forward, attn_heads=attn_heads,
                                    num_joints=num_joints))
    out = fwd(x, params)
    out = jax.block_until_ready(out)

    assert out.shape == (B, 1, num_joints, 3, N), out.shape
    assert jnp.all(jnp.isfinite(out))
    print("KERNEL_OK")
</pallas_src>

<mosaic_0001>
module attributes {stable_mosaic.version = 11 : i64} {
  func.func @_embed_kernel(%arg0: i32, %arg1: memref<1x9x10xf32, #tpu.memory_space<vmem>>, %arg2: memref<10x128xf32, #tpu.memory_space<vmem>>, %arg3: memref<1x128xf32, #tpu.memory_space<vmem>>, %arg4: memref<9x128xf32, #tpu.memory_space<vmem>>, %arg5: memref<1x9x128xbf16, #tpu.memory_space<vmem>>) attributes {dimension_semantics = [#tpu.dimension_semantics<parallel>], iteration_bounds = array<i64: 6>, scalar_prefetch = 0 : i64, scratch_operands = 0 : i64, tpu.core_type = #tpu.core_type<tc>, window_params = [{transform_indices = @transform_0, window_bounds = array<i64: 1, 9, 10>}, {pipeline_mode = #tpu.pipeline_mode<synchronous>, transform_indices = @transform_1, window_bounds = array<i64: 10, 128>}, {pipeline_mode = #tpu.pipeline_mode<synchronous>, transform_indices = @transform_2, window_bounds = array<i64: 1, 128>}, {pipeline_mode = #tpu.pipeline_mode<synchronous>, transform_indices = @transform_3, window_bounds = array<i64: 9, 128>}, {transform_indices = @transform_4, window_bounds = array<i64: 1, 9, 128>}]} {
    %c0 = arith.constant 0 : index
    %c0_0 = arith.constant 0 : index
    %c0_1 = arith.constant 0 : index
    %0 = vector.load %arg1[%c0, %c0_0, %c0_1] : memref<1x9x10xf32, #tpu.memory_space<vmem>>, vector<1x9x10xf32>
    %1 = vector.shape_cast %0 : vector<1x9x10xf32> to vector<9x10xf32>
    %c0_2 = arith.constant 0 : index
    %c0_3 = arith.constant 0 : index
    %2 = vector.load %arg2[%c0_2, %c0_3] : memref<10x128xf32, #tpu.memory_space<vmem>>, vector<10x128xf32>
    %cst = arith.constant dense<0.000000e+00> : vector<9x128xf32>
    %3 = tpu.matmul %1, %2, %cst {dimension_numbers = #tpu.dot_dimension_numbers<[1], [0], [0], [1], [0, 0, 1, 1], [], []>} : vector<9x10xf32>, vector<10x128xf32>, vector<9x128xf32> -> vector<9x128xf32>
    %c0_4 = arith.constant 0 : index
    %c0_5 = arith.constant 0 : index
    %4 = vector.load %arg3[%c0_4, %c0_5] : memref<1x128xf32, #tpu.memory_space<vmem>>, vector<1x128xf32>
    %5 = vector.broadcast %4 : vector<1x128xf32> to vector<9x128xf32>
    %6 = arith.addf %3, %5 : vector<9x128xf32>
    %c0_6 = arith.constant 0 : index
    %c0_7 = arith.constant 0 : index
    %7 = vector.load %arg4[%c0_6, %c0_7] : memref<9x128xf32, #tpu.memory_space<vmem>>, vector<9x128xf32>
    %8 = arith.addf %6, %7 : vector<9x128xf32>
    %9 = arith.truncf %8 : vector<9x128xf32> to vector<9x128xbf16>
    %c0_8 = arith.constant 0 : index
    %c0_9 = arith.constant 0 : index
    %c0_10 = arith.constant 0 : index
    %10 = vector.load %arg5[%c0_8, %c0_9, %c0_10] : memref<1x9x128xbf16, #tpu.memory_space<vmem>>, vector<1x9x128xbf16>
    %11 = vector.shape_cast %10 : vector<1x9x128xbf16> to vector<9x128xbf16>
    %12 = vector.shape_cast %9 : vector<9x128xbf16> to vector<1x9x128xbf16>
    tpu.vector_store %arg5[%c0_8, %c0_9, %c0_10], %12 {strides = array<i32>} : memref<1x9x128xbf16, #tpu.memory_space<vmem>>, vector<1x9x128xbf16>,
    return
  }
  func.func @transform_0(%arg0: i32) -> (i32, i32, i32) {
    %c0_i32 = arith.constant 0 : i32
    %c0_i32_0 = arith.constant 0 : i32
    %c0_i32_1 = arith.constant 0 : i32
    return %arg0, %c0_i32, %c0_i32_0 : i32, i32, i32
  }
  func.func @transform_1(%arg0: i32) -> (i32, i32) {
    %c0_i32 = arith.constant 0 : i32
    %c0_i32_0 = arith.constant 0 : i32
    %c0_i32_1 = arith.constant 0 : i32
    return %c0_i32, %c0_i32_0 : i32, i32
  }
  func.func @transform_2(%arg0: i32) -> (i32, i32) {
    %c0_i32 = arith.constant 0 : i32
    %c0_i32_0 = arith.constant 0 : i32
    %c0_i32_1 = arith.constant 0 : i32
    return %c0_i32, %c0_i32_0 : i32, i32
  }
  func.func @transform_3(%arg0: i32) -> (i32, i32) {
    %c0_i32 = arith.constant 0 : i32
    %c0_i32_0 = arith.constant 0 : i32
    %c0_i32_1 = arith.constant 0 : i32
    return %c0_i32, %c0_i32_0 : i32, i32
  }
  func.func @transform_4(%arg0: i32) -> (i32, i32, i32) {
    %c0_i32 = arith.constant 0 : i32
    %c0_i32_0 = arith.constant 0 : i32
    %c0_i32_1 = arith.constant 0 : i32
    return %arg0, %c0_i32, %c0_i32_0 : i32, i32, i32
  }
}

module attributes {stable_mosaic.version = 11 : i64} {
  func.func @kernel(%arg0: i32, %arg1: memref<1x9x128xbf16, #tpu.memory_space<vmem>>, %arg2: memref<1x128xf32, #tpu.memory_space<vmem>>, %arg3: memref<1x128xf32, #tpu.memory_space<vmem>>, %arg4: memref<1x128xf32, #tpu.memory_space<vmem>>, %arg5: memref<1x128xf32, #tpu.memory_space<vmem>>, %arg6: memref<128x384xbf16, #tpu.memory_space<vmem>>, %arg7: memref<1x384xf32, #tpu.memory_space<vmem>>, %arg8: memref<128x128xbf16, #tpu.memory_space<vmem>>, %arg9: memref<1x128xf32, #tpu.memory_space<vmem>>, %arg10: memref<128x256xbf16, #tpu.memory_space<vmem>>, %arg11: memref<1x256xf32, #tpu.memory_space<vmem>>, %arg12: memref<256x128xbf16, #tpu.memory_space<vmem>>, %arg13: memref<1x128xf32, #tpu.memory_space<vmem>>, %arg14: memref<1x9x128xbf16, #tpu.memory_space<vmem>>) attributes {dimension_semantics = [#tpu.dimension_semantics<parallel>], iteration_bounds = array<i64: 6>, scalar_prefetch = 0 : i64, scratch_operands = 0 : i64, tpu.core_type = #tpu.core_type<tc>, window_params = [{transform_indices = @transform_0, window_bounds = array<i64: 1, 9, 128>}, {pipeline_mode = #tpu.pipeline_mode<synchronous>, transform_indices = @transform_1, window_bounds = array<i64: 1, 128>}, {pipeline_mode = #tpu.pipeline_mode<synchronous>, transform_indices = @transform_2, window_bounds = array<i64: 1, 128>}, {pipeline_mode = #tpu.pipeline_mode<synchronous>, transform_indices = @transform_3, window_bounds = array<i64: 1, 128>}, {pipeline_mode = #tpu.pipeline_mode<synchronous>, transform_indices = @transform_4, window_bounds = array<i64: 1, 128>}, {pipeline_mode = #tpu.pipeline_mode<synchronous>, transform_indices = @transform_5, window_bounds = array<i64: 128, 384>}, {pipeline_mode = #tpu.pipeline_mode<synchronous>, transform_indices = @transform_6, window_bounds = array<i64: 1, 384>}, {pipeline_mode = #tpu.pipeline_mode<synchronous>, transform_indices = @transform_7, window_bounds = array<i64: 128, 128>}, {pipeline_mode = #tpu.pipeline_mode<synchronous>, transform_indices = @transform_8, window_bounds = array<i64: 1, 128>}, {pipeline_mode = #tpu.pipeline_mode<synchronous>, transform_indices = @transform_9, window_bounds = array<i64: 128, 256>}, {pipeline_mode = #tpu.pipeline_mode<synchronous>, transform_indices = @transform_10, window_bounds = array<i64: 1, 256>}, {pipeline_mode = #tpu.pipeline_mode<synchronous>, transform_indices = @transform_11, window_bounds = array<i64: 256, 128>}, {pipeline_mode = #tpu.pipeline_mode<synchronous>, transform_indices = @transform_12, window_bounds = array<i64: 1, 128>}, {transform_indices = @transform_13, window_bounds = array<i64: 1, 9, 128>}]} {
    %c0 = arith.constant 0 : index
    %c0_0 = arith.constant 0 : index
    %c0_1 = arith.constant 0 : index
    %0 = vector.load %arg1[%c0, %c0_0, %c0_1] : memref<1x9x128xbf16, #tpu.memory_space<vmem>>, vector<1x9x128xbf16>
    %1 = vector.shape_cast %0 : vector<1x9x128xbf16> to vector<9x128xbf16>
    %2 = arith.extf %1 : vector<9x128xbf16> to vector<9x128xf32>
    %c0_2 = arith.constant 0 : index
    %c0_3 = arith.constant 0 : index
    %3 = vector.load %arg2[%c0_2, %c0_3] : memref<1x128xf32, #tpu.memory_space<vmem>>, vector<1x128xf32>
    %c0_4 = arith.constant 0 : index
    %c0_5 = arith.constant 0 : index
    %4 = vector.load %arg3[%c0_4, %c0_5] : memref<1x128xf32, #tpu.memory_space<vmem>>, vector<1x128xf32>
    %cst = arith.constant dense<0.000000e+00> : vector<9xf32>
    %5 = vector.multi_reduction <add>, %2, %cst [1] : vector<9x128xf32> to vector<9xf32>
    %6 = vector.shape_cast %5 : vector<9xf32> to vector<9x1xf32>
    %cst_6 = arith.constant 1.280000e+02 : f32
    %7 = vector.broadcast %cst_6 : f32 to vector<9x1xf32>
    %8 = arith.divf %6, %7 : vector<9x1xf32>
    %9 = vector.broadcast %8 : vector<9x1xf32> to vector<9x128xf32>
    %10 = arith.subf %2, %9 : vector<9x128xf32>
    %11 = vector.broadcast %8 : vector<9x1xf32> to vector<9x128xf32>
    %12 = arith.subf %2, %11 : vector<9x128xf32>
    %13 = arith.mulf %10, %12 : vector<9x128xf32>
    %cst_7 = arith.constant dense<0.000000e+00> : vector<9xf32>
    %14 = vector.multi_reduction <add>, %13, %cst_7 [1] : vector<9x128xf32> to vector<9xf32>
    %15 = vector.shape_cast %14 : vector<9xf32> to vector<9x1xf32>
    %cst_8 = arith.constant 1.280000e+02 : f32
    %16 = vector.broadcast %cst_8 : f32 to vector<9x1xf32>
    %17 = arith.divf %15, %16 : vector<9x1xf32>
    %18 = vector.broadcast %8 : vector<9x1xf32> to vector<9x128xf32>
    %19 = arith.subf %2, %18 : vector<9x128xf32>
    %cst_9 = arith.constant 9.99999974E-6 : f32
    %20 = vector.broadcast %cst_9 : f32 to vector<9x1xf32>
    %21 = arith.addf %17, %20 : vector<9x1xf32>
    %22 = math.rsqrt %21 : vector<9x1xf32>
    %23 = vector.broadcast %22 : vector<9x1xf32> to vector<9x128xf32>
    %24 = arith.mulf %19, %23 : vector<9x128xf32>
    %25 = vector.broadcast %3 : vector<1x128xf32> to vector<9x128xf32>
    %26 = arith.mulf %24, %25 : vector<9x128xf32>
    %27 = vector.broadcast %4 : vector<1x128xf32> to vector<9x128xf32>
    %28 = arith.addf %26, %27 : vector<9x128xf32>
    %29 = arith.truncf %28 : vector<9x128xf32> to vector<9x128xbf16>
    %c0_10 = arith.constant 0 : index
    %c0_11 = arith.constant 0 : index
    %30 = vector.load %arg6[%c0_10, %c0_11] : memref<128x384xbf16, #tpu.memory_space<vmem>>, vector<128x384xbf16>
    %cst_12 = arith.constant dense<0.000000e+00> : vector<9x384xf32>
    %31 = tpu.matmul %29, %30, %cst_12 {dimension_numbers = #tpu.dot_dimension_numbers<[1], [0], [0], [1], [0, 0, 1, 1], [], []>} : vector<9x128xbf16>, vector<128x384xbf16>, vector<9x384xf32> -> vector<9x384xf32>
    %c0_13 = arith.constant 0 : index
    %c0_14 = arith.constant 0 : index
    %32 = vector.load %arg7[%c0_13, %c0_14] : memref<1x384xf32, #tpu.memory_space<vmem>>, vector<1x384xf32>
    %33 = vector.broadcast %32 : vector<1x384xf32> to vector<9x384xf32>
    %34 = arith.addf %31, %33 : vector<9x384xf32>
    %35 = vector.extract_strided_slice %34 {offsets = [0, 0], sizes = [9, 128], strides = [1, 1]} : vector<9x384xf32> to vector<9x128xf32>
    %36 = vector.extract_strided_slice %34 {offsets = [0, 128], sizes = [9, 128], strides = [1, 1]} : vector<9x384xf32> to vector<9x128xf32>
    %37 = vector.extract_strided_slice %34 {offsets = [0, 256], sizes = [9, 128], strides = [1, 1]} : vector<9x384xf32> to vector<9x128xf32>
    %38 = vector.extract_strided_slice %35 {offsets = [0, 0], sizes = [9, 32], strides = [1, 1]} : vector<9x128xf32> to vector<9x32xf32>
    %39 = arith.truncf %38 : vector<9x32xf32> to vector<9x32xbf16>
    %40 = vector.extract_strided_slice %36 {offsets = [0, 0], sizes = [9, 32], strides = [1, 1]} : vector<9x128xf32> to vector<9x32xf32>
    %41 = arith.truncf %40 : vector<9x32xf32> to vector<9x32xbf16>
    %42 = vector.extract_strided_slice %37 {offsets = [0, 0], sizes = [9, 32], strides = [1, 1]} : vector<9x128xf32> to vector<9x32xf32>
    %43 = arith.truncf %42 : vector<9x32xf32> to vector<9x32xbf16>
    %cst_15 = arith.constant dense<0.000000e+00> : vector<9x9xf32>
    %44 = tpu.matmul %39, %41, %cst_15 {dimension_numbers = #tpu.dot_dimension_numbers<[1], [1], [0], [0], [0, 0, 1, 0], [], []>} : vector<9x32xbf16>, vector<9x32xbf16>, vector<9x9xf32> -> vector<9x9xf32>
    %cst_16 = arith.constant dense<0xFF800000> : vector<9xf32>
    %45 = vector.multi_reduction <maximumf>, %44, %cst_16 [1] : vector<9x9xf32> to vector<9xf32>
    %46 = vector.shape_cast %45 : vector<9xf32> to vector<9x1xf32>
    %47 = vector.broadcast %46 : vector<9x1xf32> to vector<9x9xf32>
    %48 = arith.subf %44, %47 : vector<9x9xf32>
    %49 = math.exp %48 : vector<9x9xf32>
    %cst_17 = arith.constant dense<0.000000e+00> : vector<9xf32>
    %50 = vector.multi_reduction <add>, %49, %cst_17 [1] : vector<9x9xf32> to vector<9xf32>
    %51 = vector.shape_cast %50 : vector<9xf32> to vector<9x1xf32>
    %52 = tpu.reciprocal %51 {approx = true} : vector<9x1xf32> -> vector<9x1xf32>
    %53 = vector.broadcast %52 : vector<9x1xf32> to vector<9x9xf32>
    %54 = arith.mulf %49, %53 : vector<9x9xf32>
    %55 = arith.truncf %54 : vector<9x9xf32> to vector<9x9xbf16>
    %cst_18 = arith.constant dense<0.000000e+00> : vector<9x32xf32>
    %56 = tpu.matmul %55, %43, %cst_18 {dimension_numbers = #tpu.dot_dimension_numbers<[1], [0], [0], [1], [0, 0, 1, 1], [], []>} : vector<9x9xbf16>, vector<9x32xbf16>, vector<9x32xf32> -> vector<9x32xf32>
    %57 = vector.extract_strided_slice %35 {offsets = [0, 32], sizes = [9, 32], strides = [1, 1]} : vector<9x128xf32> to vector<9x32xf32>
    %58 = arith.truncf %57 : vector<9x32xf32> to vector<9x32xbf16>
    %59 = vector.extract_strided_slice %36 {offsets = [0, 32], sizes = [9, 32], strides = [1, 1]} : vector<9x128xf32> to vector<9x32xf32>
    %60 = arith.truncf %59 : vector<9x32xf32> to vector<9x32xbf16>
    %61 = vector.extract_strided_slice %37 {offsets = [0, 32], sizes = [9, 32], strides = [1, 1]} : vector<9x128xf32> to vector<9x32xf32>
    %62 = arith.truncf %61 : vector<9x32xf32> to vector<9x32xbf16>
    %cst_19 = arith.constant dense<0.000000e+00> : vector<9x9xf32>
    %63 = tpu.matmul %58, %60, %cst_19 {dimension_numbers = #tpu.dot_dimension_numbers<[1], [1], [0], [0], [0, 0, 1, 0], [], []>} : vector<9x32xbf16>, vector<9x32xbf16>, vector<9x9xf32> -> vector<9x9xf32>
    %cst_20 = arith.constant dense<0xFF800000> : vector<9xf32>
    %64 = vector.multi_reduction <maximumf>, %63, %cst_20 [1] : vector<9x9xf32> to vector<9xf32>
    %65 = vector.shape_cast %64 : vector<9xf32> to vector<9x1xf32>
    %66 = vector.broadcast %65 : vector<9x1xf32> to vector<9x9xf32>
    %67 = arith.subf %63, %66 : vector<9x9xf32>
    %68 = math.exp %67 : vector<9x9xf32>
    %cst_21 = arith.constant dense<0.000000e+00> : vector<9xf32>
    %69 = vector.multi_reduction <add>, %68, %cst_21 [1] : vector<9x9xf32> to vector<9xf32>
    %70 = vector.shape_cast %69 : vector<9xf32> to vector<9x1xf32>
    %71 = tpu.reciprocal %70 {approx = true} : vector<9x1xf32> -> vector<9x1xf32>
    %72 = vector.broadcast %71 : vector<9x1xf32> to vector<9x9xf32>
    %73 = arith.mulf %68, %72 : vector<9x9xf32>
    %74 = arith.truncf %73 : vector<9x9xf32> to vector<9x9xbf16>
    %cst_22 = arith.constant dense<0.000000e+00> : vector<9x32xf32>
    %75 = tpu.matmul %74, %62, %cst_22 {dimension_numbers = #tpu.dot_dimension_numbers<[1], [0], [0], [1], [0, 0, 1, 1], [], []>} : vector<9x9xbf16>, vector<9x32xbf16>, vector<9x32xf32> -> vector<9x32xf32>
    %76 = vector.extract_strided_slice %35 {offsets = [0, 64], sizes = [9, 32], strides = [1, 1]} : vector<9x128xf32> to vector<9x32xf32>
    %77 = arith.truncf %76 : vector<9x32xf32> to vector<9x32xbf16>
    %78 = vector.extract_strided_slice %36 {offsets = [0, 64], sizes = [9, 32], strides = [1, 1]} : vector<9x128xf32> to vector<9x32xf32>
    %79 = arith.truncf %78 : vector<9x32xf32> to vector<9x32xbf16>
    %80 = vector.extract_strided_slice %37 {offsets = [0, 64], sizes = [9, 32], strides = [1, 1]} : vector<9x128xf32> to vector<9x32xf32>
    %81 = arith.truncf %80 : vector<9x32xf32> to vector<9x32xbf16>
    %cst_23 = arith.constant dense<0.000000e+00> : vector<9x9xf32>
    %82 = tpu.matmul %77, %79, %cst_23 {dimension_numbers = #tpu.dot_dimension_numbers<[1], [1], [0], [0], [0, 0, 1, 0], [], []>} : vector<9x32xbf16>, vector<9x32xbf16>, vector<9x9xf32> -> vector<9x9xf32>
    %cst_24 = arith.constant dense<0xFF800000> : vector<9xf32>
    %83 = vector.multi_reduction <maximumf>, %82, %cst_24 [1] : vector<9x9xf32> to vector<9xf32>
    %84 = vector.shape_cast %83 : vector<9xf32> to vector<9x1xf32>
    %85 = vector.broadcast %84 : vector<9x1xf32> to vector<9x9xf32>
    %86 = arith.subf %82, %85 : vector<9x9xf32>
    %87 = math.exp %86 : vector<9x9xf32>
    %cst_25 = arith.constant dense<0.000000e+00> : vector<9xf32>
    %88 = vector.multi_reduction <add>, %87, %cst_25 [1] : vector<9x9xf32> to vector<9xf32>
    %89 = vector.shape_cast %88 : vector<9xf32> to vector<9x1xf32>
    %90 = tpu.reciprocal %89 {approx = true} : vector<9x1xf32> -> vector<9x1xf32>
    %91 = vector.broadcast %90 : vector<9x1xf32> to vector<9x9xf32>
    %92 = arith.mulf %87, %91 : vector<9x9xf32>
    %93 = arith.truncf %92 : vector<9x9xf32> to vector<9x9xbf16>
    %cst_26 = arith.constant dense<0.000000e+00> : vector<9x32xf32>
    %94 = tpu.matmul %93, %81, %cst_26 {dimension_numbers = #tpu.dot_dimension_numbers<[1], [0], [0], [1], [0, 0, 1, 1], [], []>} : vector<9x9xbf16>, vector<9x32xbf16>, vector<9x32xf32> -> vector<9x32xf32>
    %95 = vector.extract_strided_slice %35 {offsets = [0, 96], sizes = [9, 32], strides = [1, 1]} : vector<9x128xf32> to vector<9x32xf32>
    %96 = arith.truncf %95 : vector<9x32xf32> to vector<9x32xbf16>
    %97 = vector.extract_strided_slice %36 {offsets = [0, 96], sizes = [9, 32], strides = [1, 1]} : vector<9x128xf32> to vector<9x32xf32>
    %98 = arith.truncf %97 : vector<9x32xf32> to vector<9x32xbf16>
    %99 = vector.extract_strided_slice %37 {offsets = [0, 96], sizes = [9, 32], strides = [1, 1]} : vector<9x128xf32> to vector<9x32xf32>
    %100 = arith.truncf %99 : vector<9x32xf32> to vector<9x32xbf16>
    %cst_27 = arith.constant dense<0.000000e+00> : vector<9x9xf32>
    %101 = tpu.matmul %96, %98, %cst_27 {dimension_numbers = #tpu.dot_dimension_numbers<[1], [1], [0], [0], [0, 0, 1, 0], [], []>} : vector<9x32xbf16>, vector<9x32xbf16>, vector<9x9xf32> -> vector<9x9xf32>
    %cst_28 = arith.constant dense<0xFF800000> : vector<9xf32>
    %102 = vector.multi_reduction <maximumf>, %101, %cst_28 [1] : vector<9x9xf32> to vector<9xf32>
    %103 = vector.shape_cast %102 : vector<9xf32> to vector<9x1xf32>
    %104 = vector.broadcast %103 : vector<9x1xf32> to vector<9x9xf32>
    %105 = arith.subf %101, %104 : vector<9x9xf32>
    %106 = math.exp %105 : vector<9x9xf32>
    %cst_29 = arith.constant dense<0.000000e+00> : vector<9xf32>
    %107 = vector.multi_reduction <add>, %106, %cst_29 [1] : vector<9x9xf32> to vector<9xf32>
    %108 = vector.shape_cast %107 : vector<9xf32> to vector<9x1xf32>
    %109 = tpu.reciprocal %108 {approx = true} : vector<9x1xf32> -> vector<9x1xf32>
    %110 = vector.broadcast %109 : vector<9x1xf32> to vector<9x9xf32>
    %111 = arith.mulf %106, %110 : vector<9x9xf32>
    %112 = arith.truncf %111 : vector<9x9xf32> to vector<9x9xbf16>
    %cst_30 = arith.constant dense<0.000000e+00> : vector<9x32xf32>
    %113 = tpu.matmul %112, %100, %cst_30 {dimension_numbers = #tpu.dot_dimension_numbers<[1], [0], [0], [1], [0, 0, 1, 1], [], []>} : vector<9x9xbf16>, vector<9x32xbf16>, vector<9x32xf32> -> vector<9x32xf32>
    %114 = tpu.concatenate %56, %75, %94, %113 in 1 : vector<9x32xf32>, vector<9x32xf32>, vector<9x32xf32>, vector<9x32xf32> -> vector<9x128xf32>
    %115 = arith.truncf %114 : vector<9x128xf32> to vector<9x128xbf16>
    %c0_31 = arith.constant 0 : index
    %c0_32 = arith.constant 0 : index
    %116 = vector.load %arg8[%c0_31, %c0_32] : memref<128x128xbf16, #tpu.memory_space<vmem>>, vector<128x128xbf16>
    %cst_33 = arith.constant dense<0.000000e+00> : vector<9x128xf32>
    %117 = tpu.matmul %115, %116, %cst_33 {dimension_numbers = #tpu.dot_dimension_numbers<[1], [0], [0], [1], [0, 0, 1, 1], [], []>} : vector<9x128xbf16>, vector<128x128xbf16>, vector<9x128xf32> -> vector<9x128xf32>
    %c0_34 = arith.constant 0 : index
    %c0_35 = arith.constant 0 : index
    %118 = vector.load %arg9[%c0_34, %c0_35] : memref<1x128xf32, #tpu.memory_space<vmem>>, vector<1x128xf32>
    %119 = vector.broadcast %118 : vector<1x128xf32> to vector<9x128xf32>
    %120 = arith.addf %117, %119 : vector<9x128xf32>
    %121 = arith.addf %2, %120 : vector<9x128xf32>
    %c0_36 = arith.constant 0 : index
    %c0_37 = arith.constant 0 : index
    %122 = vector.load %arg4[%c0_36, %c0_37] : memref<1x128xf32, #tpu.memory_space<vmem>>, vector<1x128xf32>
    %c0_38 = arith.constant 0 : index
    %c0_39 = arith.constant 0 : index
    %123 = vector.load %arg5[%c0_38, %c0_39] : memref<1x128xf32, #tpu.memory_space<vmem>>, vector<1x128xf32>
    %cst_40 = arith.constant dense<0.000000e+00> : vector<9xf32>
    %124 = vector.multi_reduction <add>, %121, %cst_40 [1] : vector<9x128xf32> to vector<9xf32>
    %125 = vector.shape_cast %124 : vector<9xf32> to vector<9x1xf32>
    %cst_41 = arith.constant 1.280000e+02 : f32
    %126 = vector.broadcast %cst_41 : f32 to vector<9x1xf32>
    %127 = arith.divf %125, %126 : vector<9x1xf32>
    %128 = vector.broadcast %127 : vector<9x1xf32> to vector<9x128xf32>
    %129 = arith.subf %121, %128 : vector<9x128xf32>
    %130 = vector.broadcast %127 : vector<9x1xf32> to vector<9x128xf32>
    %131 = arith.subf %121, %130 : vector<9x128xf32>
    %132 = arith.mulf %129, %131 : vector<9x128xf32>
    %cst_42 = arith.constant dense<0.000000e+00> : vector<9xf32>
    %133 = vector.multi_reduction <add>, %132, %cst_42 [1] : vector<9x128xf32> to vector<9xf32>
    %134 = vector.shape_cast %133 : vector<9xf32> to vector<9x1xf32>
    %cst_43 = arith.constant 1.280000e+02 : f32
    %135 = vector.broadcast %cst_43 : f32 to vector<9x1xf32>
    %136 = arith.divf %134, %135 : vector<9x1xf32>
    %137 = vector.broadcast %127 : vector<9x1xf32> to vector<9x128xf32>
    %138 = arith.subf %121, %137 : vector<9x128xf32>
    %cst_44 = arith.constant 9.99999974E-6 : f32
    %139 = vector.broadcast %cst_44 : f32 to vector<9x1xf32>
    %140 = arith.addf %136, %139 : vector<9x1xf32>
    %141 = math.rsqrt %140 : vector<9x1xf32>
    %142 = vector.broadcast %141 : vector<9x1xf32> to vector<9x128xf32>
    %143 = arith.mulf %138, %142 : vector<9x128xf32>
    %144 = vector.broadcast %122 : vector<1x128xf32> to vector<9x128xf32>
    %145 = arith.mulf %143, %144 : vector<9x128xf32>
    %146 = vector.broadcast %123 : vector<1x128xf32> to vector<9x128xf32>
    %147 = arith.addf %145, %146 : vector<9x128xf32>
    %148 = arith.truncf %147 : vector<9x128xf32> to vector<9x128xbf16>
    %c0_45 = arith.constant 0 : index
    %c0_46 = arith.constant 0 : index
    %149 = vector.load %arg10[%c0_45, %c0_46] : memref<128x256xbf16, #tpu.memory_space<vmem>>, vector<128x256xbf16>
    %cst_47 = arith.constant dense<0.000000e+00> : vector<9x256xf32>
    %150 = tpu.matmul %148, %149, %cst_47 {dimension_numbers = #tpu.dot_dimension_numbers<[1], [0], [0], [1], [0, 0, 1, 1], [], []>} : vector<9x128xbf16>, vector<128x256xbf16>, vector<9x256xf32> -> vector<9x256xf32>
    %c0_48 = arith.constant 0 : index
    %c0_49 = arith.constant 0 : index
    %151 = vector.load %arg11[%c0_48, %c0_49] : memref<1x256xf32, #tpu.memory_space<vmem>>, vector<1x256xf32>
    %152 = vector.broadcast %151 : vector<1x256xf32> to vector<9x256xf32>
    %153 = arith.addf %150, %152 : vector<9x256xf32>
    %cst_50 = arith.constant 5.000000e-01 : f32
    %154 = vector.broadcast %cst_50 : f32 to vector<9x256xf32>
    %155 = arith.mulf %154, %153 : vector<9x256xf32>
    %cst_51 = arith.constant 4.471500e-02 : f32
    %156 = vector.broadcast %cst_51 : f32 to vector<9x256xf32>
    %157 = arith.mulf %156, %153 : vector<9x256xf32>
    %158 = arith.mulf %157, %153 : vector<9x256xf32>
    %159 = arith.mulf %158, %153 : vector<9x256xf32>
    %160 = arith.addf %153, %159 : vector<9x256xf32>
    %cst_52 = arith.constant 0.797884583 : f32
    %161 = vector.broadcast %cst_52 : f32 to vector<9x256xf32>
    %162 = arith.mulf %161, %160 : vector<9x256xf32>
    %163 = math.tanh %162 : vector<9x256xf32>
    %cst_53 = arith.constant 1.000000e+00 : f32
    %164 = vector.broadcast %cst_53 : f32 to vector<9x256xf32>
    %165 = arith.addf %164, %163 : vector<9x256xf32>
    %166 = arith.mulf %155, %165 : vector<9x256xf32>
    %167 = arith.truncf %166 : vector<9x256xf32> to vector<9x256xbf16>
    %c0_54 = arith.constant 0 : index
    %c0_55 = arith.constant 0 : index
    %168 = vector.load %arg12[%c0_54, %c0_55] : memref<256x128xbf16, #tpu.memory_space<vmem>>, vector<256x128xbf16>
    %cst_56 = arith.constant dense<0.000000e+00> : vector<9x128xf32>
    %169 = tpu.matmul %167, %168, %cst_56 {dimension_numbers = #tpu.dot_dimension_numbers<[1], [0], [0], [1], [0, 0, 1, 1], [], []>} : vector<9x256xbf16>, vector<256x128xbf16>, vector<9x128xf32> -> vector<9x128xf32>
    %c0_57 = arith.constant 0 : index
    %c0_58 = arith.constant 0 : index
    %170 = vector.load %arg13[%c0_57, %c0_58] : memref<1x128xf32, #tpu.memory_space<vmem>>, vector<1x128xf32>
    %171 = vector.broadcast %170 : vector<1x128xf32> to vector<9x128xf32>
    %172 = arith.addf %169, %171 : vector<9x128xf32>
    %173 = arith.addf %121, %172 : vector<9x128xf32>
    %174 = arith.truncf %173 : vector<9x128xf32> to vector<9x128xbf16>
    %c0_59 = arith.constant 0 : index
    %c0_60 = arith.constant 0 : index
    %c0_61 = arith.constant 0 : index
    %175 = vector.load %arg14[%c0_59, %c0_60, %c0_61] : memref<1x9x128xbf16, #tpu.memory_space<vmem>>, vector<1x9x128xbf16>
    %176 = vector.shape_cast %175 : vector<1x9x128xbf16> to vector<9x128xbf16>
    %177 = vector.shape_cast %174 : vector<9x128xbf16> to vector<1x9x128xbf16>
    tpu.vector_store %arg14[%c0_59, %c0_60, %c0_61], %177 {strides = array<i32>} : memref<1x9x128xbf16, #tpu.memory_space<vmem>>, vector<1x9x128xbf16>,
    return
  }
  func.func @transform_0(%arg0: i32) -> (i32, i32, i32) {
    %c0_i32 = arith.constant 0 : i32
    %c0_i32_0 = arith.constant 0 : i32
    %c0_i32_1 = arith.constant 0 : i32
    return %arg0, %c0_i32, %c0_i32_0 : i32, i32, i32
  }
  func.func @transform_1(%arg0: i32) -> (i32, i32) {
    %c0_i32 = arith.constant 0 : i32
    %c0_i32_0 = arith.constant 0 : i32
    %c0_i32_1 = arith.constant 0 : i32
    return %c0_i32, %c0_i32_0 : i32, i32
  }
  func.func @transform_2(%arg0: i32) -> (i32, i32) {
    %c0_i32 = arith.constant 0 : i32
    %c0_i32_0 = arith.constant 0 : i32
    %c0_i32_1 = arith.constant 0 : i32
    return %c0_i32, %c0_i32_0 : i32, i32
  }
  func.func @transform_3(%arg0: i32) -> (i32, i32) {
    %c0_i32 = arith.constant 0 : i32
    %c0_i32_0 = arith.constant 0 : i32
    %c0_i32_1 = arith.constant 0 : i32
    return %c0_i32, %c0_i32_0 : i32, i32
  }
  func.func @transform_4(%arg0: i32) -> (i32, i32) {
    %c0_i32 = arith.constant 0 : i32
    %c0_i32_0 = arith.constant 0 : i32
    %c0_i32_1 = arith.constant 0 : i32
    return %c0_i32, %c0_i32_0 : i32, i32
  }
  func.func @transform_5(%arg0: i32) -> (i32, i32) {
    %c0_i32 = arith.constant 0 : i32
    %c0_i32_0 = arith.constant 0 : i32
    %c0_i32_1 = arith.constant 0 : i32
    return %c0_i32, %c0_i32_0 : i32, i32
  }
  func.func @transform_6(%arg0: i32) -> (i32, i32) {
    %c0_i32 = arith.constant 0 : i32
    %c0_i32_0 = arith.constant 0 : i32
    %c0_i32_1 = arith.constant 0 : i32
    return %c0_i32, %c0_i32_0 : i32, i32
  }
  func.func @transform_7(%arg0: i32) -> (i32, i32) {
    %c0_i32 = arith.constant 0 : i32
    %c0_i32_0 = arith.constant 0 : i32
    %c0_i32_1 = arith.constant 0 : i32
    return %c0_i32, %c0_i32_0 : i32, i32
  }
  func.func @transform_8(%arg0: i32) -> (i32, i32) {
    %c0_i32 = arith.constant 0 : i32
    %c0_i32_0 = arith.constant 0 : i32
    %c0_i32_1 = arith.constant 0 : i32
    return %c0_i32, %c0_i32_0 : i32, i32
  }
  func.func @transform_9(%arg0: i32) -> (i32, i32) {
    %c0_i32 = arith.constant 0 : i32
    %c0_i32_0 = arith.constant 0 : i32
    %c0_i32_1 = arith.constant 0 : i32
    return %c0_i32, %c0_i32_0 : i32, i32
  }
  func.func @transform_10(%arg0: i32) -> (i32, i32) {
    %c0_i32 = arith.constant 0 : i32
    %c0_i32_0 = arith.constant 0 : i32
    %c0_i32_1 = arith.constant 0 : i32
    return %c0_i32, %c0_i32_0 : i32, i32
  }
  func.func @transform_11(%arg0: i32) -> (i32, i32) {
    %c0_i32 = arith.constant 0 : i32
    %c0_i32_0 = arith.constant 0 : i32
    %c0_i32_1 = arith.constant 0 : i32
    return %c0_i32, %c0_i32_0 : i32, i32
  }
  func.func @transform_12(%arg0: i32) -> (i32, i32) {
    %c0_i32 = arith.constant 0 : i32
    %c0_i32_0 = arith.constant 0 : i32
    %c0_i32_1 = arith.constant 0 : i32
    return %c0_i32, %c0_i32_0 : i32, i32
  }
  func.func @transform_13(%arg0: i32) -> (i32, i32, i32) {
    %c0_i32 = arith.constant 0 : i32
    %c0_i32_0 = arith.constant 0 : i32
    %c0_i32_1 = arith.constant 0 : i32
    return %arg0, %c0_i32, %c0_i32_0 : i32, i32, i32
  }
}

module attributes {stable_mosaic.version = 11 : i64} {
  func.func @_head_kernel(%arg0: i32, %arg1: memref<6x128xbf16, #tpu.memory_space<vmem>>, %arg2: memref<128x128xbf16, #tpu.memory_space<vmem>>, %arg3: memref<1x128xf32, #tpu.memory_space<vmem>>, %arg4: memref<6x128xf32, #tpu.memory_space<vmem>>) attributes {dimension_semantics = [#tpu.dimension_semantics<arbitrary>], iteration_bounds = array<i64: 1>, scalar_prefetch = 0 : i64, scratch_operands = 0 : i64, tpu.core_type = #tpu.core_type<tc>, window_params = [{pipeline_mode = #tpu.pipeline_mode<synchronous>, transform_indices = @transform_0, window_bounds = array<i64: 6, 128>}, {pipeline_mode = #tpu.pipeline_mode<synchronous>, transform_indices = @transform_1, window_bounds = array<i64: 128, 128>}, {pipeline_mode = #tpu.pipeline_mode<synchronous>, transform_indices = @transform_2, window_bounds = array<i64: 1, 128>}, {pipeline_mode = #tpu.pipeline_mode<synchronous>, transform_indices = @transform_3, window_bounds = array<i64: 6, 128>}]} {
    %c0 = arith.constant 0 : index
    %c0_0 = arith.constant 0 : index
    %0 = vector.load %arg1[%c0, %c0_0] : memref<6x128xbf16, #tpu.memory_space<vmem>>, vector<6x128xbf16>
    %c0_1 = arith.constant 0 : index
    %c0_2 = arith.constant 0 : index
    %1 = vector.load %arg2[%c0_1, %c0_2] : memref<128x128xbf16, #tpu.memory_space<vmem>>, vector<128x128xbf16>
    %cst = arith.constant dense<0.000000e+00> : vector<6x128xf32>
    %2 = tpu.matmul %0, %1, %cst {dimension_numbers = #tpu.dot_dimension_numbers<[1], [0], [0], [1], [0, 0, 1, 1], [], []>} : vector<6x128xbf16>, vector<128x128xbf16>, vector<6x128xf32> -> vector<6x128xf32>
    %c0_3 = arith.constant 0 : index
    %c0_4 = arith.constant 0 : index
    %3 = vector.load %arg3[%c0_3, %c0_4] : memref<1x128xf32, #tpu.memory_space<vmem>>, vector<1x128xf32>
    %4 = vector.broadcast %3 : vector<1x128xf32> to vector<6x128xf32>
    %5 = arith.addf %2, %4 : vector<6x128xf32>
    %c0_5 = arith.constant 0 : index
    %c0_6 = arith.constant 0 : index
    %6 = vector.load %arg4[%c0_5, %c0_6] : memref<6x128xf32, #tpu.memory_space<vmem>>, vector<6x128xf32>
    tpu.vector_store %arg4[%c0_5, %c0_6], %5 {strides = array<i32>} : memref<6x128xf32, #tpu.memory_space<vmem>>, vector<6x128xf32>,
    return
  }
  func.func @transform_0(%arg0: i32) -> (i32, i32) {
    %c0_i32 = arith.constant 0 : i32
    %c0_i32_0 = arith.constant 0 : i32
    %c0_i32_1 = arith.constant 0 : i32
    return %c0_i32, %c0_i32_0 : i32, i32
  }
  func.func @transform_1(%arg0: i32) -> (i32, i32) {
    %c0_i32 = arith.constant 0 : i32
    %c0_i32_0 = arith.constant 0 : i32
    %c0_i32_1 = arith.constant 0 : i32
    return %c0_i32, %c0_i32_0 : i32, i32
  }
  func.func @transform_2(%arg0: i32) -> (i32, i32) {
    %c0_i32 = arith.constant 0 : i32
    %c0_i32_0 = arith.constant 0 : i32
    %c0_i32_1 = arith.constant 0 : i32
    return %c0_i32, %c0_i32_0 : i32, i32
  }
  func.func @transform_3(%arg0: i32) -> (i32, i32) {
    %c0_i32 = arith.constant 0 : i32
    %c0_i32_0 = arith.constant 0 : i32
    %c0_i32_1 = arith.constant 0 : i32
    return %c0_i32, %c0_i32_0 : i32, i32
  }
}

module attributes {stable_mosaic.version = 11 : i64} {
  func.func @kernel(%arg0: i32, %arg1: memref<1x9x128xbf16, #tpu.memory_space<vmem>>, %arg2: memref<1x128xf32, #tpu.memory_space<vmem>>, %arg3: memref<1x128xf32, #tpu.memory_space<vmem>>, %arg4: memref<1x128xf32, #tpu.memory_space<vmem>>, %arg5: memref<1x128xf32, #tpu.memory_space<vmem>>, %arg6: memref<128x384xbf16, #tpu.memory_space<vmem>>, %arg7: memref<1x384xf32, #tpu.memory_space<vmem>>, %arg8: memref<128x128xbf16, #tpu.memory_space<vmem>>, %arg9: memref<1x128xf32, #tpu.memory_space<vmem>>, %arg10: memref<128x256xbf16, #tpu.memory_space<vmem>>, %arg11: memref<1x256xf32, #tpu.memory_space<vmem>>, %arg12: memref<256x128xbf16, #tpu.memory_space<vmem>>, %arg13: memref<1x128xf32, #tpu.memory_space<vmem>>, %arg14: memref<1x9x128xbf16, #tpu.memory_space<vmem>>) attributes {dimension_semantics = [#tpu.dimension_semantics<parallel>], iteration_bounds = array<i64: 6>, scalar_prefetch = 0 : i64, scratch_operands = 0 : i64, tpu.core_type = #tpu.core_type<tc>, window_params = [{transform_indices = @transform_0, window_bounds = array<i64: 1, 9, 128>}, {pipeline_mode = #tpu.pipeline_mode<synchronous>, transform_indices = @transform_1, window_bounds = array<i64: 1, 128>}, {pipeline_mode = #tpu.pipeline_mode<synchronous>, transform_indices = @transform_2, window_bounds = array<i64: 1, 128>}, {pipeline_mode = #tpu.pipeline_mode<synchronous>, transform_indices = @transform_3, window_bounds = array<i64: 1, 128>}, {pipeline_mode = #tpu.pipeline_mode<synchronous>, transform_indices = @transform_4, window_bounds = array<i64: 1, 128>}, {pipeline_mode = #tpu.pipeline_mode<synchronous>, transform_indices = @transform_5, window_bounds = array<i64: 128, 384>}, {pipeline_mode = #tpu.pipeline_mode<synchronous>, transform_indices = @transform_6, window_bounds = array<i64: 1, 384>}, {pipeline_mode = #tpu.pipeline_mode<synchronous>, transform_indices = @transform_7, window_bounds = array<i64: 128, 128>}, {pipeline_mode = #tpu.pipeline_mode<synchronous>, transform_indices = @transform_8, window_bounds = array<i64: 1, 128>}, {pipeline_mode = #tpu.pipeline_mode<synchronous>, transform_indices = @transform_9, window_bounds = array<i64: 128, 256>}, {pipeline_mode = #tpu.pipeline_mode<synchronous>, transform_indices = @transform_10, window_bounds = array<i64: 1, 256>}, {pipeline_mode = #tpu.pipeline_mode<synchronous>, transform_indices = @transform_11, window_bounds = array<i64: 256, 128>}, {pipeline_mode = #tpu.pipeline_mode<synchronous>, transform_indices = @transform_12, window_bounds = array<i64: 1, 128>}, {transform_indices = @transform_13, window_bounds = array<i64: 1, 9, 128>}]} {
    %c0 = arith.constant 0 : index
    %c0_0 = arith.constant 0 : index
    %c0_1 = arith.constant 0 : index
    %0 = vector.load %arg1[%c0, %c0_0, %c0_1] : memref<1x9x128xbf16, #tpu.memory_space<vmem>>, vector<1x9x128xbf16>
    %1 = vector.shape_cast %0 : vector<1x9x128xbf16> to vector<9x128xbf16>
    %2 = arith.extf %1 : vector<9x128xbf16> to vector<9x128xf32>
    %c0_2 = arith.constant 0 : index
    %c0_3 = arith.constant 0 : index
    %3 = vector.load %arg2[%c0_2, %c0_3] : memref<1x128xf32, #tpu.memory_space<vmem>>, vector<1x128xf32>
    %c0_4 = arith.constant 0 : index
    %c0_5 = arith.constant 0 : index
    %4 = vector.load %arg3[%c0_4, %c0_5] : memref<1x128xf32, #tpu.memory_space<vmem>>, vector<1x128xf32>
    %cst = arith.constant dense<0.000000e+00> : vector<9xf32>
    %5 = vector.multi_reduction <add>, %2, %cst [1] : vector<9x128xf32> to vector<9xf32>
    %6 = vector.shape_cast %5 : vector<9xf32> to vector<9x1xf32>
    %cst_6 = arith.constant 1.280000e+02 : f32
    %7 = vector.broadcast %cst_6 : f32 to vector<9x1xf32>
    %8 = arith.divf %6, %7 : vector<9x1xf32>
    %9 = vector.broadcast %8 : vector<9x1xf32> to vector<9x128xf32>
    %10 = arith.subf %2, %9 : vector<9x128xf32>
    %11 = vector.broadcast %8 : vector<9x1xf32> to vector<9x128xf32>
    %12 = arith.subf %2, %11 : vector<9x128xf32>
    %13 = arith.mulf %10, %12 : vector<9x128xf32>
    %cst_7 = arith.constant dense<0.000000e+00> : vector<9xf32>
    %14 = vector.multi_reduction <add>, %13, %cst_7 [1] : vector<9x128xf32> to vector<9xf32>
    %15 = vector.shape_cast %14 : vector<9xf32> to vector<9x1xf32>
    %cst_8 = arith.constant 1.280000e+02 : f32
    %16 = vector.broadcast %cst_8 : f32 to vector<9x1xf32>
    %17 = arith.divf %15, %16 : vector<9x1xf32>
    %18 = vector.broadcast %8 : vector<9x1xf32> to vector<9x128xf32>
    %19 = arith.subf %2, %18 : vector<9x128xf32>
    %cst_9 = arith.constant 9.99999974E-6 : f32
    %20 = vector.broadcast %cst_9 : f32 to vector<9x1xf32>
    %21 = arith.addf %17, %20 : vector<9x1xf32>
    %22 = math.rsqrt %21 : vector<9x1xf32>
    %23 = vector.broadcast %22 : vector<9x1xf32> to vector<9x128xf32>
    %24 = arith.mulf %19, %23 : vector<9x128xf32>
    %25 = vector.broadcast %3 : vector<1x128xf32> to vector<9x128xf32>
    %26 = arith.mulf %24, %25 : vector<9x128xf32>
    %27 = vector.broadcast %4 : vector<1x128xf32> to vector<9x128xf32>
    %28 = arith.addf %26, %27 : vector<9x128xf32>
    %29 = arith.truncf %28 : vector<9x128xf32> to vector<9x128xbf16>
    %c0_10 = arith.constant 0 : index
    %c0_11 = arith.constant 0 : index
    %30 = vector.load %arg6[%c0_10, %c0_11] : memref<128x384xbf16, #tpu.memory_space<vmem>>, vector<128x384xbf16>
    %cst_12 = arith.constant dense<0.000000e+00> : vector<9x384xf32>
    %31 = tpu.matmul %29, %30, %cst_12 {dimension_numbers = #tpu.dot_dimension_numbers<[1], [0], [0], [1], [0, 0, 1, 1], [], []>} : vector<9x128xbf16>, vector<128x384xbf16>, vector<9x384xf32> -> vector<9x384xf32>
    %c0_13 = arith.constant 0 : index
    %c0_14 = arith.constant 0 : index
    %32 = vector.load %arg7[%c0_13, %c0_14] : memref<1x384xf32, #tpu.memory_space<vmem>>, vector<1x384xf32>
    %33 = vector.broadcast %32 : vector<1x384xf32> to vector<9x384xf32>
    %34 = arith.addf %31, %33 : vector<9x384xf32>
    %35 = vector.extract_strided_slice %34 {offsets = [0, 0], sizes = [9, 128], strides = [1, 1]} : vector<9x384xf32> to vector<9x128xf32>
    %36 = vector.extract_strided_slice %34 {offsets = [0, 128], sizes = [9, 128], strides = [1, 1]} : vector<9x384xf32> to vector<9x128xf32>
    %37 = vector.extract_strided_slice %34 {offsets = [0, 256], sizes = [9, 128], strides = [1, 1]} : vector<9x384xf32> to vector<9x128xf32>
    %38 = vector.extract_strided_slice %35 {offsets = [0, 0], sizes = [9, 32], strides = [1, 1]} : vector<9x128xf32> to vector<9x32xf32>
    %39 = arith.truncf %38 : vector<9x32xf32> to vector<9x32xbf16>
    %40 = vector.extract_strided_slice %36 {offsets = [0, 0], sizes = [9, 32], strides = [1, 1]} : vector<9x128xf32> to vector<9x32xf32>
    %41 = arith.truncf %40 : vector<9x32xf32> to vector<9x32xbf16>
    %42 = vector.extract_strided_slice %37 {offsets = [0, 0], sizes = [9, 32], strides = [1, 1]} : vector<9x128xf32> to vector<9x32xf32>
    %43 = arith.truncf %42 : vector<9x32xf32> to vector<9x32xbf16>
    %cst_15 = arith.constant dense<0.000000e+00> : vector<9x9xf32>
    %44 = tpu.matmul %39, %41, %cst_15 {dimension_numbers = #tpu.dot_dimension_numbers<[1], [1], [0], [0], [0, 0, 1, 0], [], []>} : vector<9x32xbf16>, vector<9x32xbf16>, vector<9x9xf32> -> vector<9x9xf32>
    %cst_16 = arith.constant dense<0xFF800000> : vector<9xf32>
    %45 = vector.multi_reduction <maximumf>, %44, %cst_16 [1] : vector<9x9xf32> to vector<9xf32>
    %46 = vector.shape_cast %45 : vector<9xf32> to vector<9x1xf32>
    %47 = vector.broadcast %46 : vector<9x1xf32> to vector<9x9xf32>
    %48 = arith.subf %44, %47 : vector<9x9xf32>
    %49 = math.exp %48 : vector<9x9xf32>
    %cst_17 = arith.constant dense<0.000000e+00> : vector<9xf32>
    %50 = vector.multi_reduction <add>, %49, %cst_17 [1] : vector<9x9xf32> to vector<9xf32>
    %51 = vector.shape_cast %50 : vector<9xf32> to vector<9x1xf32>
    %52 = tpu.reciprocal %51 {approx = true} : vector<9x1xf32> -> vector<9x1xf32>
    %53 = vector.broadcast %52 : vector<9x1xf32> to vector<9x9xf32>
    %54 = arith.mulf %49, %53 : vector<9x9xf32>
    %55 = arith.truncf %54 : vector<9x9xf32> to vector<9x9xbf16>
    %cst_18 = arith.constant dense<0.000000e+00> : vector<9x32xf32>
    %56 = tpu.matmul %55, %43, %cst_18 {dimension_numbers = #tpu.dot_dimension_numbers<[1], [0], [0], [1], [0, 0, 1, 1], [], []>} : vector<9x9xbf16>, vector<9x32xbf16>, vector<9x32xf32> -> vector<9x32xf32>
    %57 = vector.extract_strided_slice %35 {offsets = [0, 32], sizes = [9, 32], strides = [1, 1]} : vector<9x128xf32> to vector<9x32xf32>
    %58 = arith.truncf %57 : vector<9x32xf32> to vector<9x32xbf16>
    %59 = vector.extract_strided_slice %36 {offsets = [0, 32], sizes = [9, 32], strides = [1, 1]} : vector<9x128xf32> to vector<9x32xf32>
    %60 = arith.truncf %59 : vector<9x32xf32> to vector<9x32xbf16>
    %61 = vector.extract_strided_slice %37 {offsets = [0, 32], sizes = [9, 32], strides = [1, 1]} : vector<9x128xf32> to vector<9x32xf32>
    %62 = arith.truncf %61 : vector<9x32xf32> to vector<9x32xbf16>
    %cst_19 = arith.constant dense<0.000000e+00> : vector<9x9xf32>
    %63 = tpu.matmul %58, %60, %cst_19 {dimension_numbers = #tpu.dot_dimension_numbers<[1], [1], [0], [0], [0, 0, 1, 0], [], []>} : vector<9x32xbf16>, vector<9x32xbf16>, vector<9x9xf32> -> vector<9x9xf32>
    %cst_20 = arith.constant dense<0xFF800000> : vector<9xf32>
    %64 = vector.multi_reduction <maximumf>, %63, %cst_20 [1] : vector<9x9xf32> to vector<9xf32>
    %65 = vector.shape_cast %64 : vector<9xf32> to vector<9x1xf32>
    %66 = vector.broadcast %65 : vector<9x1xf32> to vector<9x9xf32>
    %67 = arith.subf %63, %66 : vector<9x9xf32>
    %68 = math.exp %67 : vector<9x9xf32>
    %cst_21 = arith.constant dense<0.000000e+00> : vector<9xf32>
    %69 = vector.multi_reduction <add>, %68, %cst_21 [1] : vector<9x9xf32> to vector<9xf32>
    %70 = vector.shape_cast %69 : vector<9xf32> to vector<9x1xf32>
    %71 = tpu.reciprocal %70 {approx = true} : vector<9x1xf32> -> vector<9x1xf32>
    %72 = vector.broadcast %71 : vector<9x1xf32> to vector<9x9xf32>
    %73 = arith.mulf %68, %72 : vector<9x9xf32>
    %74 = arith.truncf %73 : vector<9x9xf32> to vector<9x9xbf16>
    %cst_22 = arith.constant dense<0.000000e+00> : vector<9x32xf32>
    %75 = tpu.matmul %74, %62, %cst_22 {dimension_numbers = #tpu.dot_dimension_numbers<[1], [0], [0], [1], [0, 0, 1, 1], [], []>} : vector<9x9xbf16>, vector<9x32xbf16>, vector<9x32xf32> -> vector<9x32xf32>
    %76 = vector.extract_strided_slice %35 {offsets = [0, 64], sizes = [9, 32], strides = [1, 1]} : vector<9x128xf32> to vector<9x32xf32>
    %77 = arith.truncf %76 : vector<9x32xf32> to vector<9x32xbf16>
    %78 = vector.extract_strided_slice %36 {offsets = [0, 64], sizes = [9, 32], strides = [1, 1]} : vector<9x128xf32> to vector<9x32xf32>
    %79 = arith.truncf %78 : vector<9x32xf32> to vector<9x32xbf16>
    %80 = vector.extract_strided_slice %37 {offsets = [0, 64], sizes = [9, 32], strides = [1, 1]} : vector<9x128xf32> to vector<9x32xf32>
    %81 = arith.truncf %80 : vector<9x32xf32> to vector<9x32xbf16>
    %cst_23 = arith.constant dense<0.000000e+00> : vector<9x9xf32>
    %82 = tpu.matmul %77, %79, %cst_23 {dimension_numbers = #tpu.dot_dimension_numbers<[1], [1], [0], [0], [0, 0, 1, 0], [], []>} : vector<9x32xbf16>, vector<9x32xbf16>, vector<9x9xf32> -> vector<9x9xf32>
    %cst_24 = arith.constant dense<0xFF800000> : vector<9xf32>
    %83 = vector.multi_reduction <maximumf>, %82, %cst_24 [1] : vector<9x9xf32> to vector<9xf32>
    %84 = vector.shape_cast %83 : vector<9xf32> to vector<9x1xf32>
    %85 = vector.broadcast %84 : vector<9x1xf32> to vector<9x9xf32>
    %86 = arith.subf %82, %85 : vector<9x9xf32>
    %87 = math.exp %86 : vector<9x9xf32>
    %cst_25 = arith.constant dense<0.000000e+00> : vector<9xf32>
    %88 = vector.multi_reduction <add>, %87, %cst_25 [1] : vector<9x9xf32> to vector<9xf32>
    %89 = vector.shape_cast %88 : vector<9xf32> to vector<9x1xf32>
    %90 = tpu.reciprocal %89 {approx = true} : vector<9x1xf32> -> vector<9x1xf32>
    %91 = vector.broadcast %90 : vector<9x1xf32> to vector<9x9xf32>
    %92 = arith.mulf %87, %91 : vector<9x9xf32>
    %93 = arith.truncf %92 : vector<9x9xf32> to vector<9x9xbf16>
    %cst_26 = arith.constant dense<0.000000e+00> : vector<9x32xf32>
    %94 = tpu.matmul %93, %81, %cst_26 {dimension_numbers = #tpu.dot_dimension_numbers<[1], [0], [0], [1], [0, 0, 1, 1], [], []>} : vector<9x9xbf16>, vector<9x32xbf16>, vector<9x32xf32> -> vector<9x32xf32>
    %95 = vector.extract_strided_slice %35 {offsets = [0, 96], sizes = [9, 32], strides = [1, 1]} : vector<9x128xf32> to vector<9x32xf32>
    %96 = arith.truncf %95 : vector<9x32xf32> to vector<9x32xbf16>
    %97 = vector.extract_strided_slice %36 {offsets = [0, 96], sizes = [9, 32], strides = [1, 1]} : vector<9x128xf32> to vector<9x32xf32>
    %98 = arith.truncf %97 : vector<9x32xf32> to vector<9x32xbf16>
    %99 = vector.extract_strided_slice %37 {offsets = [0, 96], sizes = [9, 32], strides = [1, 1]} : vector<9x128xf32> to vector<9x32xf32>
    %100 = arith.truncf %99 : vector<9x32xf32> to vector<9x32xbf16>
    %cst_27 = arith.constant dense<0.000000e+00> : vector<9x9xf32>
    %101 = tpu.matmul %96, %98, %cst_27 {dimension_numbers = #tpu.dot_dimension_numbers<[1], [1], [0], [0], [0, 0, 1, 0], [], []>} : vector<9x32xbf16>, vector<9x32xbf16>, vector<9x9xf32> -> vector<9x9xf32>
    %cst_28 = arith.constant dense<0xFF800000> : vector<9xf32>
    %102 = vector.multi_reduction <maximumf>, %101, %cst_28 [1] : vector<9x9xf32> to vector<9xf32>
    %103 = vector.shape_cast %102 : vector<9xf32> to vector<9x1xf32>
    %104 = vector.broadcast %103 : vector<9x1xf32> to vector<9x9xf32>
    %105 = arith.subf %101, %104 : vector<9x9xf32>
    %106 = math.exp %105 : vector<9x9xf32>
    %cst_29 = arith.constant dense<0.000000e+00> : vector<9xf32>
    %107 = vector.multi_reduction <add>, %106, %cst_29 [1] : vector<9x9xf32> to vector<9xf32>
    %108 = vector.shape_cast %107 : vector<9xf32> to vector<9x1xf32>
    %109 = tpu.reciprocal %108 {approx = true} : vector<9x1xf32> -> vector<9x1xf32>
    %110 = vector.broadcast %109 : vector<9x1xf32> to vector<9x9xf32>
    %111 = arith.mulf %106, %110 : vector<9x9xf32>
    %112 = arith.truncf %111 : vector<9x9xf32> to vector<9x9xbf16>
    %cst_30 = arith.constant dense<0.000000e+00> : vector<9x32xf32>
    %113 = tpu.matmul %112, %100, %cst_30 {dimension_numbers = #tpu.dot_dimension_numbers<[1], [0], [0], [1], [0, 0, 1, 1], [], []>} : vector<9x9xbf16>, vector<9x32xbf16>, vector<9x32xf32> -> vector<9x32xf32>
    %114 = tpu.concatenate %56, %75, %94, %113 in 1 : vector<9x32xf32>, vector<9x32xf32>, vector<9x32xf32>, vector<9x32xf32> -> vector<9x128xf32>
    %115 = arith.truncf %114 : vector<9x128xf32> to vector<9x128xbf16>
    %c0_31 = arith.constant 0 : index
    %c0_32 = arith.constant 0 : index
    %116 = vector.load %arg8[%c0_31, %c0_32] : memref<128x128xbf16, #tpu.memory_space<vmem>>, vector<128x128xbf16>
    %cst_33 = arith.constant dense<0.000000e+00> : vector<9x128xf32>
    %117 = tpu.matmul %115, %116, %cst_33 {dimension_numbers = #tpu.dot_dimension_numbers<[1], [0], [0], [1], [0, 0, 1, 1], [], []>} : vector<9x128xbf16>, vector<128x128xbf16>, vector<9x128xf32> -> vector<9x128xf32>
    %c0_34 = arith.constant 0 : index
    %c0_35 = arith.constant 0 : index
    %118 = vector.load %arg9[%c0_34, %c0_35] : memref<1x128xf32, #tpu.memory_space<vmem>>, vector<1x128xf32>
    %119 = vector.broadcast %118 : vector<1x128xf32> to vector<9x128xf32>
    %120 = arith.addf %117, %119 : vector<9x128xf32>
    %121 = arith.addf %2, %120 : vector<9x128xf32>
    %c0_36 = arith.constant 0 : index
    %c0_37 = arith.constant 0 : index
    %122 = vector.load %arg4[%c0_36, %c0_37] : memref<1x128xf32, #tpu.memory_space<vmem>>, vector<1x128xf32>
    %c0_38 = arith.constant 0 : index
    %c0_39 = arith.constant 0 : index
    %123 = vector.load %arg5[%c0_38, %c0_39] : memref<1x128xf32, #tpu.memory_space<vmem>>, vector<1x128xf32>
    %cst_40 = arith.constant dense<0.000000e+00> : vector<9xf32>
    %124 = vector.multi_reduction <add>, %121, %cst_40 [1] : vector<9x128xf32> to vector<9xf32>
    %125 = vector.shape_cast %124 : vector<9xf32> to vector<9x1xf32>
    %cst_41 = arith.constant 1.280000e+02 : f32
    %126 = vector.broadcast %cst_41 : f32 to vector<9x1xf32>
    %127 = arith.divf %125, %126 : vector<9x1xf32>
    %128 = vector.broadcast %127 : vector<9x1xf32> to vector<9x128xf32>
    %129 = arith.subf %121, %128 : vector<9x128xf32>
    %130 = vector.broadcast %127 : vector<9x1xf32> to vector<9x128xf32>
    %131 = arith.subf %121, %130 : vector<9x128xf32>
    %132 = arith.mulf %129, %131 : vector<9x128xf32>
    %cst_42 = arith.constant dense<0.000000e+00> : vector<9xf32>
    %133 = vector.multi_reduction <add>, %132, %cst_42 [1] : vector<9x128xf32> to vector<9xf32>
    %134 = vector.shape_cast %133 : vector<9xf32> to vector<9x1xf32>
    %cst_43 = arith.constant 1.280000e+02 : f32
    %135 = vector.broadcast %cst_43 : f32 to vector<9x1xf32>
    %136 = arith.divf %134, %135 : vector<9x1xf32>
    %137 = vector.broadcast %127 : vector<9x1xf32> to vector<9x128xf32>
    %138 = arith.subf %121, %137 : vector<9x128xf32>
    %cst_44 = arith.constant 9.99999974E-6 : f32
    %139 = vector.broadcast %cst_44 : f32 to vector<9x1xf32>
    %140 = arith.addf %136, %139 : vector<9x1xf32>
    %141 = math.rsqrt %140 : vector<9x1xf32>
    %142 = vector.broadcast %141 : vector<9x1xf32> to vector<9x128xf32>
    %143 = arith.mulf %138, %142 : vector<9x128xf32>
    %144 = vector.broadcast %122 : vector<1x128xf32> to vector<9x128xf32>
    %145 = arith.mulf %143, %144 : vector<9x128xf32>
    %146 = vector.broadcast %123 : vector<1x128xf32> to vector<9x128xf32>
    %147 = arith.addf %145, %146 : vector<9x128xf32>
    %148 = arith.truncf %147 : vector<9x128xf32> to vector<9x128xbf16>
    %c0_45 = arith.constant 0 : index
    %c0_46 = arith.constant 0 : index
    %149 = vector.load %arg10[%c0_45, %c0_46] : memref<128x256xbf16, #tpu.memory_space<vmem>>, vector<128x256xbf16>
    %cst_47 = arith.constant dense<0.000000e+00> : vector<9x256xf32>
    %150 = tpu.matmul %148, %149, %cst_47 {dimension_numbers = #tpu.dot_dimension_numbers<[1], [0], [0], [1], [0, 0, 1, 1], [], []>} : vector<9x128xbf16>, vector<128x256xbf16>, vector<9x256xf32> -> vector<9x256xf32>
    %c0_48 = arith.constant 0 : index
    %c0_49 = arith.constant 0 : index
    %151 = vector.load %arg11[%c0_48, %c0_49] : memref<1x256xf32, #tpu.memory_space<vmem>>, vector<1x256xf32>
    %152 = vector.broadcast %151 : vector<1x256xf32> to vector<9x256xf32>
    %153 = arith.addf %150, %152 : vector<9x256xf32>
    %cst_50 = arith.constant 5.000000e-01 : f32
    %154 = vector.broadcast %cst_50 : f32 to vector<9x256xf32>
    %155 = arith.mulf %154, %153 : vector<9x256xf32>
    %cst_51 = arith.constant 4.471500e-02 : f32
    %156 = vector.broadcast %cst_51 : f32 to vector<9x256xf32>
    %157 = arith.mulf %156, %153 : vector<9x256xf32>
    %158 = arith.mulf %157, %153 : vector<9x256xf32>
    %159 = arith.mulf %158, %153 : vector<9x256xf32>
    %160 = arith.addf %153, %159 : vector<9x256xf32>
    %cst_52 = arith.constant 0.797884583 : f32
    %161 = vector.broadcast %cst_52 : f32 to vector<9x256xf32>
    %162 = arith.mulf %161, %160 : vector<9x256xf32>
    %163 = math.tanh %162 : vector<9x256xf32>
    %cst_53 = arith.constant 1.000000e+00 : f32
    %164 = vector.broadcast %cst_53 : f32 to vector<9x256xf32>
    %165 = arith.addf %164, %163 : vector<9x256xf32>
    %166 = arith.mulf %155, %165 : vector<9x256xf32>
    %167 = arith.truncf %166 : vector<9x256xf32> to vector<9x256xbf16>
    %c0_54 = arith.constant 0 : index
    %c0_55 = arith.constant 0 : index
    %168 = vector.load %arg12[%c0_54, %c0_55] : memref<256x128xbf16, #tpu.memory_space<vmem>>, vector<256x128xbf16>
    %cst_56 = arith.constant dense<0.000000e+00> : vector<9x128xf32>
    %169 = tpu.matmul %167, %168, %cst_56 {dimension_numbers = #tpu.dot_dimension_numbers<[1], [0], [0], [1], [0, 0, 1, 1], [], []>} : vector<9x256xbf16>, vector<256x128xbf16>, vector<9x128xf32> -> vector<9x128xf32>
    %c0_57 = arith.constant 0 : index
    %c0_58 = arith.constant 0 : index
    %170 = vector.load %arg13[%c0_57, %c0_58] : memref<1x128xf32, #tpu.memory_space<vmem>>, vector<1x128xf32>
    %171 = vector.broadcast %170 : vector<1x128xf32> to vector<9x128xf32>
    %172 = arith.addf %169, %171 : vector<9x128xf32>
    %173 = arith.addf %121, %172 : vector<9x128xf32>
    %174 = arith.truncf %173 : vector<9x128xf32> to vector<9x128xbf16>
    %c0_59 = arith.constant 0 : index
    %c0_60 = arith.constant 0 : index
    %c0_61 = arith.constant 0 : index
    %175 = vector.load %arg14[%c0_59, %c0_60, %c0_61] : memref<1x9x128xbf16, #tpu.memory_space<vmem>>, vector<1x9x128xbf16>
    %176 = vector.shape_cast %175 : vector<1x9x128xbf16> to vector<9x128xbf16>
    %177 = vector.shape_cast %174 : vector<9x128xbf16> to vector<1x9x128xbf16>
    tpu.vector_store %arg14[%c0_59, %c0_60, %c0_61], %177 {strides = array<i32>} : memref<1x9x128xbf16, #tpu.memory_space<vmem>>, vector<1x9x128xbf16>,
    return
  }
  func.func @transform_0(%arg0: i32) -> (i32, i32, i32) {
    %c0_i32 = arith.constant 0 : i32
    %c0_i32_0 = arith.constant 0 : i32
    %c0_i32_1 = arith.constant 0 : i32
    return %arg0, %c0_i32, %c0_i32_0 : i32, i32, i32
  }
  func.func @transform_1(%arg0: i32) -> (i32, i32) {
    %c0_i32 = arith.constant 0 : i32
    %c0_i32_0 = arith.constant 0 : i32
    %c0_i32_1 = arith.constant 0 : i32
    return %c0_i32, %c0_i32_0 : i32, i32
  }
  func.func @transform_2(%arg0: i32) -> (i32, i32) {
    %c0_i32 = arith.constant 0 : i32
    %c0_i32_0 = arith.constant 0 : i32
    %c0_i32_1 = arith.constant 0 : i32
    return %c0_i32, %c0_i32_0 : i32, i32
  }
  func.func @transform_3(%arg0: i32) -> (i32, i32) {
    %c0_i32 = arith.constant 0 : i32
    %c0_i32_0 = arith.constant 0 : i32
    %c0_i32_1 = arith.constant 0 : i32
    return %c0_i32, %c0_i32_0 : i32, i32
  }
  func.func @transform_4(%arg0: i32) -> (i32, i32) {
    %c0_i32 = arith.constant 0 : i32
    %c0_i32_0 = arith.constant 0 : i32
    %c0_i32_1 = arith.constant 0 : i32
    return %c0_i32, %c0_i32_0 : i32, i32
  }
  func.func @transform_5(%arg0: i32) -> (i32, i32) {
    %c0_i32 = arith.constant 0 : i32
    %c0_i32_0 = arith.constant 0 : i32
    %c0_i32_1 = arith.constant 0 : i32
    return %c0_i32, %c0_i32_0 : i32, i32
  }
  func.func @transform_6(%arg0: i32) -> (i32, i32) {
    %c0_i32 = arith.constant 0 : i32
    %c0_i32_0 = arith.constant 0 : i32
    %c0_i32_1 = arith.constant 0 : i32
    return %c0_i32, %c0_i32_0 : i32, i32
  }
  func.func @transform_7(%arg0: i32) -> (i32, i32) {
    %c0_i32 = arith.constant 0 : i32
    %c0_i32_0 = arith.constant 0 : i32
    %c0_i32_1 = arith.constant 0 : i32
    return %c0_i32, %c0_i32_0 : i32, i32
  }
  func.func @transform_8(%arg0: i32) -> (i32, i32) {
    %c0_i32 = arith.constant 0 : i32
    %c0_i32_0 = arith.constant 0 : i32
    %c0_i32_1 = arith.constant 0 : i32
    return %c0_i32, %c0_i32_0 : i32, i32
  }
  func.func @transform_9(%arg0: i32) -> (i32, i32) {
    %c0_i32 = arith.constant 0 : i32
    %c0_i32_0 = arith.constant 0 : i32
    %c0_i32_1 = arith.constant 0 : i32
    return %c0_i32, %c0_i32_0 : i32, i32
  }
  func.func @transform_10(%arg0: i32) -> (i32, i32) {
    %c0_i32 = arith.constant 0 : i32
    %c0_i32_0 = arith.constant 0 : i32
    %c0_i32_1 = arith.constant 0 : i32
    return %c0_i32, %c0_i32_0 : i32, i32
  }
  func.func @transform_11(%arg0: i32) -> (i32, i32) {
    %c0_i32 = arith.constant 0 : i32
    %c0_i32_0 = arith.constant 0 : i32
    %c0_i32_1 = arith.constant 0 : i32
    return %c0_i32, %c0_i32_0 : i32, i32
  }
  func.func @transform_12(%arg0: i32) -> (i32, i32) {
    %c0_i32 = arith.constant 0 : i32
    %c0_i32_0 = arith.constant 0 : i32
    %c0_i32_1 = arith.constant 0 : i32
    return %c0_i32, %c0_i32_0 : i32, i32
  }
  func.func @transform_13(%arg0: i32) -> (i32, i32, i32) {
    %c0_i32 = arith.constant 0 : i32
    %c0_i32_0 = arith.constant 0 : i32
    %c0_i32_1 = arith.constant 0 : i32
    return %arg0, %c0_i32, %c0_i32_0 : i32, i32, i32
  }
}

</mosaic_0001>

<bundles_post_ra>
// kernel: bert_forward.4
= control target key start
LH: loop header
LB: loop body
LE: loop exit
PB: predicated region body
PF: predicated region fallthrough
CT: control target
= control target key end

     0   :  { %9 = vsyncpa [#allocation3], 0  ;;  %s695_s0 = inlined_call_operand.vmem [shape: f32[6,9,10], index: 0, kind: input, shape index: {}]   ;;  %s696_s1 = inlined_call_operand.hbm [shape: f32[10,128], index: 1, kind: input, shape index: {}]   ;;  %s697_s2 = inlined_call_operand.hbm [shape: f32[1,128], index: 2, kind: input, shape index: {}]   ;;  %s698_s3 = inlined_call_operand.vmem [shape: f32[9,128], index: 3, kind: input, shape index: {}]   ;;  %s699_s4 = inlined_call_operand.vmem [shape: bf16[6,9,128], index: 4, kind: output, shape index: {}]  }
   0x1   :  { %10 = vsyncpa [#allocation5], 0  ;;  %s595_s15 = smov 0  }
   0x2 LB: > { %s601_s16 = sadd.s32 4294967295, %s563_s15   ;;  %p421_p0 = scmp.ge.s32.totalorder %s563_s15, 1  ;;  %s563_s15 = sphi %s595_s15, %s16_s15  }
   0x3   : > { %p136_p1 = scmp.lt.s32.totalorder %s563_s15, 7  ;;  %s565_s17 = smov [#allocation2]  }
   0x4   : > { %s148_s18 = sshll.u32 %s565_s17, 4  ;;  %p700_p3 = scmp.eq.s32.totalorder %s601_s16, 0  ;;  %s149_s18 = int_to_ptr.vmem [resolvable:$true] %s148_s18 }
   0x5   : > { %p605_p2 = pnand %p421_p0, %p136_p1  ;;  %s566_s20 = smov [#allocation4]  }
   0x6   : > { %s162_s21 = sshll.u32 %s566_s20, 4  ;;  %s493_s25 = scalar_lea.hbm %s696_s1, 256  ;;  %s618_s21 = int_to_ptr.vmem [resolvable:$true] %s162_s21 }
   0x7   : > { %s702_s19 = scalar_select %p605_p2, 1, 0 }
   0x8   : > { %p469_p4 = pneg %p605_p2  ;;  %p494_p6 = scmp.ne.s32.totalorder %s696_s1, %s493_s25 }
   0x9   : > { %p500_p10 = scmp.lt.u32.totalorder %s493_s25, %s696_s1 }
   0xa   : > { %p614_p5 = pnand %p700_p3, %p469_p4 }
   0xc   : > { %p495_p7 = pneg %p614_p5 }
   0xe   : > { %p496_p8 = pnand %p495_p7, %p494_p6 }
  0x10   : > { %p497_p9 = pneg %p496_p8 }
  0x12   : > { %p502_p11 = pnand %p500_p10, %p497_p9 }
  0x14   : > { %505 = shalt.err (!%p502_p11)
}
  0x15   : > { %s506_s30 = scalar_lea.vmem %s149_s18, 256  ;;  %p514_p1 = scmp.lt.s32.totalorder %s149_s18, %s149_s18 }
  0x16   : > { %p507_p12 = scmp.ne.s32.totalorder %s149_s18, %s506_s30  ;;  %p515_p4 = scmp.lt.s32.totalorder %s506_s30, %s506_s30 }
  0x18   : > { %p509_p13 = pnand %p507_p12, %p495_p7  ;;  %p516_p3 = por %p515_p4, %p514_p1 }
  0x1a   : > { %p510_p0 = pneg %p509_p13 }
  0x1c   : > { %p517_p2 = pnand %p516_p3, %p510_p0 }
  0x1e   : > { %520 = shalt.err (!%p517_p2)
}
  0x1f   : > { %s567_s5 = smov 128   ;;  %s568_s6 = smov 8  }
  0x20   : > { %472 = dma.hbm_to_vmem [thread:$0]  (!%p614_p5), %s696_s1, 256, %s149_s18, [#allocation3], %s567_s5, %s567_s5, %s568_s6  }
  0x21   : > { %s521_s11 = scalar_lea.hbm %s697_s2, 16 }
  0x22   : > { %p522_p6 = scmp.ne.s32.totalorder %s697_s2, %s521_s11  ;;  %p528_p8 = scmp.lt.u32.totalorder %s521_s11, %s697_s2 }
  0x24   : > { %p524_p2 = pnand %p522_p6, %p495_p7 }
  0x26   : > { %p525_p3 = pneg %p524_p2 }
  0x28   : > { %p530_p9 = pnand %p528_p8, %p525_p3 }
  0x2a   : > { %533 = shalt.err (!%p530_p9)
}
  0x2b   : > { %s534_s18 = scalar_lea.vmem %s618_s21, 16  ;;  %s541_s20 = scalar_lea.vmem %s618_s21, 32 }
  0x2c   : > { %p535_p10 = scmp.ne.s32.totalorder %s618_s21, %s534_s18  ;;  %p542_p13 = scmp.lt.s32.totalorder %s618_s21, %s618_s21 }
  0x2d   : > { %p543_p0 = scmp.lt.s32.totalorder %s541_s20, %s534_s18 }
  0x2e   : > { %p537_p11 = pnand %p535_p10, %p495_p7 }
  0x2f   : > { %p544_p1 = por %p543_p0, %p542_p13 }
  0x30   : > { %p538_p12 = pneg %p537_p11 }
  0x32   : > { %p545_p4 = pnand %p544_p1, %p538_p12 }
  0x34   : > { %548 = shalt.err (!%p545_p4)
}
  0x35   : > { %475 = dma.hbm_to_vmem [thread:$0]  (!%p614_p5), %s697_s2, 16, %s618_s21, [#allocation5]  }
  0x36   : > { %p704_p6 = scmp.ne.s32.totalorder %s702_s19, 0 }
  0x37   : > { %p705_p7 = scmp.eq.s32.totalorder (!%p704_p6), %s601_s16, 0 }
  0x38   : > { %186 = sbr.rel (%p704_p6) target bundleno = 296 (0x128), region = 36 }
  0x3f   : > { %554 = dma.done.wait (%p705_p7), [#allocation3], 256   ;;  %p706_p2 = pmov %p705_p7 }
  0x41   : > { %556 = vsyncadd (%p706_p2), [#allocation3], 4294967040  ;;  %p707_p3 = pmov %p706_p2 }
  0x42   : > { %p708_p8 = pmov %p706_p2 }
  0x43   : > { %558 = dma.done.wait (%p707_p3), [#allocation5], 16  }
  0x44   : > { %560 = vsyncadd (%p708_p8), [#allocation5], 4294967280  ;;  %p216_p9 = scmp.lt.s32.totalorder %s601_s16, 5  ;;  %vm244_vm0 = vcmask 1041408   ;;  %vm237_vm1 = vcmask 80896   ;;  %vm569_vm2 = vmmov 1  }
  0x45   : > { %vm456_vm3 = vmpackc.low %vm244_vm0, %vm569_vm2  ;;  %v228_v0 = vld [vmem:[#allocation2] sm:$0xff]  ;;  %v229_v1 = vld [vmem:[#allocation2 + $0x8] sm:$0x3]  ;;  %vm336_vm4 = vcmask 1040384   ;;  %vm337_vm5 = vsmask.f32 256 }
  0x46   : > { %s710_s16 = smov (!%p216_p9, %s601_s16), 5  ;;  %v455_v3 = vpack.c.bf16 %v229_v1, %v228_v0  ;;  %v432_v5 = vld [vmem:[#allocation4] ss:$0 sm:$0xff]  ;;  %v324_v7 = vld [vmem:[%s698_s3 + $0x8] sm:$0x1]  ;;  %v323_v10 = vld [vmem:[%s698_s3] sm:$0xff] }
  0x47   : > { %s440_s21 = sshll.u32 %s710_s16, 4  ;;  %s441_s26 = sshll.u32 %s710_s16, 3  ;;  %vm338_vm6 = vmand %vm336_vm4, %vm337_vm5 }
  0x48   : > { %s220_s25 = scalar_lea.vmem %s695_s0, %s440_s21  ;;  %457 = vmatprep.subr.msk.bf16.mxu0 %vm456_vm3, %v455_v3  ;;  %s225_s5 = scalar_lea.vmem %s699_s4, %s441_s26 }
  0x49   : > { %v226_v2 = vld [vmem:[%s220_s25] sm:$0xff]  ;;  %460 = vmatpush3.bf16.msk.msra.mxu0 %vm456_vm3, %v455_v3  ;;  %v227_v4 = vld [vmem:[%s220_s25 + $0x8] sm:$0x1] }
  0x4a   : > { %452 = vmatprep.mubr.msk.f32.mxu0 %vm237_vm1, %v226_v2  ;;  %v339_v13 = vld [vmem:[%s225_s5 + $0x4] sm:$0x1] }
  0x4c   : > { %453 = vmatmul.mubr.msk.f32.vlgmr.msra.gmra.mrb[0].mxu0 %vm237_vm1, %v227_v4 }
 0x11f   : > { %v454_v6 = vpop.f32.mrb[0].mxu0 }
 0x120   : > { %v320_v8 = vadd.f32 %v454_v6, %v432_v5  ;;  %v314_v9 = vpop.f32.mrb[1].mxu0 }
 0x121   : > { %v315_v11 = vadd.f32 %v432_v5, %v314_v9 }
 0x122   : > { %v326_v12 = vadd.f32 %v324_v7, %v320_v8 }
 0x123   : > { %v325_v14 = vadd.f32 %v323_v10, %v315_v11 }
 0x124   : > { %v443_v15 = vpack.c.bf16 %v326_v12, %v326_v12 }
 0x125   : > { %v442_v16 = vpack.c.bf16 %v325_v14, %v325_v14 }
 0x126   : > { %v340_v17 = vsel %vm338_vm6, %v443_v15, %v339_v13 }
 0x127   : > { %341 = vst [vmem:[%s225_s5 + $0x4] sm:$0x1] %v340_v17  ;;  %335 = vst [vmem:[%s225_s5] sm:$0xf] %v442_v16 }
 0x128 PF: > { %s16_s15 = sadd.s32 1, %s563_s15  }
 0x129   : > { %p13_p5 = scmp.ge.s32.totalorder %s16_s15, 8  }
 0x12b   :  { %15 = sbr.rel (!%p13_p5) target bundleno = 2 (0x2), region = 75 }
 0x132   :  { %363 = vsyncpa [#allocation3], 1 }
 0x133   :  { %365 = vsyncpa [#allocation3 + $0x1], 1 }
 0x134   :  { %366 = vsyncpa [#allocation5], 1 }

// kernel: bert_forward.7
= control target key start
LH: loop header
LB: loop body
LE: loop exit
PB: predicated region body
PF: predicated region fallthrough
CT: control target
= control target key end

     0   :  { %v180_v0 = vmov 0.0   ;;  %vm181_vm0 = vmmov 0   ;;  %s235_s1 = inlined_call_operand.vmem [shape: bf16[128,128], index: 1, kind: input, shape index: {}]   ;;  %s236_s0 = inlined_call_operand.vmem [shape: bf16[6,128], index: 0, kind: input, shape index: {}]   ;;  %s237_s2 = inlined_call_operand.vmem [shape: f32[1,128], index: 2, kind: input, shape index: {}]   ;;  %s238_s3 = inlined_call_operand.vmem [shape: f32[6,128], index: 3, kind: output, shape index: {}]  }
   0x1   :  { %150 = vmatprep.subr.bf16.mxu0 %v180_v0  ;;  %v172_v1 = vld [vmem:[%s235_s1] sm:$0xff]   ;;  %166 = vmatprep.mubr.msk.bf16.mxu0 %vm181_vm0, %v180_v0  ;;  %v173_v2 = vld [vmem:[%s235_s1 + $0x8] sm:$0xff]   ;;  %v174_v3 = vld [vmem:[%s235_s1 + $0x10] sm:$0xff]  }
   0x2   :  { %151 = vmatpush3.bf16.msra.mxu0 %v172_v1  ;;  %v175_v4 = vld [vmem:[%s235_s1 + $0x18] sm:$0xff]   ;;  %v176_v5 = vld [vmem:[%s235_s1 + $0x20] sm:$0xff]   ;;  %v177_v6 = vld [vmem:[%s235_s1 + $0x28] sm:$0xff]  }
   0x3   :  { %152 = vmatprep.subr.bf16.mxu0 %v180_v0  ;;  %v178_v7 = vld [vmem:[%s235_s1 + $0x30] sm:$0xff]   ;;  %v179_v8 = vld [vmem:[%s235_s1 + $0x38] sm:$0xff]   ;;  %v15_v9 = vld [vmem:[%s236_s0] sm:$0x7] }
   0x4   :  { %v132_v10 = vld [vmem:[%s237_s2] ss:$0 sm:$0xff] }
   0x6   :  { %153 = vmatpush3.bf16.msra.mxu0 %v173_v2 }
   0x7   :  { %154 = vmatprep.subr.bf16.mxu0 %v180_v0 }
   0xa   :  { %155 = vmatpush3.bf16.msra.mxu0 %v174_v3 }
   0xb   :  { %156 = vmatprep.subr.bf16.mxu0 %v180_v0 }
   0xe   :  { %157 = vmatpush3.bf16.msra.mxu0 %v175_v4 }
   0xf   :  { %158 = vmatprep.subr.bf16.mxu0 %v180_v0 }
  0x12   :  { %159 = vmatpush3.bf16.msra.mxu0 %v176_v5 }
  0x13   :  { %160 = vmatprep.subr.bf16.mxu0 %v180_v0 }
  0x16   :  { %161 = vmatpush3.bf16.msra.mxu0 %v177_v6 }
  0x17   :  { %162 = vmatprep.subr.bf16.mxu0 %v180_v0 }
  0x1a   :  { %163 = vmatpush3.bf16.msra.mxu0 %v178_v7 }
  0x1b   :  { %164 = vmatprep.subr.bf16.mxu0 %v180_v0 }
  0x1e   :  { %165 = vmatpush3.bf16.msra.mxu0 %v179_v8 }
  0x21   :  { %167 = vmatmul.mubr.bf16.vlgmr.msra.gmra.mrb[0].mxu0 %v15_v9 }
  0xf4   :  { %v121_v11 = vpop.f32.mrb[0].mxu0 }
  0xf5   :  { %v122_v12 = vadd.f32 %v132_v10, %v121_v11  ;;  %v168_v13 = vpop.f32.mrb[1].mxu0 }
  0xf6   :  { %v124_v14 = vpop.f32.mrb[2].mxu0 }
  0xf7   :  { %127 = vst [vmem:[%s238_s3] sm:$0x3f] %v122_v12  ;;  %v169_v15 = vpop.f32.mrb[3].mxu0 }

// kernel: bert_forward.6
= control target key start
LH: loop header
LB: loop body
LE: loop exit
PB: predicated region body
PF: predicated region fallthrough
CT: control target
= control target key end

     0   :  { %s2360_s25 = smov 0   ;;  %s2754_s0 = inlined_call_operand.vmem [shape: bf16[6,9,128], index: 0, kind: input, shape index: {}]   ;;  %s2755_s1 = inlined_call_operand.vmem [shape: f32[1,128], index: 1, kind: input, shape index: {}]   ;;  %s2756_s2 = inlined_call_operand.vmem [shape: f32[1,128], index: 2, kind: input, shape index: {}]   ;;  %s2757_s3 = inlined_call_operand.vmem [shape: f32[1,128], index: 3, kind: input, shape index: {}]   ;;  %s2758_s4 = inlined_call_operand.vmem [shape: f32[1,128], index: 4, kind: input, shape index: {}]   ;;  %s2759_s5 = inlined_call_operand.vmem [shape: bf16[128,384], index: 5, kind: input, shape index: {}]   ;;  %s2760_s6 = inlined_call_operand.vmem [shape: f32[1,384], index: 6, kind: input, shape index: {}]   ;;  %s2761_s7 = inlined_call_operand.vmem [shape: bf16[128,128], index: 7, kind: input, shape index: {}]   ;;  %s2762_s8 = inlined_call_operand.vmem [shape: f32[1,128], index: 8, kind: input, shape index: {}]   ;;  %s2763_s9 = inlined_call_operand.vmem [shape: bf16[128,256], index: 9, kind: input, shape index: {}]   ;;  %s2764_s10 = inlined_call_operand.vmem [shape: f32[1,256], index: 10, kind: input, shape index: {}]   ;;  %s2765_s11 = inlined_call_operand.vmem [shape: bf16[256,128], index: 11, kind: input, shape index: {}]   ;;  %s2766_s12 = inlined_call_operand.vmem [shape: f32[1,128], index: 12, kind: input, shape index: {}]   ;;  %s2767_s13 = inlined_call_operand.vmem [shape: bf16[6,9,128], index: 13, kind: output, shape index: {}]  }
   0x1 LB: > { %s1878_s26 = sadd.s32 4294967295, %s2281_s25   ;;  %p1882_p0 = scmp.ge.s32.totalorder %s2281_s25, 1  ;;  %s2281_s25 = sphi %s2360_s25, %s23_s25  }
   0x2   : > { %p387_p1 = scmp.lt.s32.totalorder %s2281_s25, 7 }
   0x4   : > { %p388_p2 = pnand %p1882_p0, %p387_p1 }
   0x5   : > { %p431_p3 = scmp.lt.s32.totalorder (!%p388_p2), %s1878_s26, 5  ;;  %vm450_vm0 = vcmask (!%p388_p2), 1040384   ;;  %v2147_v5 = vld [vmem:[%s2759_s5 + $0x4] ss:$12 sps:$4 sm:$0xff] (!%p388_p2)   ;;  %v2149_v6 = vld [vmem:[%s2759_s5] ss:$12 sps:$4 sm:$0xff] (!%p388_p2)   ;;  %v525_v57 = vlaneseq (!%p388_p2) }
   0x6   : > { %391 = sbr.rel (%p388_p2) target bundleno = 3006 (0xbbe), region = 72  ;;  %v2283_v7 = vmov (!%p388_p2), 0.0   ;;  %v2150_v8 = vld [vmem:[%s2759_s5 + $0x8] ss:$12 sps:$4 sm:$0xff] (!%p388_p2)   ;;  %668 = vmatprep.subr.bf16.mxu0 (!%p388_p2), %v2147_v5  ;;  %v2153_v19 = vld [vmem:[%s2759_s5 + $0x18] ss:$12 sps:$4 sm:$0xff] (!%p388_p2)  }
   0x7   : > { %2029 = vmatprep.subr.bf16.mxu1 (!%p388_p2), %v2283_v7  ;;  %v2151_v9 = vld [vmem:[%s2759_s5 + $0x1c] ss:$12 sps:$4 sm:$0xff] (!%p388_p2)   ;;  %669 = vmatpush1.bf16.msra.mxu0 (!%p388_p2), %v2149_v6  ;;  %v2154_v20 = vld [vmem:[%s2759_s5 + $0x20] ss:$12 sps:$4 sm:$0xff] (!%p388_p2)   ;;  %v2158_v23 = vld [vmem:[%s2759_s5 + $0x38] ss:$12 sps:$4 sm:$0xff] (!%p388_p2)  }
   0x8   : > { %2030 = vmatpush3.bf16.msra.mxu1 (!%p388_p2), %v2150_v8  ;;  %670 = vmatprep.subr.bf16.mxu0 (!%p388_p2), %v2151_v9  ;;  %v2155_v21 = vld [vmem:[%s2759_s5 + $0x34] ss:$12 sps:$4 sm:$0xff] (!%p388_p2)   ;;  %v2157_v22 = vld [vmem:[%s2759_s5 + $0x30] ss:$12 sps:$4 sm:$0xff] (!%p388_p2)   ;;  %v2159_v24 = vld [vmem:[%s2759_s5 + $0x4c] ss:$12 sps:$4 sm:$0xff] (!%p388_p2)  }
   0x9   : > { %2031 = vmatprep.subr.bf16.mxu1 (!%p388_p2), %v2283_v7  ;;  %v2161_v25 = vld [vmem:[%s2759_s5 + $0x48] ss:$12 sps:$4 sm:$0xff] (!%p388_p2)   ;;  %v2162_v26 = vld [vmem:[%s2759_s5 + $0x50] ss:$12 sps:$4 sm:$0xff] (!%p388_p2)   ;;  %v2165_v28 = vld [vmem:[%s2759_s5 + $0x60] ss:$12 sps:$4 sm:$0xff] (!%p388_p2)  }
   0xa   : > { %v2163_v27 = vld [vmem:[%s2759_s5 + $0x64] ss:$12 sps:$4 sm:$0xff] (!%p388_p2)   ;;  %v2166_v29 = vld [vmem:[%s2759_s5 + $0x68] ss:$12 sps:$4 sm:$0xff] (!%p388_p2)   ;;  %v2170_v32 = vld [vmem:[%s2759_s5 + $0x80] ss:$12 sps:$4 sm:$0xff] (!%p388_p2)  }
   0xb   : > { %671 = vmatpush1.bf16.msra.mxu0 (!%p388_p2), %v2153_v19  ;;  %v2167_v30 = vld [vmem:[%s2759_s5 + $0x7c] ss:$12 sps:$4 sm:$0xff] (!%p388_p2)   ;;  %v2169_v31 = vld [vmem:[%s2759_s5 + $0x78] ss:$12 sps:$4 sm:$0xff] (!%p388_p2)   ;;  %v2171_v33 = vld [vmem:[%s2759_s5 + $0x94] ss:$12 sps:$4 sm:$0xff] (!%p388_p2)  }
   0xc   : > { %2032 = vmatpush3.bf16.msra.mxu1 (!%p388_p2), %v2154_v20  ;;  %672 = vmatprep.subr.bf16.mxu0 (!%p388_p2), %v2155_v21  ;;  %v2284_v34 = vmov (!%p388_p2), 0   ;;  %vm2285_vm1 = vmmov (!%p388_p2), 0   ;;  %v2173_v35 = vld [vmem:[%s2759_s5 + $0x90] ss:$12 sps:$4 sm:$0xff] (!%p388_p2)   ;;  %v2174_v36 = vld [vmem:[%s2759_s5 + $0x98] ss:$12 sps:$4 sm:$0xff] (!%p388_p2)  }
   0xd   : > { %s2769_s26 = smov (!%p431_p3, %s1878_s26), 5  ;;  %2033 = vmatprep.subr.bf16.mxu1 %v2283_v7  ;;  %700 = vmatprep.mubr.bf16.mxu0 %v2284_v34  ;;  %v2175_v37 = vld [vmem:[%s2759_s5 + $0xac] ss:$12 sps:$4 sm:$0xff]   ;;  %v2177_v38 = vld [vmem:[%s2759_s5 + $0xa8] ss:$12 sps:$4 sm:$0xff]   ;;  %v2491_v58 = vshrl.u32 %v525_v57, 7 }
   0xe   : > { %s1969_s27 = sshll.u32 %s2769_s26, 3  ;;  %2045 = vmatprep.mubr.msk.bf16.mxu1 %vm2285_vm1, %v2283_v7  ;;  %v2178_v39 = vld [vmem:[%s2759_s5 + $0xb0] ss:$12 sps:$4 sm:$0xff]   ;;  %v1887_v48 = vld [vmem:[%s2755_s1] ss:$0 sm:$0xff]  ;;  %vm755_vm2 = vcmask 261120  }
   0xf   : > { %s435_s30 = scalar_lea.vmem %s2754_s0, %s1969_s27  ;;  %673 = vmatpush1.bf16.msra.mxu0 %v2157_v22  ;;  %v1888_v52 = vld [vmem:[%s2756_s2] ss:$0 sm:$0xff]  ;;  %v527_v59 = vsub.s32 0, %v2491_v58  ;;  %v535_v60 = vsub.s32 2, %v2491_v58  ;;  %v531_v62 = vsub.s32 1, %v2491_v58  ;;  %vm831_vm3 = vcmask 1043456   ;;  %s440_s23 = scalar_lea.vmem %s2767_s13, %s1969_s27 }
  0x10   : > { %v443_v0 = vld [vmem:[%s435_s30 + $0x4] sm:$0x1]  ;;  %v442_v1 = vld [vmem:[%s435_s30] sm:$0xf]  ;;  %2034 = vmatpush3.bf16.msra.mxu1 %v2158_v23  ;;  %674 = vmatprep.subr.bf16.mxu0 %v2159_v24  ;;  %vm832_vm4 = vcmask 1044480   ;;  %v2286_v23 = vmov 65535  }
  0x11   : > { %v2376_v2 = vunpack.c.l.bf16 %v443_v0  ;;  %v2380_v4 = vunpack.c.l.bf16 %v442_v1  ;;  %2035 = vmatprep.subr.bf16.mxu1 %v2283_v7  ;;  %v523_v61 = vld [vmem:[%s2760_s6] sm:$0x7]  ;;  %v833_v24 = vsel %vm831_vm3, 4294967295, %v2286_v23  ;;  %vm803_vm5 = vcmask 72704   ;;  %s2287_s29 = smov 96   ;;  %s2288_s30 = smov 64  }
  0x12   : > { %v528_v63 = vrot.slane %v523_v61, %v527_v59  ;;  %v536_v0 = vrot.slane %v523_v61, %v535_v60  ;;  %v532_v5 = vrot.slane %v523_v61, %v531_v62  ;;  %vm807_vm6 = vcmask 65536   ;;  %s2289_s14 = smov 32  }
  0x13   : > { %v451_v3 = vsel %vm450_vm0, %v2376_v2, 0.0  ;;  %675 = vmatpush1.bf16.msra.mxu0 %v2161_v25  ;;  %v2507_v25 = vsel %vm832_vm4, %v833_v24, 0  ;;  %vm1277_vm7 = vcmask 523264   ;;  %vm1280_vm8 = vcmask 785408  }
  0x14   : > { %452 = vadd.xlane.f32.xlu0 %v451_v3  ;;  %2036 = vmatpush3.bf16.msra.mxu1 %v2162_v26  ;;  %vm1818_vm9 = vsmask.f32 256 }
  0x15   : > { %2037 = vmatprep.subr.bf16.mxu1 %v2283_v7  ;;  %676 = vmatprep.subr.bf16.mxu0 %v2163_v27  ;;  %vm1819_vm10 = vmand %vm450_vm0, %vm1818_vm9 }
  0x17   : > { %677 = vmatpush1.bf16.msra.mxu0 %v2165_v28 }
  0x18   : > { %448 = vadd.xlane.f32.xlu0 %v2380_v4  ;;  %2038 = vmatpush3.bf16.msra.mxu1 %v2166_v29 }
  0x19   : > { %678 = vmatprep.subr.bf16.mxu0 %v2167_v30  ;;  %2039 = vmatprep.subr.bf16.mxu1 %v2283_v7 }
  0x1b   : > { %679 = vmatpush1.bf16.msra.mxu0 %v2169_v31 }
  0x1c   : > { %2040 = vmatpush3.bf16.msra.mxu1 %v2170_v32  ;;  %680 = vmatprep.subr.bf16.mxu0 %v2171_v33 }
  0x1d   : > { %2041 = vmatprep.subr.bf16.mxu1 %v2283_v7 }
  0x1f   : > { %681 = vmatpush1.bf16.msra.mxu0 %v2173_v35 }
  0x20   : > { %2042 = vmatpush3.bf16.msra.mxu1 %v2174_v36  ;;  %682 = vmatprep.subr.bf16.mxu0 %v2175_v37 }
  0x21   : > { %2043 = vmatprep.subr.bf16.mxu1 %v2283_v7 }
  0x23   : > { %683 = vmatpush1.bf16.msra.mxu0 %v2177_v38 }
  0x24   : > { %2044 = vmatpush3.bf16.msra.mxu1 %v2178_v39  ;;  %2073 = vmatprep.subr.bf16.mxu0 %v2283_v7 }
  0x25   : > { %2049 = vmatprep.subr.bf16.mxu1 %v2283_v7 }
  0xa1   : > { %v453_v10 = vpop.xlane.xlu0 %452 }
  0xa2   : > { %v456_v11 = vmul.f32 0.0078125, %v453_v10 }
  0xa4   : > { %v2398_v14 = vsub.f32 %v2376_v2, %v456_v11 }
  0xa5   : > { %v449_v12 = vpop.xlane.xlu0 %448 }
  0xa6   : > { %v455_v13 = vmul.f32 0.0078125, %v449_v12  ;;  %v460_v17 = vmul.f32 %v2398_v14, %v2398_v14 }
  0xa8   : > { %v2401_v15 = vsub.f32 %v2380_v4, %v455_v13  ;;  %v463_v18 = vsel %vm450_vm0, %v460_v17, 0.0 }
  0xaa   : > { %v459_v16 = vmul.f32 %v2401_v15, %v2401_v15 }
  0xac   : > { %461 = vadd.xlane.f32.xlu1 %v459_v16 }
  0xb0   : > { %464 = vadd.xlane.f32.xlu1 %v463_v18 }
 0x139   : > { %v462_v40 = vpop.xlane.xlu1 %461 }
 0x13a   : > { %v466_v41 = vmul.f32 0.0078125, %v462_v40 }
 0x13c   : > { %v468_v42 = vadd.f32 1e-05, %v466_v41 }
 0x13d   : > { %v465_v43 = vpop.xlane.xlu1 %464 }
 0x13e   : > { %2227 = vrsqrt.f32 %v468_v42  ;;  %v467_v44 = vmul.f32 0.0078125, %v465_v43 }
 0x140   : > { %v469_v45 = vadd.f32 1e-05, %v467_v44 }
 0x142   : > { %2229 = vrsqrt.f32 %v469_v45 }
 0x148   : > { %v2228_v46 = vpop.eup %2227 }
 0x149   : > { %v472_v47 = vmul.f32 %v2228_v46, %v2401_v15 }
 0x14b   : > { %v480_v51 = vmul.f32 %v1887_v48, %v472_v47 }
 0x14c   : > { %v2230_v49 = vpop.eup %2229 }
 0x14d   : > { %v473_v50 = vmul.f32 %v2230_v49, %v2398_v14  ;;  %v488_v54 = vadd.f32 %v1888_v52, %v480_v51 }
 0x14f   : > { %v481_v53 = vmul.f32 %v1887_v48, %v473_v50 }
 0x151   : > { %v489_v55 = vadd.f32 %v1888_v52, %v481_v53 }
 0x153   : > { %v490_v56 = vpack.c.bf16 %v489_v55, %v488_v54 }
 0x155   : > { %701 = vmatmul.mubr.bf16.vlgmr.msra.gmra.mrb[0].mxu0 %v490_v56  ;;  %2046 = vmatmul.mubr.bf16.vlgmr.msra.gmra.mrb[0].mxu1 %v490_v56 }
 0x156   : > { %2051 = vmatprep.mubr.msk.bf16.mxu1 %vm2285_vm1, %v2283_v7  ;;  %2075 = vmatprep.mubr.msk.bf16.mxu0 %vm2285_vm1, %v2283_v7 }
 0x228   : > { %v702_v1 = vpop.f32.mrb[0].mxu0  ;;  %v745_v3 = vpop.f32.mrb[0].mxu1 }
 0x229   : > { %v704_v6 = vpop.f32.mrb[1].mxu0  ;;  %v2047_v8 = vpop.f32.mrb[1].mxu1  ;;  %v703_v11 = vadd.f32 %v702_v1, %v528_v63  ;;  %v746_v12 = vadd.f32 %v745_v3, %v536_v0 }
 0x22a   : > { %v706_v9 = vpop.f32.mrb[2].mxu0  ;;  %v748_v10 = vpop.f32.mrb[2].mxu1  ;;  %v705_v17 = vadd.f32 %v704_v6, %v532_v5 }
 0x22b   : > { %v707_v13 = vadd.f32 %v706_v9, %v528_v63  ;;  %v749_v14 = vadd.f32 %v748_v10, %v536_v0  ;;  %v708_v15 = vpop.f32.mrb[3].mxu0  ;;  %v2048_v16 = vpop.f32.mrb[3].mxu1 }
 0x22c   : > { %v709_v18 = vadd.f32 %v708_v15, %v532_v5 }
 0x22d   : > { %v752_v19 = vpack.c.bf16 %v707_v13, %v703_v11  ;;  %v2503_v20 = vpack.c.bf16 %v749_v14, %v746_v12 }
 0x22e   : > { %v753_v21 = vpack.c.bf16 %v709_v18, %v705_v17 }
 0x22f   : > { %v836_v26 = vand.u32 %v2507_v25, %v2503_v20 }
 0x230   : > { %v760_v22 = vsel %vm755_vm2, %v753_v21, 0 }
 0x231   : > { %2050 = vmatpush3.bf16.xpose.msra.mxu1 %v760_v22 }
 0x232   : > { %2055 = vmatprep.subr.bf16.mxu1 %v2283_v7 }
 0x238   : > { %2052 = vmatmul.mubr.msk.bf16.vlgmr.msra.gmra.mrb[4].mxu1 %vm755_vm2, %v752_v19 }
 0x239   : > { %2056 = vmatpush3.bf16.msra.mxu1 %v836_v26  ;;  %2057 = vmatprep.mubr.msk.bf16.mxu1 %vm2285_vm1, %v2283_v7 }
 0x23a   : > { %2061 = vmatprep.subr.bf16.mxu1 %v2283_v7 }
 0x30b   : > { %v796_v27 = vpop.f32.mrb[4].mxu1 }
 0x30c   : > { %v2053_v28 = vpop.f32.mrb[5].mxu1  ;;  %v804_v29 = vsel %vm803_vm5, %v796_v27, -inf }
 0x30d   : > { %805 = vmax.xlane.f32.xlu0 %v804_v29  ;;  %v799_v30 = vpop.f32.mrb[6].mxu1 }
 0x30e   : > { %v2054_v31 = vpop.f32.mrb[7].mxu1  ;;  %v808_v32 = vsel %vm807_vm6, %v799_v30, -inf }
 0x30f   : > { %809 = vmax.xlane.f32.xlu1 %v808_v32 }
 0x39a   : > { %v806_v33 = vpop.xlane.xlu0 %805 }
 0x39b   : > { %v811_v35 = vsub.f32 %v796_v27, %v806_v33 }
 0x39c   : > { %v810_v36 = vpop.xlane.xlu1 %809 }
 0x39d   : > { %v813_v37 = vmul.f32 1.442695, %v811_v35  ;;  %v812_v38 = vsub.f32 %v799_v30, %v810_v36 }
 0x39f   : > { %2231 = vpow2.f32 %v813_v37  ;;  %v815_v39 = vmul.f32 1.442695, %v812_v38 }
 0x3a1   : > { %2233 = vpow2.f32 %v815_v39 }
 0x3a9   : > { %v2232_v40 = vpop.eup %2231 }
 0x3aa   : > { %v817_v41 = vsel %vm803_vm5, %v2232_v40, 0.0 }
 0x3ab   : > { %v2234_v42 = vpop.eup %2233  ;;  %818 = vadd.xlane.f32.xlu0 %v817_v41 }
 0x3ac   : > { %v820_v43 = vsel %vm807_vm6, %v2234_v42, 0.0 }
 0x3ad   : > { %821 = vadd.xlane.f32.xlu1 %v820_v43 }
 0x3be   : > { %880 = vrot.lane.b32.xlu1 %v752_v19, %s2287_s29 }
 0x3c1   : > { %883 = vrot.lane.b32.xlu0 %v753_v21, %s2287_s29 }
 0x3c2   : > { %1007 = vrot.lane.b32.xlu1 %v753_v21, %s2288_s30 }
 0x3c5   : > { %1130 = vrot.lane.b32.xlu0 %v753_v21, %s2289_s14 }
 0x3c6   : > { %1005 = vrot.lane.b32.xlu1 %v752_v19, %s2288_s30 }
 0x3ca   : > { %1128 = vrot.lane.b32.xlu1 %v752_v19, %s2289_s14 }
 0x438   : > { %v819_v44 = vpop.xlane.xlu0 %818 }
 0x439   : > { %2235 = vrcp.f32 %v819_v44 }
 0x43a   : > { %v822_v45 = vpop.xlane.xlu1 %821 }
 0x43b   : > { %2237 = vrcp.f32 %v822_v45 }
 0x43c   : > { %v884_v47 = vpop.permute.xlu0 %883 }
 0x43d   : > { %v889_v56 = vsel %vm755_vm2, %v884_v47, 0 }
 0x43e   : > { %v881_v46 = vpop.permute.xlu1 %880 }
 0x440   : > { %v1131_v54 = vpop.permute.xlu0 %1130 }
 0x441   : > { %v1136_v60 = vsel %vm755_vm2, %v1131_v54, 0 }
 0x442   : > { %v1008_v48 = vpop.permute.xlu1 %1007 }
 0x443   : > { %v2236_v49 = vpop.eup %2235  ;;  %v1013_v50 = vsel %vm755_vm2, %v1008_v48, 0 }
 0x444   : > { %2074 = vmatpush3.bf16.xpose.msra.mxu0 %v1013_v50  ;;  %v825_v52 = vmul.f32 %v2236_v49, %v2232_v40 }
 0x445   : > { %v2238_v51 = vpop.eup %2237  ;;  %2085 = vmatprep.subr.bf16.mxu0 %v2283_v7 }
 0x446   : > { %v826_v53 = vmul.f32 %v2238_v51, %v2234_v42  ;;  %v1006_v57 = vpop.permute.xlu1 %1005 }
 0x448   : > { %v827_v55 = vpack.c.bf16 %v826_v53, %v825_v52 }
 0x44a   : > { %2058 = vmatmul.mubr.msk.bf16.vlgmr.msra.gmra.mrb[8].mxu1 %vm803_vm5, %v827_v55  ;;  %v1129_v61 = vpop.permute.xlu1 %1128 }
 0x44b   : > { %2062 = vmatpush3.bf16.xpose.msra.mxu1 %v889_v56  ;;  %2076 = vmatmul.mubr.msk.bf16.vlgmr.msra.gmra.mrb[4].mxu0 %vm755_vm2, %v1006_v57 }
 0x44c   : > { %2086 = vmatpush3.bf16.xpose.msra.mxu0 %v1136_v60  ;;  %2063 = vmatprep.mubr.msk.bf16.mxu1 %vm2285_vm1, %v2283_v7 }
 0x44d   : > { %2087 = vmatprep.mubr.msk.bf16.mxu0 %vm2285_vm1, %v2283_v7  ;;  %2067 = vmatprep.subr.bf16.mxu1 %v2283_v7 }
 0x44e   : > { %2097 = vmatprep.subr.bf16.mxu0 %v2283_v7 }
 0x452   : > { %2064 = vmatmul.mubr.msk.bf16.vlgmr.msra.gmra.mrb[12].mxu1 %vm755_vm2, %v881_v46 }
 0x453   : > { %2088 = vmatmul.mubr.msk.bf16.vlgmr.msra.gmra.mrb[8].mxu0 %vm755_vm2, %v1129_v61  ;;  %2069 = vmatprep.mubr.msk.bf16.mxu1 %vm2285_vm1, %v2283_v7 }
 0x454   : > { %2113 = vmatprep.mubr.msk.bf16.mxu0 %vm2285_vm1, %v2283_v7 }
 0x51d   : > { %v2543_v63 = vpop.f32.mrb[8].mxu1 }
 0x51e   : > { %v2059_v0 = vpop.f32.mrb[9].mxu1  ;;  %v1049_v1 = vpop.f32.mrb[4].mxu0 }
 0x51f   : > { %v2545_v3 = vpop.f32.mrb[10].mxu1  ;;  %v2077_v5 = vpop.f32.mrb[5].mxu0  ;;  %v1056_v21 = vsel %vm803_vm5, %v1049_v1, -inf }
 0x520   : > { %v2060_v6 = vpop.f32.mrb[11].mxu1  ;;  %v1052_v8 = vpop.f32.mrb[6].mxu0 }
 0x521   : > { %v2078_v9 = vpop.f32.mrb[7].mxu0  ;;  %v1059_v23 = vsel %vm807_vm6, %v1052_v8, -inf }
 0x525   : > { %v925_v10 = vpop.f32.mrb[12].mxu1 }
 0x526   : > { %v2065_v11 = vpop.f32.mrb[13].mxu1  ;;  %v1172_v12 = vpop.f32.mrb[8].mxu0  ;;  %v932_v13 = vsel %vm803_vm5, %v925_v10, -inf }
 0x527   : > { %v2089_v14 = vpop.f32.mrb[9].mxu0  ;;  %933 = vmax.xlane.f32.xlu0 %v932_v13  ;;  %v928_v15 = vpop.f32.mrb[14].mxu1  ;;  %v1179_v24 = vsel %vm803_vm5, %v1172_v12, -inf }
 0x528   : > { %v2066_v16 = vpop.f32.mrb[15].mxu1  ;;  %v1175_v17 = vpop.f32.mrb[10].mxu0  ;;  %v935_v18 = vsel %vm807_vm6, %v928_v15, -inf }
 0x529   : > { %v2090_v19 = vpop.f32.mrb[11].mxu0  ;;  %936 = vmax.xlane.f32.xlu1 %v935_v18  ;;  %v1182_v22 = vsel %vm807_vm6, %v1175_v17, -inf }
 0x52b   : > { %1057 = vmax.xlane.f32.xlu0 %v1056_v21 }
 0x52d   : > { %1183 = vmax.xlane.f32.xlu1 %v1182_v22 }
 0x52f   : > { %1060 = vmax.xlane.f32.xlu0 %v1059_v23 }
 0x533   : > { %1180 = vmax.xlane.f32.xlu0 %v1179_v24 }
 0x5b4   : > { %v934_v26 = vpop.xlane.xlu0 %933 }
 0x5b5   : > { %v938_v36 = vsub.f32 %v925_v10, %v934_v26 }
 0x5b6   : > { %v937_v27 = vpop.xlane.xlu1 %936 }
 0x5b7   : > { %v939_v37 = vsub.f32 %v928_v15, %v937_v27  ;;  %v940_v42 = vmul.f32 1.442695, %v938_v36 }
 0x5b8   : > { %v1058_v28 = vpop.xlane.xlu0 %1057 }
 0x5b9   : > { %v1062_v29 = vsub.f32 %v1049_v1, %v1058_v28  ;;  %v942_v43 = vmul.f32 1.442695, %v939_v37 }
 0x5ba   : > { %v1184_v30 = vpop.xlane.xlu1 %1183 }
 0x5bb   : > { %v1064_v31 = vmul.f32 1.442695, %v1062_v29  ;;  %v1186_v32 = vsub.f32 %v1175_v17, %v1184_v30  ;;  %v2179_v29 = vld [vmem:[%s2761_s7] sm:$0xff]   ;;  %v2181_v30 = vld [vmem:[%s2761_s7 + $0x10] sm:$0xff]  }
 0x5bc   : > { %v1061_v33 = vpop.xlane.xlu0 %1060  ;;  %2098 = vmatpush3.bf16.msra.mxu0 %v2179_v29 }
 0x5bd   : > { %2239 = vpow2.f32 %v1064_v31  ;;  %v1063_v35 = vsub.f32 %v1052_v8, %v1061_v33  ;;  %v1189_v38 = vmul.f32 1.442695, %v1186_v32  ;;  %2099 = vmatprep.subr.bf16.mxu0 %v2283_v7  ;;  %v2183_v31 = vld [vmem:[%s2761_s7 + $0x20] sm:$0xff]  }
 0x5bf   : > { %v1066_v39 = vmul.f32 1.442695, %v1063_v35  ;;  %v2184_v35 = vld [vmem:[%s2761_s7 + $0x28] sm:$0xff]  }
 0x5c0   : > { %v1181_v40 = vpop.xlane.xlu0 %1180 }
 0x5c1   : > { %2241 = vpow2.f32 %v1066_v39  ;;  %v1185_v41 = vsub.f32 %v1172_v12, %v1181_v40  ;;  %v2185_v39 = vld [vmem:[%s2761_s7 + $0x30] sm:$0xff]  }
 0x5c2   : > { %2243 = vpow2.f32 %v1189_v38 }
 0x5c3   : > { %v1187_v44 = vmul.f32 1.442695, %v1185_v41 }
 0x5c5   : > { %2245 = vpow2.f32 %v1187_v44 }
 0x5c6   : > { %2247 = vpow2.f32 %v940_v42  ;;  %v2186_v42 = vld [vmem:[%s2761_s7 + $0x38] sm:$0xff]  }
 0x5c7   : > { %v2240_v45 = vpop.eup %2239  ;;  %2249 = vpow2.f32 %v942_v43 }
 0x5c8   : > { %v1068_v46 = vsel %vm803_vm5, %v2240_v45, 0.0 }
 0x5c9   : > { %1069 = vadd.xlane.f32.xlu0 %v1068_v46 }
 0x5cb   : > { %v2242_v47 = vpop.eup %2241 }
 0x5cc   : > { %v1071_v48 = vsel %vm807_vm6, %v2242_v47, 0.0  ;;  %v2244_v49 = vpop.eup %2243 }
 0x5cd   : > { %1072 = vadd.xlane.f32.xlu1 %v1071_v48  ;;  %v1194_v53 = vsel %vm807_vm6, %v2244_v49, 0.0 }
 0x5cf   : > { %v2246_v50 = vpop.eup %2245 }
 0x5d0   : > { %v2248_v51 = vpop.eup %2247  ;;  %v1191_v52 = vsel %vm803_vm5, %v2246_v50, 0.0 }
 0x5d1   : > { %v2250_v54 = vpop.eup %2249  ;;  %1192 = vadd.xlane.f32.xlu0 %v1191_v52  ;;  %1195 = vadd.xlane.f32.xlu1 %v1194_v53  ;;  %v944_v55 = vsel %vm803_vm5, %v2248_v51, 0.0 }
 0x5d2   : > { %v947_v56 = vsel %vm807_vm6, %v2250_v54, 0.0 }
 0x5d5   : > { %945 = vadd.xlane.f32.xlu0 %v944_v55  ;;  %948 = vadd.xlane.f32.xlu1 %v947_v56 }
 0x5e6   : > { %1079 = vrot.lane.b32.xlu1 %v2503_v20, %s2288_s30 }
 0x5ea   : > { %1202 = vrot.lane.b32.xlu1 %v2503_v20, %s2289_s14 }
 0x5eb   : > { %956 = vrot.lane.b32.xlu0 %v2503_v20, %s2287_s29 }
 0x656   : > { %v1070_v57 = vpop.xlane.xlu0 %1069 }
 0x65a   : > { %v1073_v60 = vpop.xlane.xlu1 %1072 }
 0x65e   : > { %v1193_v61 = vpop.xlane.xlu0 %1192  ;;  %v1196_v0 = vpop.xlane.xlu1 %1195 }
 0x662   : > { %v946_v1 = vpop.xlane.xlu0 %945  ;;  %v949_v5 = vpop.xlane.xlu1 %948 }
 0x663   : > { %2251 = vrcp.f32 %v946_v1 }
 0x664   : > { %2253 = vrcp.f32 %v949_v5 }
 0x665   : > { %2255 = vrcp.f32 %v1073_v60 }
 0x666   : > { %v957_v6 = vpop.permute.xlu0 %956  ;;  %2257 = vrcp.f32 %v1070_v57  ;;  %v1080_v12 = vpop.permute.xlu1 %1079 }
 0x667   : > { %v962_v8 = vand.u32 %v957_v6, %v2507_v25  ;;  %2259 = vrcp.f32 %v1193_v61  ;;  %v1085_v15 = vand.u32 %v1080_v12, %v2507_v25 }
 0x668   : > { %2261 = vrcp.f32 %v1196_v0 }
 0x669   : > { %2068 = vmatpush3.bf16.msra.mxu1 %v962_v8 }
 0x66a   : > { %2079 = vmatprep.subr.bf16.mxu1 %v2283_v7  ;;  %v1203_v19 = vpop.permute.xlu1 %1202 }
 0x66b   : > { %v1208_v24 = vand.u32 %v1203_v19, %v2507_v25  ;;  %v2180_v25 = vld [vmem:[%s2761_s7 + $0x8] sm:$0xff]  }
 0x66c   : > { %2100 = vmatpush3.bf16.msra.mxu0 %v2180_v25  ;;  %v2195_v25 = vld [vmem:[%s2763_s9 + $0x24] ss:$8 sps:$4 sm:$0xff]  }
 0x66d   : > { %v2252_v9 = vpop.eup %2251  ;;  %2101 = vmatprep.subr.bf16.mxu0 %v2283_v7 }
 0x66e   : > { %v2254_v10 = vpop.eup %2253  ;;  %v952_v11 = vmul.f32 %v2252_v9, %v2248_v51 }
 0x66f   : > { %v953_v20 = vmul.f32 %v2254_v10, %v2250_v54  ;;  %v2256_v14 = vpop.eup %2255  ;;  %v1921_v10 = vld [vmem:[%s2762_s8] ss:$0 sm:$0xff] }
 0x670   : > { %v2258_v16 = vpop.eup %2257  ;;  %v1077_v17 = vmul.f32 %v2256_v14, %v2242_v47  ;;  %2102 = vmatpush3.bf16.msra.mxu0 %v2181_v30  ;;  %v2193_v30 = vld [vmem:[%s2763_s9 + $0x20] ss:$8 sps:$4 sm:$0xff]  }
 0x671   : > { %v954_v13 = vpack.c.bf16 %v953_v20, %v952_v11  ;;  %v1076_v18 = vmul.f32 %v2258_v16, %v2240_v45  ;;  %v2260_v21 = vpop.eup %2259  ;;  %2103 = vmatprep.subr.bf16.mxu0 %v2283_v7 }
 0x672   : > { %v2262_v23 = vpop.eup %2261  ;;  %v1199_v26 = vmul.f32 %v2260_v21, %v2246_v50 }
 0x673   : > { %2070 = vmatmul.mubr.msk.bf16.vlgmr.msra.gmra.mrb[16].mxu1 %vm803_vm5, %v954_v13  ;;  %v1078_v22 = vpack.c.bf16 %v1077_v17, %v1076_v18  ;;  %v1200_v27 = vmul.f32 %v2262_v23, %v2244_v49  ;;  %v2187_v17 = vld [vmem:[%s2763_s9] ss:$8 sps:$4 sm:$0xff]   ;;  %v2192_v18 = vld [vmem:[%s2763_s9 + $0x14] ss:$8 sps:$4 sm:$0xff]  }
 0x674   : > { %2080 = vmatpush3.bf16.msra.mxu1 %v1085_v15  ;;  %2081 = vmatprep.mubr.msk.bf16.mxu1 %vm2285_vm1, %v2283_v7 }
 0x675   : > { %2091 = vmatprep.subr.bf16.mxu1 %v2283_v7  ;;  %v1201_v28 = vpack.c.bf16 %v1200_v27, %v1199_v26 }
 0x67b   : > { %2082 = vmatmul.mubr.msk.bf16.vlgmr.msra.gmra.mrb[20].mxu1 %vm803_vm5, %v1078_v22 }
 0x67c   : > { %2092 = vmatpush3.bf16.msra.mxu1 %v1208_v24  ;;  %2093 = vmatprep.mubr.msk.bf16.mxu1 %vm2285_vm1, %v2283_v7 }
 0x683   : > { %2094 = vmatmul.mubr.msk.bf16.vlgmr.msra.gmra.mrb[24].mxu1 %vm803_vm5, %v1201_v28 }
 0x684   : > { %1581 = vmatprep.mubr.bf16.mxu1 %v2284_v34  ;;  %v2182_v34 = vld [vmem:[%s2761_s7 + $0x18] sm:$0xff]  }
 0x685   : > { %2104 = vmatpush3.bf16.msra.mxu0 %v2182_v34  ;;  %v2198_v34 = vld [vmem:[%s2763_s9 + $0x34] ss:$8 sps:$4 sm:$0xff]  }
 0x686   : > { %2105 = vmatprep.subr.bf16.mxu0 %v2283_v7 }
 0x689   : > { %2106 = vmatpush3.bf16.msra.mxu0 %v2183_v31  ;;  %v2196_v31 = vld [vmem:[%s2763_s9 + $0x30] ss:$8 sps:$4 sm:$0xff]  }
 0x68a   : > { %2107 = vmatprep.subr.bf16.mxu0 %v2283_v7 }
 0x68d   : > { %2108 = vmatpush3.bf16.msra.mxu0 %v2184_v35  ;;  %v2204_v35 = vld [vmem:[%s2763_s9 + $0x54] ss:$8 sps:$4 sm:$0xff]  }
 0x68e   : > { %2109 = vmatprep.subr.bf16.mxu0 %v2283_v7 }
 0x691   : > { %2110 = vmatpush3.bf16.msra.mxu0 %v2185_v39  ;;  %v2210_v39 = vld [vmem:[%s2763_s9 + $0x74] ss:$8 sps:$4 sm:$0xff]  }
 0x692   : > { %2111 = vmatprep.subr.bf16.mxu0 %v2283_v7 }
 0x695   : > { %2112 = vmatpush3.bf16.msra.mxu0 %v2186_v42 }
 0x746   : > { %v998_v32 = vpop.f32.mrb[16].mxu1 }
 0x747   : > { %v2071_v33 = vpop.f32.mrb[17].mxu1 }
 0x748   : > { %v1001_v36 = vpop.f32.mrb[18].mxu1  ;;  %v2199_v33 = vld [vmem:[%s2763_s9 + $0x40] ss:$8 sps:$4 sm:$0xff]  }
 0x749   : > { %v2132_v37 = vpack.i.bf16 %v1001_v36, %v998_v32  ;;  %v2072_v38 = vpop.f32.mrb[19].mxu1  ;;  %v2201_v32 = vld [vmem:[%s2763_s9 + $0x44] ss:$8 sps:$4 sm:$0xff]   ;;  %v2202_v36 = vld [vmem:[%s2763_s9 + $0x50] ss:$8 sps:$4 sm:$0xff]  }
 0x74a   : > { %v2205_v38 = vld [vmem:[%s2763_s9 + $0x60] ss:$8 sps:$4 sm:$0xff]  }
 0x74b   : > { %2133 = vrot.lane.b32.xlu1 %v2132_v37, %s2289_s14  ;;  %v2207_v37 = vld [vmem:[%s2763_s9 + $0x64] ss:$8 sps:$4 sm:$0xff]  }
 0x74e   : > { %v1121_v40 = vpop.f32.mrb[20].mxu1 }
 0x74f   : > { %v2083_v41 = vpop.f32.mrb[21].mxu1 }
 0x750   : > { %v1124_v43 = vpop.f32.mrb[22].mxu1 }
 0x751   : > { %v2137_v44 = vpack.i.bf16 %v1124_v43, %v1121_v40  ;;  %v2084_v45 = vpop.f32.mrb[23].mxu1  ;;  %v2208_v40 = vld [vmem:[%s2763_s9 + $0x70] ss:$8 sps:$4 sm:$0xff]  }
 0x753   : > { %2138 = vrot.lane.b32.xlu0 %v2137_v44, %s2288_s30 }
 0x756   : > { %v1244_v46 = vpop.f32.mrb[24].mxu1 }
 0x757   : > { %v2095_v47 = vpop.f32.mrb[25].mxu1 }
 0x758   : > { %v1247_v48 = vpop.f32.mrb[26].mxu1 }
 0x759   : > { %v2142_v49 = vpack.i.bf16 %v1247_v48, %v1244_v46  ;;  %v2096_v50 = vpop.f32.mrb[27].mxu1 }
 0x75b   : > { %2143 = vrot.lane.b32.xlu1 %v2142_v49, %s2287_s29  ;;  %v1930_v49 = vld [vmem:[%s2757_s3] ss:$0 sm:$0xff] }
 0x7bd   : > { %v2134_v51 = vpop.permute.xlu1 %2133 }
 0x7be   : > { %v2136_v52 = vunpack.i.h.bf16 %v2134_v51  ;;  %v2135_v53 = vunpack.i.l.bf16 %v2134_v51 }
 0x7c0   : > { %v1276_v57 = vsel %vm755_vm2, %v2545_v3, %v2136_v52  ;;  %v1275_v60 = vsel %vm755_vm2, %v2543_v63, %v2135_v53  ;;  %v1931_v52 = vld [vmem:[%s2758_s4] ss:$0 sm:$0xff] }
 0x7c5   : > { %v2139_v7 = vpop.permute.xlu0 %2138 }
 0x7c6   : > { %v2141_v54 = vunpack.i.h.bf16 %v2139_v7  ;;  %v2140_v55 = vunpack.i.l.bf16 %v2139_v7 }
 0x7c8   : > { %v1279_v1 = vsel %vm1277_vm7, %v1276_v57, %v2141_v54  ;;  %v1278_v5 = vsel %vm1277_vm7, %v1275_v60, %v2140_v55  ;;  %v2211_v57 = vld [vmem:[%s2765_s11 + $0x40] sm:$0xff]  }
 0x7c9   : > { %v2212_v60 = vld [vmem:[%s2765_s11] sm:$0xff]   ;;  %2007 = vmatprep.subr.bf16.mxu0 %v2211_v57 }
 0x7cd   : > { %v2144_v56 = vpop.permute.xlu1 %2143 }
 0x7ce   : > { %v2146_v61 = vunpack.i.h.bf16 %v2144_v56  ;;  %v2145_v0 = vunpack.i.l.bf16 %v2144_v56 }
 0x7d0   : > { %v1282_v6 = vsel %vm1280_vm8, %v1279_v1, %v2146_v61  ;;  %v1281_v8 = vsel %vm1280_vm8, %v1278_v5, %v2145_v0  ;;  %v2213_v61 = vld [vmem:[%s2765_s11 + $0x48] sm:$0xff]   ;;  %v2215_v1 = vld [vmem:[%s2765_s11 + $0x50] sm:$0xff]  }
 0x7d1   : > { %v1283_v9 = vpack.c.bf16 %v1282_v6, %v1281_v8  ;;  %v2214_v0 = vld [vmem:[%s2765_s11 + $0x8] sm:$0xff]   ;;  %v2216_v5 = vld [vmem:[%s2765_s11 + $0x10] sm:$0xff]   ;;  %v2217_v6 = vld [vmem:[%s2765_s11 + $0x58] sm:$0xff]  }
 0x7d2   : > { %v2218_v8 = vld [vmem:[%s2765_s11 + $0x18] sm:$0xff]  }
 0x7d3   : > { %2114 = vmatmul.mubr.bf16.vlgmr.msra.gmra.mrb[12].mxu0 %v1283_v9  ;;  %v2219_v9 = vld [vmem:[%s2765_s11 + $0x60] sm:$0xff]  }
 0x7d4   : > { %2008 = vmatpush3.bf16.msra.mxu0 %v2212_v60 }
 0x7d5   : > { %2009 = vmatprep.subr.bf16.mxu0 %v2213_v61 }
 0x7d8   : > { %2010 = vmatpush3.bf16.msra.mxu0 %v2214_v0 }
 0x7d9   : > { %2011 = vmatprep.subr.bf16.mxu0 %v2215_v1  ;;  %v1948_v1 = vld [vmem:[%s2766_s12] ss:$0 sm:$0xff] }
 0x7dc   : > { %2012 = vmatpush3.bf16.msra.mxu0 %v2216_v5 }
 0x7dd   : > { %2013 = vmatprep.subr.bf16.mxu0 %v2217_v6 }
 0x7e0   : > { %2014 = vmatpush3.bf16.msra.mxu0 %v2218_v8 }
 0x7e1   : > { %2015 = vmatprep.subr.bf16.mxu0 %v2219_v9 }
 0x8a6   : > { %v1389_v11 = vpop.f32.mrb[12].mxu0 }
 0x8a7   : > { %v1390_v20 = vadd.f32 %v1921_v10, %v1389_v11  ;;  %v2115_v12 = vpop.f32.mrb[13].mxu0  ;;  %v2221_v11 = vld [vmem:[%s2765_s11 + $0x68] sm:$0xff]  }
 0x8a8   : > { %v1392_v13 = vpop.f32.mrb[14].mxu0  ;;  %v2223_v12 = vld [vmem:[%s2765_s11 + $0x70] sm:$0xff]  }
 0x8a9   : > { %v2620_v3 = vadd.f32 %v1390_v20, %v2380_v4  ;;  %v1393_v63 = vadd.f32 %v1921_v10, %v1392_v13  ;;  %v2116_v14 = vpop.f32.mrb[15].mxu0  ;;  %v2189_v4 = vld [vmem:[%s2763_s9 + $0x4] ss:$8 sps:$4 sm:$0xff]   ;;  %v2224_v13 = vld [vmem:[%s2765_s11 + $0x30] sm:$0xff]  }
 0x8aa   : > { %1549 = vmatprep.subr.bf16.mxu1 %v2189_v4  ;;  %v2220_v10 = vld [vmem:[%s2765_s11 + $0x20] sm:$0xff]   ;;  %v2222_v20 = vld [vmem:[%s2765_s11 + $0x28] sm:$0xff]   ;;  %v2226_v14 = vld [vmem:[%s2765_s11 + $0x38] sm:$0xff]  }
 0x8ab   : > { %v2623_v15 = vadd.f32 %v1393_v63, %v2376_v2  ;;  %1400 = vadd.xlane.f32.xlu1 %v2620_v3  ;;  %1550 = vmatpush1.bf16.msra.mxu1 %v2187_v17  ;;  %v2190_v2 = vld [vmem:[%s2763_s9 + $0x10] ss:$8 sps:$4 sm:$0xff]  }
 0x8ac   : > { %1551 = vmatprep.subr.bf16.mxu1 %v2192_v18  ;;  %2016 = vmatpush3.bf16.msra.mxu0 %v2220_v10  ;;  %v2225_v63 = vld [vmem:[%s2765_s11 + $0x78] sm:$0xff]  }
 0x8ad   : > { %v1402_v16 = vsel %vm450_vm0, %v2623_v15, 0.0  ;;  %2017 = vmatprep.subr.bf16.mxu0 %v2221_v11 }
 0x8ae   : > { %1403 = vadd.xlane.f32.xlu0 %v1402_v16  ;;  %v1457_v16 = vld [vmem:[%s2764_s10] sm:$0x3] }
 0x8af   : > { %1552 = vmatpush1.bf16.msra.mxu1 %v2190_v2  ;;  %v1462_v17 = vrot.slane %v1457_v16, %v527_v59  ;;  %v1466_v4 = vrot.slane %v1457_v16, %v531_v62 }
 0x8b0   : > { %1553 = vmatprep.subr.bf16.mxu1 %v2195_v25  ;;  %2018 = vmatpush3.bf16.msra.mxu0 %v2222_v20 }
 0x8b1   : > { %2019 = vmatprep.subr.bf16.mxu0 %v2223_v12 }
 0x8b3   : > { %1554 = vmatpush1.bf16.msra.mxu1 %v2193_v30 }
 0x8b4   : > { %1555 = vmatprep.subr.bf16.mxu1 %v2198_v34  ;;  %2020 = vmatpush3.bf16.msra.mxu0 %v2224_v13 }
 0x8b5   : > { %2021 = vmatprep.subr.bf16.mxu0 %v2225_v63 }
 0x8b7   : > { %1556 = vmatpush1.bf16.msra.mxu1 %v2196_v31 }
 0x8b8   : > { %1557 = vmatprep.subr.bf16.mxu1 %v2201_v32  ;;  %2022 = vmatpush3.bf16.msra.mxu0 %v2226_v14  ;;  %v1820_v14 = vld [vmem:[%s440_s23 + $0x4] sm:$0x1] }
 0x8bb   : > { %1558 = vmatpush1.bf16.msra.mxu1 %v2199_v33 }
 0x8bc   : > { %1559 = vmatprep.subr.bf16.mxu1 %v2204_v35 }
 0x8bf   : > { %1560 = vmatpush1.bf16.msra.mxu1 %v2202_v36 }
 0x8c0   : > { %1561 = vmatprep.subr.bf16.mxu1 %v2207_v37 }
 0x8c3   : > { %1562 = vmatpush1.bf16.msra.mxu1 %v2205_v38 }
 0x8c4   : > { %1563 = vmatprep.subr.bf16.mxu1 %v2210_v39 }
 0x8c7   : > { %1564 = vmatpush1.bf16.msra.mxu1 %v2208_v40 }
 0x938   : > { %v1401_v19 = vpop.xlane.xlu1 %1400 }
 0x939   : > { %v1405_v21 = vmul.f32 0.0078125, %v1401_v19 }
 0x93b   : > { %v1407_v22 = vsub.f32 %v2620_v3, %v1405_v21  ;;  %v1404_v23 = vpop.xlane.xlu0 %1403 }
 0x93c   : > { %v1406_v24 = vmul.f32 0.0078125, %v1404_v23 }
 0x93d   : > { %v1409_v26 = vmul.f32 %v1407_v22, %v1407_v22 }
 0x93e   : > { %v1408_v27 = vsub.f32 %v2623_v15, %v1406_v24 }
 0x93f   : > { %1411 = vadd.xlane.f32.xlu0 %v1409_v26 }
 0x940   : > { %v1410_v28 = vmul.f32 %v1408_v27, %v1408_v27 }
 0x942   : > { %v1413_v29 = vsel %vm450_vm0, %v1410_v28, 0.0 }
 0x943   : > { %1414 = vadd.xlane.f32.xlu0 %v1413_v29 }
 0x9cc   : > { %v1412_v41 = vpop.xlane.xlu0 %1411 }
 0x9cd   : > { %v1416_v42 = vmul.f32 0.0078125, %v1412_v41 }
 0x9cf   : > { %v1418_v43 = vadd.f32 1e-05, %v1416_v42 }
 0x9d0   : > { %v1415_v44 = vpop.xlane.xlu0 %1414 }
 0x9d1   : > { %2263 = vrsqrt.f32 %v1418_v43  ;;  %v1417_v45 = vmul.f32 0.0078125, %v1415_v44 }
 0x9d3   : > { %v1419_v46 = vadd.f32 1e-05, %v1417_v45 }
 0x9d5   : > { %2265 = vrsqrt.f32 %v1419_v46 }
 0x9db   : > { %v2264_v47 = vpop.eup %2263 }
 0x9dc   : > { %v1422_v48 = vmul.f32 %v2264_v47, %v1407_v22 }
 0x9de   : > { %v1430_v7 = vmul.f32 %v1930_v49, %v1422_v48 }
 0x9df   : > { %v2266_v50 = vpop.eup %2265 }
 0x9e0   : > { %v1423_v51 = vmul.f32 %v2266_v50, %v1408_v27  ;;  %v1438_v54 = vadd.f32 %v1931_v52, %v1430_v7 }
 0x9e2   : > { %v1431_v53 = vmul.f32 %v1930_v49, %v1423_v51 }
 0x9e4   : > { %v1439_v55 = vadd.f32 %v1931_v52, %v1431_v53 }
 0x9e6   : > { %v1440_v56 = vpack.c.bf16 %v1439_v55, %v1438_v54 }
 0x9e8   : > { %1582 = vmatmul.mubr.bf16.vlgmr.msra.gmra.mrb[28].mxu1 %v1440_v56 }
 0xabb   : > { %v1583_v18 = vpop.f32.mrb[28].mxu1 }
 0xabc   : > { %v1584_v2 = vadd.f32 %v1583_v18, %v1462_v17  ;;  %v1585_v19 = vpop.f32.mrb[29].mxu1 }
 0xabd   : > { %v1586_v21 = vadd.f32 %v1585_v19, %v1466_v4  ;;  %v1587_v22 = vpop.f32.mrb[30].mxu1 }
 0xabe   : > { %v1596_v23 = vmul.f32 0.044715, %v1584_v2  ;;  %v1588_v24 = vadd.f32 %v1587_v22, %v1462_v17  ;;  %v1589_v26 = vpop.f32.mrb[31].mxu1  ;;  %v1592_v49 = vmul.f32 0.5, %v1584_v2 }
 0xabf   : > { %v1597_v27 = vmul.f32 0.044715, %v1586_v21  ;;  %v1590_v28 = vadd.f32 %v1589_v26, %v1466_v4  ;;  %v1593_v7 = vmul.f32 0.5, %v1586_v21 }
 0xac0   : > { %v1600_v29 = vmul.f32 %v1596_v23, %v1584_v2  ;;  %v1598_v25 = vmul.f32 0.044715, %v1588_v24  ;;  %v1594_v50 = vmul.f32 0.5, %v1588_v24 }
 0xac1   : > { %v1601_v30 = vmul.f32 %v1597_v27, %v1586_v21  ;;  %v1599_v34 = vmul.f32 0.044715, %v1590_v28  ;;  %v1595_v52 = vmul.f32 0.5, %v1590_v28 }
 0xac2   : > { %v1604_v31 = vmul.f32 %v1600_v29, %v1584_v2  ;;  %v1602_v32 = vmul.f32 %v1598_v25, %v1588_v24 }
 0xac3   : > { %v1605_v59 = vmul.f32 %v1601_v30, %v1586_v21  ;;  %v1603_v33 = vmul.f32 %v1599_v34, %v1590_v28 }
 0xac4   : > { %v1608_v58 = vadd.f32 %v1604_v31, %v1584_v2  ;;  %v1606_v62 = vmul.f32 %v1602_v32, %v1588_v24 }
 0xac5   : > { %v1607_v35 = vmul.f32 %v1603_v33, %v1590_v28  ;;  %v1609_v36 = vadd.f32 %v1605_v59, %v1586_v21 }
 0xac6   : > { %v1612_v37 = vmul.f32 0.7978846, %v1608_v58  ;;  %v1610_v38 = vadd.f32 %v1606_v62, %v1588_v24 }
 0xac7   : > { %v1611_v39 = vadd.f32 %v1607_v35, %v1590_v28  ;;  %v1613_v40 = vmul.f32 0.7978846, %v1609_v36 }
 0xac8   : > { %2267 = vtanh.f32 %v1612_v37  ;;  %v1614_v41 = vmul.f32 0.7978846, %v1610_v38 }
 0xac9   : > { %v1615_v42 = vmul.f32 0.7978846, %v1611_v39  ;;  %2269 = vtanh.f32 %v1613_v40 }
 0xaca   : > { %2271 = vtanh.f32 %v1614_v41 }
 0xacb   : > { %2273 = vtanh.f32 %v1615_v42 }
 0xad2   : > { %v2268_v43 = vpop.eup %2267 }
 0xad3   : > { %v2270_v44 = vpop.eup %2269  ;;  %v1620_v45 = vadd.f32 1.0, %v2268_v43 }
 0xad4   : > { %v2272_v46 = vpop.eup %2271  ;;  %v1621_v47 = vadd.f32 1.0, %v2270_v44 }
 0xad5   : > { %v2274_v48 = vpop.eup %2273  ;;  %v1622_v51 = vadd.f32 1.0, %v2272_v46  ;;  %v1624_v54 = vmul.f32 %v1620_v45, %v1592_v49 }
 0xad6   : > { %v1623_v53 = vadd.f32 1.0, %v2274_v48  ;;  %v1625_v56 = vmul.f32 %v1621_v47, %v1593_v7 }
 0xad7   : > { %v1626_v55 = vmul.f32 %v1622_v51, %v1594_v50 }
 0xad8   : > { %v1627_v57 = vmul.f32 %v1623_v53, %v1595_v52 }
 0xad9   : > { %v1628_v60 = vpack.c.bf16 %v1626_v55, %v1624_v54 }
 0xada   : > { %v1629_v61 = vpack.c.bf16 %v1627_v57, %v1625_v56 }
 0xadc   : > { %1797 = vmatprep.mubr.bf16.mxu0 %v1629_v61 }
 0xadd   : > { %1798 = vmatmul.mubr.bf16.vlgmr.msra.gmra.mrb[16].mxu0 %v1628_v60 }
 0xbb0   : > { %v2023_v0 = vpop.f32.mrb[16].mxu0 }
 0xbb1   : > { %v2024_v5 = vpop.f32.mrb[17].mxu0 }
 0xbb2   : > { %v2025_v6 = vadd.f32 %v2024_v5, %v2023_v0  ;;  %v2026_v8 = vpop.f32.mrb[18].mxu0 }
 0xbb3   : > { %v2027_v9 = vpop.f32.mrb[19].mxu0 }
 0xbb4   : > { %v1800_v10 = vadd.f32 %v2025_v6, %v1948_v1  ;;  %v2028_v11 = vadd.f32 %v2027_v9, %v2026_v8 }
 0xbb6   : > { %v1806_v20 = vadd.f32 %v1800_v10, %v2620_v3  ;;  %v1803_v12 = vadd.f32 %v2028_v11, %v1948_v1 }
 0xbb8   : > { %v1971_v13 = vpack.c.bf16 %v1806_v20, %v1806_v20  ;;  %v1807_v63 = vadd.f32 %v1803_v12, %v2623_v15 }
 0xbba   : > { %1816 = vst [vmem:[%s440_s23] sm:$0xf] %v1971_v13  ;;  %v1972_v16 = vpack.c.bf16 %v1807_v63, %v1807_v63 }
 0xbbc   : > { %v1821_v17 = vsel %vm1819_vm10, %v1972_v16, %v1820_v14 }
 0xbbd   : > { %1822 = vst [vmem:[%s440_s23 + $0x4] sm:$0x1] %v1821_v17 }
 0xbbe PF: > { %s23_s25 = sadd.s32 1, %s2281_s25  }
 0xbbf   : > { %p20_p4 = scmp.ge.s32.totalorder %s23_s25, 8  }
 0xbc1   :  { %22 = sbr.rel (!%p20_p4) target bundleno = 1 (0x1), region = 102 }

// kernel: bert_forward.5
= control target key start
LH: loop header
LB: loop body
LE: loop exit
PB: predicated region body
PF: predicated region fallthrough
CT: control target
= control target key end

     0   :  { %18 = vsyncpa [#allocation3], 0  ;;  %s3480_s0 = inlined_call_operand.vmem [shape: bf16[6,9,128], index: 0, kind: input, shape index: {}]   ;;  %s3481_s1 = inlined_call_operand.hbm [shape: f32[1,128], index: 1, kind: input, shape index: {}]   ;;  %s3482_s2 = inlined_call_operand.hbm [shape: f32[1,128], index: 2, kind: input, shape index: {}]   ;;  %s3483_s3 = inlined_call_operand.hbm [shape: f32[1,128], index: 3, kind: input, shape index: {}]   ;;  %s3484_s4 = inlined_call_operand.hbm [shape: f32[1,128], index: 4, kind: input, shape index: {}]   ;;  %s3485_s5 = inlined_call_operand.vmem [shape: bf16[128,384], index: 5, kind: input, shape index: {}]   ;;  %s3486_s6 = inlined_call_operand.hbm [shape: f32[1,384], index: 6, kind: input, shape index: {}]   ;;  %s3487_s7 = inlined_call_operand.vmem [shape: bf16[128,128], index: 7, kind: input, shape index: {}]   ;;  %s3488_s8 = inlined_call_operand.hbm [shape: f32[1,128], index: 8, kind: input, shape index: {}]   ;;  %s3489_s9 = inlined_call_operand.vmem [shape: bf16[128,256], index: 9, kind: input, shape index: {}]   ;;  %s3490_s10 = inlined_call_operand.hbm [shape: f32[1,256], index: 10, kind: input, shape index: {}]   ;;  %s3491_s11 = inlined_call_operand.vmem [shape: bf16[256,128], index: 11, kind: input, shape index: {}]   ;;  %s3492_s12 = inlined_call_operand.hbm [shape: f32[1,128], index: 12, kind: input, shape index: {}]   ;;  %s3493_s13 = inlined_call_operand.vmem [shape: bf16[6,9,128], index: 13, kind: output, shape index: {}]  }
   0x1   :  { %19 = vsyncpa [#allocation5], 0 }
   0x2   :  { %20 = vsyncpa [#allocation8], 0 }
   0x3   :  { %21 = vsyncpa [#allocation11], 0 }
   0x4   :  { %22 = vsyncpa [#allocation14], 0  ;;  %s2889_s25 = smov 0  }
   0x5 LB: > { %3497 = sst [smem:[#allocation20_spill]] %s2802_s25  ;;  %s2804_s26 = smov [#allocation4]   ;;  %s2802_s25 = sphi %s2889_s25, %s28_s25  }
   0x6   : > { %s361_s27 = sshll.u32 %s2804_s26, 4  ;;  %s2895_s28 = sadd.s32 4294967295, %s2802_s25   ;;  %s2900_s27 = int_to_ptr.vmem [resolvable:$true] %s361_s27 }
   0x7   : > { %p2060_p0 = scmp.ge.s32.totalorder %s2802_s25, 1  ;;  %p337_p1 = scmp.lt.s32.totalorder %s2802_s25, 7 }
   0x8   : > { %p3495_p2 = scmp.eq.s32.totalorder %s2895_s28, 0  ;;  %s2805_s30 = smov [#allocation7]  }
   0x9   : > { %p2902_p3 = pnand %p2060_p0, %p337_p1  ;;  %s383_s14 = sshll.u32 %s2805_s30, 4  ;;  %s2908_s14 = int_to_ptr.vmem [resolvable:$true] %s383_s14 }
   0xa   : > { %s2806_s15 = smov [#allocation10]   ;;  %s2807_s18 = smov [#allocation2]  }
   0xb   : > { %s3498_s29 = scalar_select %p2902_p3, 1, 0 }
   0xc   : > { %p2345_p4 = pneg %p2902_p3  ;;  %s411_s16 = sshll.u32 %s2806_s15, 4  ;;  %s2916_s16 = int_to_ptr.vmem [resolvable:$true] %s411_s16 }
   0xd   : > { %s350_s19 = sshll.u32 %s2807_s18, 4  ;;  %s2552_s22 = scalar_lea.hbm %s3482_s2, 16  ;;  %s2918_s19 = int_to_ptr.vmem [resolvable:$true] %s350_s19 }
   0xe   : > { %p2912_p5 = pnand %p3495_p2, %p2345_p4  ;;  %p2553_p6 = scmp.ne.s32.totalorder %s3482_s2, %s2552_s22 }
   0xf   : > { %p2559_p10 = scmp.lt.u32.totalorder %s2552_s22, %s3482_s2 }
  0x10   : > { %p2928_p7 = pneg %p2912_p5 }
  0x12   : > { %p2555_p8 = pnand %p2928_p7, %p2553_p6 }
  0x14   : > { %p2556_p9 = pneg %p2555_p8 }
  0x16   : > { %p2561_p11 = pnand %p2559_p10, %p2556_p9 }
  0x18   : > { %2564 = shalt.err (!%p2561_p11)
}
  0x19   : > { %s2565_s18 = scalar_lea.vmem %s2900_s27, 16  ;;  %s2572_s20 = scalar_lea.vmem %s2900_s27, 32 }
  0x1a   : > { %p2566_p12 = scmp.ne.s32.totalorder %s2900_s27, %s2565_s18  ;;  %p2573_p1 = scmp.lt.s32.totalorder %s2900_s27, %s2900_s27 }
  0x1b   : > { %p2574_p4 = scmp.lt.s32.totalorder %s2572_s20, %s2565_s18 }
  0x1c   : > { %p2568_p13 = pnand %p2566_p12, %p2928_p7 }
  0x1d   : > { %p2575_p6 = por %p2574_p4, %p2573_p1 }
  0x1e   : > { %p2569_p0 = pneg %p2568_p13 }
  0x20   : > { %p2576_p8 = pnand %p2575_p6, %p2569_p0 }
  0x22   : > { %2579 = shalt.err (!%p2576_p8)
}
  0x23   : > { %2351 = dma.hbm_to_vmem [thread:$0]  (!%p2912_p5), %s3482_s2, 16, %s2900_s27, [#allocation5]  }
  0x24   : > { %s2580_s30 = scalar_lea.hbm %s3484_s4, 16 }
  0x25   : > { %p2581_p9 = scmp.ne.s32.totalorder %s3484_s4, %s2580_s30  ;;  %p2587_p12 = scmp.lt.u32.totalorder %s2580_s30, %s3484_s4 }
  0x27   : > { %p2583_p10 = pnand %p2581_p9, %p2928_p7 }
  0x29   : > { %p2584_p11 = pneg %p2583_p10 }
  0x2b   : > { %p2589_p13 = pnand %p2587_p12, %p2584_p11 }
  0x2d   : > { %2592 = shalt.err (!%p2589_p13)
}
  0x2e   : > { %s2593_s27 = scalar_lea.vmem %s2908_s14, 16  ;;  %s2600_s25 = scalar_lea.vmem %s2908_s14, 32 }
  0x2f   : > { %p2594_p0 = scmp.ne.s32.totalorder %s2908_s14, %s2593_s27  ;;  %p2601_p6 = scmp.lt.s32.totalorder %s2908_s14, %s2908_s14 }
  0x30   : > { %p2602_p8 = scmp.lt.s32.totalorder %s2600_s25, %s2593_s27 }
  0x31   : > { %p2596_p1 = pnand %p2594_p0, %p2928_p7 }
  0x32   : > { %p2603_p9 = por %p2602_p8, %p2601_p6 }
  0x33   : > { %p2597_p4 = pneg %p2596_p1 }
  0x35   : > { %p2604_p10 = pnand %p2603_p9, %p2597_p4 }
  0x37   : > { %2607 = shalt.err (!%p2604_p10)
}
  0x38   : > { %2357 = dma.hbm_to_vmem [thread:$0]  (!%p2912_p5), %s3484_s4, 16, %s2908_s14, [#allocation8]  }
  0x39   : > { %s2608_s30 = scalar_lea.hbm %s3488_s8, 16 }
  0x3a   : > { %p2609_p11 = scmp.ne.s32.totalorder %s3488_s8, %s2608_s30  ;;  %p2615_p0 = scmp.lt.u32.totalorder %s2608_s30, %s3488_s8 }
  0x3c   : > { %p2611_p12 = pnand %p2609_p11, %p2928_p7 }
  0x3e   : > { %p2612_p13 = pneg %p2611_p12 }
  0x40   : > { %p2617_p1 = pnand %p2615_p0, %p2612_p13 }
  0x42   : > { %2620 = shalt.err (!%p2617_p1)
}
  0x43   : > { %s2621_s14 = scalar_lea.vmem %s2916_s16, 16  ;;  %s2628_s25 = scalar_lea.vmem %s2916_s16, 32 }
  0x44   : > { %p2622_p4 = scmp.ne.s32.totalorder %s2916_s16, %s2621_s14  ;;  %p2629_p9 = scmp.lt.s32.totalorder %s2916_s16, %s2916_s16 }
  0x45   : > { %p2630_p10 = scmp.lt.s32.totalorder %s2628_s25, %s2621_s14 }
  0x46   : > { %p2624_p6 = pnand %p2622_p4, %p2928_p7 }
  0x47   : > { %p2631_p11 = por %p2630_p10, %p2629_p9 }
  0x48   : > { %p2625_p8 = pneg %p2624_p6 }
  0x4a   : > { %p2632_p12 = pnand %p2631_p11, %p2625_p8 }
  0x4c   : > { %2635 = shalt.err (!%p2632_p12)
}
  0x4d   : > { %2363 = dma.hbm_to_vmem [thread:$0]  (!%p2912_p5), %s3488_s8, 16, %s2916_s16, [#allocation11]  }
  0x4e   : > { %s2636_s30 = scalar_lea.hbm %s3481_s1, 16 }
  0x4f   : > { %p2637_p13 = scmp.ne.s32.totalorder %s3481_s1, %s2636_s30  ;;  %p2643_p4 = scmp.lt.u32.totalorder %s2636_s30, %s3481_s1 }
  0x51   : > { %p2639_p0 = pnand %p2637_p13, %p2928_p7 }
  0x53   : > { %p2640_p1 = pneg %p2639_p0 }
  0x55   : > { %p2645_p6 = pnand %p2643_p4, %p2640_p1 }
  0x57   : > { %2648 = shalt.err (!%p2645_p6)
}
  0x58   : > { %s2649_s16 = scalar_lea.vmem %s2918_s19, 16  ;;  %s2656_s14 = scalar_lea.vmem %s2918_s19, 32 }
  0x59   : > { %p2650_p8 = scmp.ne.s32.totalorder %s2918_s19, %s2649_s16  ;;  %p2657_p11 = scmp.lt.s32.totalorder %s2918_s19, %s2918_s19 }
  0x5a   : > { %p2658_p12 = scmp.lt.s32.totalorder %s2656_s14, %s2649_s16 }
  0x5b   : > { %p2652_p9 = pnand %p2650_p8, %p2928_p7 }
  0x5c   : > { %p2659_p13 = por %p2658_p12, %p2657_p11 }
  0x5d   : > { %p2653_p10 = pneg %p2652_p9 }
  0x5f   : > { %p2660_p0 = pnand %p2659_p13, %p2653_p10 }
  0x61   : > { %2663 = shalt.err (!%p2660_p0)
}
  0x62   : > { %2348 = dma.hbm_to_vmem [thread:$0]  (!%p2912_p5), %s3481_s1, 16, %s2918_s19, [#allocation3]  }
  0x63   : > { %s2808_s22 = smov [#allocation6]   ;;  %s2809_s24 = smov [#allocation9]  }
  0x64   : > { %s372_s23 = sshll.u32 %s2808_s22, 4  ;;  %s397_s30 = sshll.u32 %s2809_s24, 4  ;;  %s373_s23 = int_to_ptr.vmem [resolvable:$true] %s372_s23  ;;  %s398_s30 = int_to_ptr.vmem [resolvable:$true] %s397_s30 }
  0x65   : > { %s2664_s20 = scalar_lea.hbm %s3483_s3, 16 }
  0x66   : > { %p2665_p1 = scmp.ne.s32.totalorder %s3483_s3, %s2664_s20  ;;  %p2671_p8 = scmp.lt.u32.totalorder %s2664_s20, %s3483_s3 }
  0x68   : > { %p2667_p4 = pnand %p2665_p1, %p2928_p7 }
  0x6a   : > { %p2668_p6 = pneg %p2667_p4 }
  0x6c   : > { %p2673_p9 = pnand %p2671_p8, %p2668_p6 }
  0x6e   : > { %2676 = shalt.err (!%p2673_p9)
}
  0x6f   : > { %s2677_s19 = scalar_lea.vmem %s373_s23, 16  ;;  %s2684_s21 = scalar_lea.vmem %s373_s23, 32 }
  0x70   : > { %p2678_p10 = scmp.ne.s32.totalorder %s373_s23, %s2677_s19  ;;  %p2685_p13 = scmp.lt.s32.totalorder %s373_s23, %s373_s23 }
  0x71   : > { %p2686_p0 = scmp.lt.s32.totalorder %s2684_s21, %s2677_s19 }
  0x72   : > { %p2680_p11 = pnand %p2678_p10, %p2928_p7 }
  0x73   : > { %p2687_p2 = por %p2686_p0, %p2685_p13 }
  0x74   : > { %p2681_p12 = pneg %p2680_p11 }
  0x76   : > { %p2688_p3 = pnand %p2687_p2, %p2681_p12 }
  0x78   : > { %2691 = shalt.err (!%p2688_p3)
}
  0x79   : > { %2354 = dma.hbm_to_vmem [thread:$0]  (!%p2912_p5), %s3483_s3, 16, %s373_s23, [#allocation5]  }
  0x7a   : > { %s2692_s20 = scalar_lea.hbm %s3486_s6, 48 }
  0x7b   : > { %p2693_p1 = scmp.ne.s32.totalorder %s3486_s6, %s2692_s20  ;;  %p2699_p3 = scmp.lt.u32.totalorder %s2692_s20, %s3486_s6 }
  0x7d   : > { %p2695_p4 = pnand %p2693_p1, %p2928_p7 }
  0x7f   : > { %p2696_p2 = pneg %p2695_p4 }
  0x81   : > { %p2701_p6 = pnand %p2699_p3, %p2696_p2 }
  0x83   : > { %2704 = shalt.err (!%p2701_p6)
}
  0x84   : > { %s2705_s19 = scalar_lea.vmem %s398_s30, 48  ;;  %s2712_s23 = scalar_lea.vmem %s398_s30, 64 }
  0x85   : > { %p2706_p8 = scmp.ne.s32.totalorder %s398_s30, %s2705_s19  ;;  %p2713_p11 = scmp.lt.s32.totalorder %s398_s30, %s398_s30 }
  0x86   : > { %p2714_p12 = scmp.lt.s32.totalorder %s2712_s23, %s2705_s19 }
  0x87   : > { %p2708_p9 = pnand %p2706_p8, %p2928_p7 }
  0x88   : > { %p2715_p13 = por %p2714_p12, %p2713_p11 }
  0x89   : > { %p2709_p10 = pneg %p2708_p9 }
  0x8b   : > { %p2716_p0 = pnand %p2715_p13, %p2709_p10 }
  0x8d   : > { %2719 = shalt.err (!%p2716_p0)
}
  0x8e   : > { %2360 = dma.hbm_to_vmem [thread:$0]  (!%p2912_p5), %s3486_s6, 48, %s398_s30, [#allocation8]  }
  0x8f   : > { %s2810_s24 = smov [#allocation12]   ;;  %s2811_s18 = smov [#allocation13]  }
  0x90   : > { %s425_s15 = sshll.u32 %s2810_s24, 4  ;;  %s439_s20 = sshll.u32 %s2811_s18, 4  ;;  %s426_s15 = int_to_ptr.vmem [resolvable:$true] %s425_s15  ;;  %s440_s20 = int_to_ptr.vmem [resolvable:$true] %s439_s20 }
  0x91   : > { %s2720_s14 = scalar_lea.hbm %s3490_s10, 32 }
  0x92   : > { %p2721_p1 = scmp.ne.s32.totalorder %s3490_s10, %s2720_s14  ;;  %p2727_p3 = scmp.lt.u32.totalorder %s2720_s14, %s3490_s10 }
  0x94   : > { %p2723_p4 = pnand %p2721_p1, %p2928_p7 }
  0x96   : > { %p2724_p2 = pneg %p2723_p4 }
  0x98   : > { %p2729_p6 = pnand %p2727_p3, %p2724_p2 }
  0x9a   : > { %2732 = shalt.err (!%p2729_p6)
}
  0x9b   : > { %s2733_s30 = scalar_lea.vmem %s426_s15, 32  ;;  %p2741_p11 = scmp.lt.s32.totalorder %s426_s15, %s426_s15 }
  0x9c   : > { %p2734_p8 = scmp.ne.s32.totalorder %s426_s15, %s2733_s30  ;;  %p2742_p12 = scmp.lt.s32.totalorder %s2733_s30, %s2733_s30 }
  0x9e   : > { %p2736_p9 = pnand %p2734_p8, %p2928_p7  ;;  %p2743_p13 = por %p2742_p12, %p2741_p11 }
  0xa0   : > { %p2737_p10 = pneg %p2736_p9 }
  0xa2   : > { %p2744_p0 = pnand %p2743_p13, %p2737_p10 }
  0xa4   : > { %2747 = shalt.err (!%p2744_p0)
}
  0xa5   : > { %2366 = dma.hbm_to_vmem [thread:$0]  (!%p2912_p5), %s3490_s10, 32, %s426_s15, [#allocation11]  }
  0xa6   : > { %s2748_s16 = scalar_lea.hbm %s3492_s12, 16 }
  0xa7   : > { %p2749_p1 = scmp.ne.s32.totalorder %s3492_s12, %s2748_s16  ;;  %p2755_p3 = scmp.lt.u32.totalorder %s2748_s16, %s3492_s12 }
  0xa9   : > { %p2751_p4 = pnand %p2749_p1, %p2928_p7 }
  0xab   : > { %p2752_p2 = pneg %p2751_p4 }
  0xad   : > { %p2757_p6 = pnand %p2755_p3, %p2752_p2 }
  0xaf   : > { %2760 = shalt.err (!%p2757_p6)
}
  0xb0   : > { %s2761_s21 = scalar_lea.vmem %s440_s20, 16  ;;  %s2768_s15 = scalar_lea.vmem %s440_s20, 32 }
  0xb1   : > { %p2762_p8 = scmp.ne.s32.totalorder %s440_s20, %s2761_s21  ;;  %p2769_p11 = scmp.lt.s32.totalorder %s440_s20, %s440_s20 }
  0xb2   : > { %p2770_p12 = scmp.lt.s32.totalorder %s2768_s15, %s2761_s21 }
  0xb3   : > { %p2764_p9 = pnand %p2762_p8, %p2928_p7 }
  0xb4   : > { %p2771_p13 = por %p2770_p12, %p2769_p11 }
  0xb5   : > { %p2765_p10 = pneg %p2764_p9 }
  0xb7   : > { %p2772_p0 = pnand %p2771_p13, %p2765_p10 }
  0xb9   : > { %2775 = shalt.err (!%p2772_p0)
}
  0xba   : > { %2369 = dma.hbm_to_vmem [thread:$0]  (!%p2912_p5), %s3492_s12, 16, %s440_s20, [#allocation14]  }
  0xbb   : > { %p3501_p1 = scmp.ne.s32.totalorder %s3498_s29, 0 }
  0xbc   : > { %p3502_p4 = scmp.eq.s32.totalorder (!%p3501_p1), %s2895_s28, 0 }
  0xbd   : > { %460 = sbr.rel (%p3501_p1) target bundleno = 3204 (0xc84), region = 72 }
  0xc4   : > { %2781 = dma.done.wait (%p3502_p4), [#allocation3], 16   ;;  %p3503_p7 = pmov %p3502_p4 }
  0xc5   : > { %p3504_p2 = pmov %p3502_p4 }
  0xc6   : > { %2783 = vsyncadd (%p3503_p7), [#allocation3], 4294967280 }
  0xc7   : > { %2785 = dma.done.wait (%p3504_p2), [#allocation5], 32   ;;  %p3505_p3 = pmov %p3504_p2 }
  0xc8   : > { %p3506_p6 = pmov %p3504_p2 }
  0xc9   : > { %2787 = vsyncadd (%p3505_p3), [#allocation5], 4294967264 }
  0xca   : > { %2789 = dma.done.wait (%p3506_p6), [#allocation8], 64   ;;  %p3507_p5 = pmov %p3504_p2 }
  0xcb   : > { %p3508_p8 = pmov %p3504_p2 }
  0xcc   : > { %2791 = vsyncadd (%p3507_p5), [#allocation8], 4294967232 }
  0xcd   : > { %2793 = dma.done.wait (%p3508_p8), [#allocation11], 48   ;;  %p3509_p9 = pmov %p3504_p2 }
  0xce   : > { %p3510_p10 = pmov %p3504_p2 }
  0xcf   : > { %2795 = vsyncadd (%p3509_p9), [#allocation11], 4294967248 }
  0xd0   : > { %2797 = dma.done.wait (%p3510_p10), [#allocation14], 16   ;;  %p3511_p11 = pmov %p3504_p2 }
  0xd1   : > { %p532_p12 = scmp.lt.s32.totalorder %s2895_s28, 5  ;;  %vm551_vm0 = vcmask 1040384   ;;  %v2424_v5 = vld [vmem:[%s3485_s5 + $0x4] ss:$12 sps:$4 sm:$0xff]   ;;  %v2426_v6 = vld [vmem:[%s3485_s5] ss:$12 sps:$4 sm:$0xff]   ;;  %v626_v57 = vlaneseq }
  0xd2   : > { %2799 = vsyncadd (%p3511_p11), [#allocation14], 4294967280  ;;  %v2812_v7 = vmov 0.0   ;;  %v2427_v8 = vld [vmem:[%s3485_s5 + $0x8] ss:$12 sps:$4 sm:$0xff]   ;;  %769 = vmatprep.subr.bf16.mxu0 %v2424_v5  ;;  %v2813_v34 = vmov 0  }
  0xd3   : > { %s3514_s28 = smov (!%p532_p12, %s2895_s28), 5  ;;  %2225 = vmatprep.subr.bf16.mxu1 %v2812_v7  ;;  %v2428_v9 = vld [vmem:[%s3485_s5 + $0x1c] ss:$12 sps:$4 sm:$0xff]   ;;  %770 = vmatpush1.bf16.msra.mxu0 %v2426_v6  ;;  %v2430_v19 = vld [vmem:[%s3485_s5 + $0x18] ss:$12 sps:$4 sm:$0xff]   ;;  %vm2814_vm1 = vmmov 0  }
  0xd4   : > { %s2165_s29 = sshll.u32 %s3514_s28, 3  ;;  %2226 = vmatpush3.bf16.msra.mxu1 %v2427_v8  ;;  %771 = vmatprep.subr.bf16.mxu0 %v2428_v9  ;;  %v2431_v20 = vld [vmem:[%s3485_s5 + $0x20] ss:$12 sps:$4 sm:$0xff]   ;;  %v2434_v22 = vld [vmem:[%s3485_s5 + $0x30] ss:$12 sps:$4 sm:$0xff]   ;;  %v3235_v58 = vshrl.u32 %v626_v57, 7 }
  0xd5   : > { %s536_s20 = scalar_lea.vmem %s3480_s0, %s2165_s29  ;;  %2227 = vmatprep.subr.bf16.mxu1 %v2812_v7  ;;  %v2432_v21 = vld [vmem:[%s3485_s5 + $0x34] ss:$12 sps:$4 sm:$0xff]   ;;  %v2435_v23 = vld [vmem:[%s3485_s5 + $0x38] ss:$12 sps:$4 sm:$0xff]   ;;  %v2439_v26 = vld [vmem:[%s3485_s5 + $0x50] ss:$12 sps:$4 sm:$0xff]   ;;  %801 = vmatprep.mubr.bf16.mxu0 %v2813_v34  ;;  %s541_s26 = scalar_lea.vmem %s3493_s13, %s2165_s29 }
  0xd6   : > { %v544_v0 = vld [vmem:[%s536_s20 + $0x4] sm:$0x1]  ;;  %v543_v1 = vld [vmem:[%s536_s20] sm:$0xf]  ;;  %v2436_v24 = vld [vmem:[%s3485_s5 + $0x4c] ss:$12 sps:$4 sm:$0xff]   ;;  %2241 = vmatprep.mubr.msk.bf16.mxu1 %vm2814_vm1, %v2812_v7 }
  0xd7   : > { %v3126_v2 = vunpack.c.l.bf16 %v544_v0  ;;  %v3130_v4 = vunpack.c.l.bf16 %v543_v1  ;;  %772 = vmatpush1.bf16.msra.mxu0 %v2430_v19  ;;  %v2438_v25 = vld [vmem:[%s3485_s5 + $0x48] ss:$12 sps:$4 sm:$0xff]   ;;  %v2440_v27 = vld [vmem:[%s3485_s5 + $0x64] ss:$12 sps:$4 sm:$0xff]   ;;  %v2442_v28 = vld [vmem:[%s3485_s5 + $0x60] ss:$12 sps:$4 sm:$0xff]  }
  0xd8   : > { %2228 = vmatpush3.bf16.msra.mxu1 %v2431_v20  ;;  %773 = vmatprep.subr.bf16.mxu0 %v2432_v21  ;;  %v2443_v29 = vld [vmem:[%s3485_s5 + $0x68] ss:$12 sps:$4 sm:$0xff]   ;;  %v2446_v31 = vld [vmem:[%s3485_s5 + $0x78] ss:$12 sps:$4 sm:$0xff]   ;;  %v2447_v32 = vld [vmem:[%s3485_s5 + $0x80] ss:$12 sps:$4 sm:$0xff]  }
  0xd9   : > { %v552_v3 = vsel %vm551_vm0, %v3126_v2, 0.0  ;;  %2229 = vmatprep.subr.bf16.mxu1 %v2812_v7  ;;  %v2444_v30 = vld [vmem:[%s3485_s5 + $0x7c] ss:$12 sps:$4 sm:$0xff]   ;;  %v2448_v33 = vld [vmem:[%s3485_s5 + $0x94] ss:$12 sps:$4 sm:$0xff]   ;;  %v628_v59 = vsub.s32 0, %v3235_v58 }
  0xda   : > { %553 = vadd.xlane.f32.xlu0 %v552_v3  ;;  %v2450_v35 = vld [vmem:[%s3485_s5 + $0x90] ss:$12 sps:$4 sm:$0xff]   ;;  %v2451_v36 = vld [vmem:[%s3485_s5 + $0x98] ss:$12 sps:$4 sm:$0xff]   ;;  %v2454_v38 = vld [vmem:[%s3485_s5 + $0xa8] ss:$12 sps:$4 sm:$0xff]  }
  0xdb   : > { %774 = vmatpush1.bf16.msra.mxu0 %v2434_v22  ;;  %v2452_v37 = vld [vmem:[%s3485_s5 + $0xac] ss:$12 sps:$4 sm:$0xff]   ;;  %v2455_v39 = vld [vmem:[%s3485_s5 + $0xb0] ss:$12 sps:$4 sm:$0xff]   ;;  %v2083_v48 = vld [vmem:[#allocation2] ss:$0 sm:$0xff] }
  0xdc   : > { %2230 = vmatpush3.bf16.msra.mxu1 %v2435_v23  ;;  %775 = vmatprep.subr.bf16.mxu0 %v2436_v24  ;;  %v2084_v52 = vld [vmem:[#allocation4] ss:$0 sm:$0xff]  ;;  %v636_v60 = vsub.s32 2, %v3235_v58  ;;  %v624_v61 = vld [vmem:[#allocation9] sm:$0x7]  ;;  %v632_v62 = vsub.s32 1, %v3235_v58 }
  0xdd   : > { %2231 = vmatprep.subr.bf16.mxu1 %v2812_v7  ;;  %v629_v63 = vrot.slane %v624_v61, %v628_v59  ;;  %vm856_vm2 = vcmask 261120   ;;  %vm932_vm3 = vcmask 1043456   ;;  %vm933_vm4 = vcmask 1044480   ;;  %s2816_s16 = smov 96   ;;  %s2817_s14 = smov 64  }
  0xde   : > { %549 = vadd.xlane.f32.xlu0 %v3130_v4  ;;  %v637_v0 = vrot.slane %v624_v61, %v636_v60  ;;  %v633_v5 = vrot.slane %v624_v61, %v632_v62  ;;  %v2815_v23 = vmov 65535   ;;  %vm904_vm5 = vcmask 72704   ;;  %s2818_s25 = smov 32  }
  0xdf   : > { %776 = vmatpush1.bf16.msra.mxu0 %v2438_v25  ;;  %v934_v24 = vsel %vm932_vm3, 4294967295, %v2815_v23  ;;  %vm908_vm6 = vcmask 65536   ;;  %vm1378_vm7 = vcmask 523264   ;;  %vm1381_vm8 = vcmask 785408  }
  0xe0   : > { %2232 = vmatpush3.bf16.msra.mxu1 %v2439_v26  ;;  %777 = vmatprep.subr.bf16.mxu0 %v2440_v27  ;;  %v3248_v25 = vsel %vm933_vm4, %v934_v24, 0  ;;  %vm1919_vm9 = vsmask.f32 256 }
  0xe1   : > { %2233 = vmatprep.subr.bf16.mxu1 %v2812_v7  ;;  %vm1920_vm10 = vmand %vm551_vm0, %vm1919_vm9 }
  0xe3   : > { %778 = vmatpush1.bf16.msra.mxu0 %v2442_v28 }
  0xe4   : > { %2234 = vmatpush3.bf16.msra.mxu1 %v2443_v29  ;;  %779 = vmatprep.subr.bf16.mxu0 %v2444_v30 }
  0xe5   : > { %2235 = vmatprep.subr.bf16.mxu1 %v2812_v7 }
  0xe7   : > { %780 = vmatpush1.bf16.msra.mxu0 %v2446_v31 }
  0xe8   : > { %2236 = vmatpush3.bf16.msra.mxu1 %v2447_v32  ;;  %781 = vmatprep.subr.bf16.mxu0 %v2448_v33 }
  0xe9   : > { %2237 = vmatprep.subr.bf16.mxu1 %v2812_v7 }
  0xeb   : > { %782 = vmatpush1.bf16.msra.mxu0 %v2450_v35 }
  0xec   : > { %2238 = vmatpush3.bf16.msra.mxu1 %v2451_v36  ;;  %783 = vmatprep.subr.bf16.mxu0 %v2452_v37 }
  0xed   : > { %2239 = vmatprep.subr.bf16.mxu1 %v2812_v7 }
  0xef   : > { %784 = vmatpush1.bf16.msra.mxu0 %v2454_v38 }
  0xf0   : > { %2240 = vmatpush3.bf16.msra.mxu1 %v2455_v39  ;;  %2269 = vmatprep.subr.bf16.mxu0 %v2812_v7 }
  0xf1   : > { %2245 = vmatprep.subr.bf16.mxu1 %v2812_v7 }
 0x167   : > { %v554_v10 = vpop.xlane.xlu0 %553 }
 0x168   : > { %v557_v11 = vmul.f32 0.0078125, %v554_v10 }
 0x16a   : > { %v3148_v14 = vsub.f32 %v3126_v2, %v557_v11 }
 0x16b   : > { %v550_v12 = vpop.xlane.xlu0 %549 }
 0x16c   : > { %v556_v13 = vmul.f32 0.0078125, %v550_v12  ;;  %v561_v17 = vmul.f32 %v3148_v14, %v3148_v14 }
 0x16e   : > { %v3151_v15 = vsub.f32 %v3130_v4, %v556_v13  ;;  %v564_v18 = vsel %vm551_vm0, %v561_v17, 0.0 }
 0x170   : > { %v560_v16 = vmul.f32 %v3151_v15, %v3151_v15 }
 0x172   : > { %562 = vadd.xlane.f32.xlu1 %v560_v16 }
 0x176   : > { %565 = vadd.xlane.f32.xlu1 %v564_v18 }
 0x1ff   : > { %v563_v40 = vpop.xlane.xlu1 %562 }
 0x200   : > { %v567_v41 = vmul.f32 0.0078125, %v563_v40 }
 0x202   : > { %v569_v42 = vadd.f32 1e-05, %v567_v41 }
 0x203   : > { %v566_v43 = vpop.xlane.xlu1 %565 }
 0x204   : > { %2504 = vrsqrt.f32 %v569_v42  ;;  %v568_v44 = vmul.f32 0.0078125, %v566_v43 }
 0x206   : > { %v570_v45 = vadd.f32 1e-05, %v568_v44 }
 0x208   : > { %2506 = vrsqrt.f32 %v570_v45 }
 0x20e   : > { %v2505_v46 = vpop.eup %2504 }
 0x20f   : > { %v573_v47 = vmul.f32 %v2505_v46, %v3151_v15 }
 0x211   : > { %v581_v51 = vmul.f32 %v2083_v48, %v573_v47 }
 0x212   : > { %v2507_v49 = vpop.eup %2506 }
 0x213   : > { %v574_v50 = vmul.f32 %v2507_v49, %v3148_v14  ;;  %v589_v54 = vadd.f32 %v2084_v52, %v581_v51 }
 0x215   : > { %v582_v53 = vmul.f32 %v2083_v48, %v574_v50 }
 0x217   : > { %v590_v55 = vadd.f32 %v2084_v52, %v582_v53 }
 0x219   : > { %v591_v56 = vpack.c.bf16 %v590_v55, %v589_v54 }
 0x21b   : > { %802 = vmatmul.mubr.bf16.vlgmr.msra.gmra.mrb[0].mxu0 %v591_v56  ;;  %2242 = vmatmul.mubr.bf16.vlgmr.msra.gmra.mrb[0].mxu1 %v591_v56 }
 0x21c   : > { %2247 = vmatprep.mubr.msk.bf16.mxu1 %vm2814_vm1, %v2812_v7  ;;  %2271 = vmatprep.mubr.msk.bf16.mxu0 %vm2814_vm1, %v2812_v7 }
 0x2ee   : > { %v803_v1 = vpop.f32.mrb[0].mxu0  ;;  %v846_v3 = vpop.f32.mrb[0].mxu1 }
 0x2ef   : > { %v805_v6 = vpop.f32.mrb[1].mxu0  ;;  %v2243_v8 = vpop.f32.mrb[1].mxu1  ;;  %v804_v11 = vadd.f32 %v803_v1, %v629_v63  ;;  %v847_v12 = vadd.f32 %v846_v3, %v637_v0 }
 0x2f0   : > { %v807_v9 = vpop.f32.mrb[2].mxu0  ;;  %v849_v10 = vpop.f32.mrb[2].mxu1  ;;  %v806_v17 = vadd.f32 %v805_v6, %v633_v5 }
 0x2f1   : > { %v808_v13 = vadd.f32 %v807_v9, %v629_v63  ;;  %v850_v14 = vadd.f32 %v849_v10, %v637_v0  ;;  %v809_v15 = vpop.f32.mrb[3].mxu0  ;;  %v2244_v16 = vpop.f32.mrb[3].mxu1 }
 0x2f2   : > { %v810_v18 = vadd.f32 %v809_v15, %v633_v5 }
 0x2f3   : > { %v853_v19 = vpack.c.bf16 %v808_v13, %v804_v11  ;;  %v3244_v20 = vpack.c.bf16 %v850_v14, %v847_v12 }
 0x2f4   : > { %v854_v21 = vpack.c.bf16 %v810_v18, %v806_v17 }
 0x2f5   : > { %v937_v26 = vand.u32 %v3248_v25, %v3244_v20 }
 0x2f6   : > { %v861_v22 = vsel %vm856_vm2, %v854_v21, 0 }
 0x2f7   : > { %2246 = vmatpush3.bf16.xpose.msra.mxu1 %v861_v22 }
 0x2f8   : > { %2251 = vmatprep.subr.bf16.mxu1 %v2812_v7 }
 0x2fe   : > { %2248 = vmatmul.mubr.msk.bf16.vlgmr.msra.gmra.mrb[4].mxu1 %vm856_vm2, %v853_v19 }
 0x2ff   : > { %2252 = vmatpush3.bf16.msra.mxu1 %v937_v26  ;;  %2253 = vmatprep.mubr.msk.bf16.mxu1 %vm2814_vm1, %v2812_v7 }
 0x300   : > { %2257 = vmatprep.subr.bf16.mxu1 %v2812_v7 }
 0x3d1   : > { %v897_v27 = vpop.f32.mrb[4].mxu1 }
 0x3d2   : > { %v2249_v28 = vpop.f32.mrb[5].mxu1  ;;  %v905_v29 = vsel %vm904_vm5, %v897_v27, -inf }
 0x3d3   : > { %906 = vmax.xlane.f32.xlu0 %v905_v29  ;;  %v900_v30 = vpop.f32.mrb[6].mxu1 }
 0x3d4   : > { %v2250_v31 = vpop.f32.mrb[7].mxu1  ;;  %v909_v32 = vsel %vm908_vm6, %v900_v30, -inf }
 0x3d5   : > { %910 = vmax.xlane.f32.xlu1 %v909_v32 }
 0x460   : > { %v907_v33 = vpop.xlane.xlu0 %906 }
 0x461   : > { %v912_v35 = vsub.f32 %v897_v27, %v907_v33 }
 0x462   : > { %v911_v36 = vpop.xlane.xlu1 %910 }
 0x463   : > { %v914_v37 = vmul.f32 1.442695, %v912_v35  ;;  %v913_v38 = vsub.f32 %v900_v30, %v911_v36 }
 0x465   : > { %2508 = vpow2.f32 %v914_v37  ;;  %v916_v39 = vmul.f32 1.442695, %v913_v38 }
 0x467   : > { %2510 = vpow2.f32 %v916_v39 }
 0x46f   : > { %v2509_v40 = vpop.eup %2508 }
 0x470   : > { %v918_v41 = vsel %vm904_vm5, %v2509_v40, 0.0 }
 0x471   : > { %v2511_v42 = vpop.eup %2510  ;;  %919 = vadd.xlane.f32.xlu0 %v918_v41 }
 0x472   : > { %v921_v43 = vsel %vm908_vm6, %v2511_v42, 0.0 }
 0x473   : > { %922 = vadd.xlane.f32.xlu1 %v921_v43 }
 0x484   : > { %981 = vrot.lane.b32.xlu1 %v853_v19, %s2816_s16 }
 0x487   : > { %984 = vrot.lane.b32.xlu0 %v854_v21, %s2816_s16 }
 0x488   : > { %1108 = vrot.lane.b32.xlu1 %v854_v21, %s2817_s14 }
 0x48b   : > { %1231 = vrot.lane.b32.xlu0 %v854_v21, %s2818_s25 }
 0x48c   : > { %1106 = vrot.lane.b32.xlu1 %v853_v19, %s2817_s14 }
 0x490   : > { %1229 = vrot.lane.b32.xlu1 %v853_v19, %s2818_s25 }
 0x4fe   : > { %v920_v44 = vpop.xlane.xlu0 %919 }
 0x4ff   : > { %2512 = vrcp.f32 %v920_v44 }
 0x500   : > { %v923_v45 = vpop.xlane.xlu1 %922 }
 0x501   : > { %2514 = vrcp.f32 %v923_v45 }
 0x502   : > { %v985_v47 = vpop.permute.xlu0 %984 }
 0x503   : > { %v990_v56 = vsel %vm856_vm2, %v985_v47, 0 }
 0x504   : > { %v982_v46 = vpop.permute.xlu1 %981 }
 0x506   : > { %v1232_v54 = vpop.permute.xlu0 %1231 }
 0x507   : > { %v1237_v60 = vsel %vm856_vm2, %v1232_v54, 0 }
 0x508   : > { %v1109_v48 = vpop.permute.xlu1 %1108 }
 0x509   : > { %v2513_v49 = vpop.eup %2512  ;;  %v1114_v50 = vsel %vm856_vm2, %v1109_v48, 0 }
 0x50a   : > { %2270 = vmatpush3.bf16.xpose.msra.mxu0 %v1114_v50  ;;  %v926_v52 = vmul.f32 %v2513_v49, %v2509_v40 }
 0x50b   : > { %v2515_v51 = vpop.eup %2514  ;;  %2281 = vmatprep.subr.bf16.mxu0 %v2812_v7 }
 0x50c   : > { %v927_v53 = vmul.f32 %v2515_v51, %v2511_v42  ;;  %v1107_v57 = vpop.permute.xlu1 %1106 }
 0x50e   : > { %v928_v55 = vpack.c.bf16 %v927_v53, %v926_v52 }
 0x510   : > { %2254 = vmatmul.mubr.msk.bf16.vlgmr.msra.gmra.mrb[8].mxu1 %vm904_vm5, %v928_v55  ;;  %v1230_v61 = vpop.permute.xlu1 %1229 }
 0x511   : > { %2258 = vmatpush3.bf16.xpose.msra.mxu1 %v990_v56  ;;  %2272 = vmatmul.mubr.msk.bf16.vlgmr.msra.gmra.mrb[4].mxu0 %vm856_vm2, %v1107_v57 }
 0x512   : > { %2282 = vmatpush3.bf16.xpose.msra.mxu0 %v1237_v60  ;;  %2259 = vmatprep.mubr.msk.bf16.mxu1 %vm2814_vm1, %v2812_v7 }
 0x513   : > { %2283 = vmatprep.mubr.msk.bf16.mxu0 %vm2814_vm1, %v2812_v7  ;;  %2263 = vmatprep.subr.bf16.mxu1 %v2812_v7 }
 0x514   : > { %2293 = vmatprep.subr.bf16.mxu0 %v2812_v7 }
 0x518   : > { %2260 = vmatmul.mubr.msk.bf16.vlgmr.msra.gmra.mrb[12].mxu1 %vm856_vm2, %v982_v46 }
 0x519   : > { %2284 = vmatmul.mubr.msk.bf16.vlgmr.msra.gmra.mrb[8].mxu0 %vm856_vm2, %v1230_v61  ;;  %2265 = vmatprep.mubr.msk.bf16.mxu1 %vm2814_vm1, %v2812_v7 }
 0x51a   : > { %2309 = vmatprep.mubr.msk.bf16.mxu0 %vm2814_vm1, %v2812_v7 }
 0x5e3   : > { %v3284_v63 = vpop.f32.mrb[8].mxu1 }
 0x5e4   : > { %v2255_v0 = vpop.f32.mrb[9].mxu1  ;;  %v1150_v1 = vpop.f32.mrb[4].mxu0 }
 0x5e5   : > { %v3286_v3 = vpop.f32.mrb[10].mxu1  ;;  %v2273_v5 = vpop.f32.mrb[5].mxu0  ;;  %v1157_v21 = vsel %vm904_vm5, %v1150_v1, -inf }
 0x5e6   : > { %v2256_v6 = vpop.f32.mrb[11].mxu1  ;;  %v1153_v8 = vpop.f32.mrb[6].mxu0 }
 0x5e7   : > { %v2274_v9 = vpop.f32.mrb[7].mxu0  ;;  %v1160_v23 = vsel %vm908_vm6, %v1153_v8, -inf }
 0x5eb   : > { %v1026_v10 = vpop.f32.mrb[12].mxu1 }
 0x5ec   : > { %v2261_v11 = vpop.f32.mrb[13].mxu1  ;;  %v1273_v12 = vpop.f32.mrb[8].mxu0  ;;  %v1033_v13 = vsel %vm904_vm5, %v1026_v10, -inf }
 0x5ed   : > { %v2285_v14 = vpop.f32.mrb[9].mxu0  ;;  %1034 = vmax.xlane.f32.xlu0 %v1033_v13  ;;  %v1029_v15 = vpop.f32.mrb[14].mxu1  ;;  %v1280_v24 = vsel %vm904_vm5, %v1273_v12, -inf }
 0x5ee   : > { %v2262_v16 = vpop.f32.mrb[15].mxu1  ;;  %v1276_v17 = vpop.f32.mrb[10].mxu0  ;;  %v1036_v18 = vsel %vm908_vm6, %v1029_v15, -inf }
 0x5ef   : > { %v2286_v19 = vpop.f32.mrb[11].mxu0  ;;  %1037 = vmax.xlane.f32.xlu1 %v1036_v18  ;;  %v1283_v22 = vsel %vm908_vm6, %v1276_v17, -inf }
 0x5f1   : > { %1158 = vmax.xlane.f32.xlu0 %v1157_v21 }
 0x5f3   : > { %1284 = vmax.xlane.f32.xlu1 %v1283_v22 }
 0x5f5   : > { %1161 = vmax.xlane.f32.xlu0 %v1160_v23 }
 0x5f9   : > { %1281 = vmax.xlane.f32.xlu0 %v1280_v24 }
 0x67a   : > { %v1035_v26 = vpop.xlane.xlu0 %1034 }
 0x67b   : > { %v1039_v36 = vsub.f32 %v1026_v10, %v1035_v26 }
 0x67c   : > { %v1038_v27 = vpop.xlane.xlu1 %1037 }
 0x67d   : > { %v1040_v37 = vsub.f32 %v1029_v15, %v1038_v27  ;;  %v1041_v42 = vmul.f32 1.442695, %v1039_v36 }
 0x67e   : > { %v1159_v28 = vpop.xlane.xlu0 %1158 }
 0x67f   : > { %v1163_v29 = vsub.f32 %v1150_v1, %v1159_v28  ;;  %v1043_v43 = vmul.f32 1.442695, %v1040_v37 }
 0x680   : > { %v1285_v30 = vpop.xlane.xlu1 %1284 }
 0x681   : > { %v1165_v31 = vmul.f32 1.442695, %v1163_v29  ;;  %v1287_v32 = vsub.f32 %v1276_v17, %v1285_v30  ;;  %v2456_v29 = vld [vmem:[%s3487_s7] sm:$0xff]   ;;  %v2458_v30 = vld [vmem:[%s3487_s7 + $0x10] sm:$0xff]  }
 0x682   : > { %v1162_v33 = vpop.xlane.xlu0 %1161  ;;  %2294 = vmatpush3.bf16.msra.mxu0 %v2456_v29 }
 0x683   : > { %2516 = vpow2.f32 %v1165_v31  ;;  %v1164_v35 = vsub.f32 %v1153_v8, %v1162_v33  ;;  %v1290_v38 = vmul.f32 1.442695, %v1287_v32  ;;  %2295 = vmatprep.subr.bf16.mxu0 %v2812_v7  ;;  %v2460_v31 = vld [vmem:[%s3487_s7 + $0x20] sm:$0xff]  }
 0x685   : > { %v1167_v39 = vmul.f32 1.442695, %v1164_v35  ;;  %v2461_v35 = vld [vmem:[%s3487_s7 + $0x28] sm:$0xff]  }
 0x686   : > { %v1282_v40 = vpop.xlane.xlu0 %1281 }
 0x687   : > { %2518 = vpow2.f32 %v1167_v39  ;;  %v1286_v41 = vsub.f32 %v1273_v12, %v1282_v40  ;;  %v2462_v39 = vld [vmem:[%s3487_s7 + $0x30] sm:$0xff]  }
 0x688   : > { %2520 = vpow2.f32 %v1290_v38 }
 0x689   : > { %v1288_v44 = vmul.f32 1.442695, %v1286_v41 }
 0x68b   : > { %2522 = vpow2.f32 %v1288_v44 }
 0x68c   : > { %2524 = vpow2.f32 %v1041_v42  ;;  %v2463_v42 = vld [vmem:[%s3487_s7 + $0x38] sm:$0xff]  }
 0x68d   : > { %v2517_v45 = vpop.eup %2516  ;;  %2526 = vpow2.f32 %v1043_v43 }
 0x68e   : > { %v1169_v46 = vsel %vm904_vm5, %v2517_v45, 0.0 }
 0x68f   : > { %1170 = vadd.xlane.f32.xlu0 %v1169_v46 }
 0x691   : > { %v2519_v47 = vpop.eup %2518 }
 0x692   : > { %v1172_v48 = vsel %vm908_vm6, %v2519_v47, 0.0  ;;  %v2521_v49 = vpop.eup %2520 }
 0x693   : > { %1173 = vadd.xlane.f32.xlu1 %v1172_v48  ;;  %v1295_v53 = vsel %vm908_vm6, %v2521_v49, 0.0 }
 0x695   : > { %v2523_v50 = vpop.eup %2522 }
 0x696   : > { %v2525_v51 = vpop.eup %2524  ;;  %v1292_v52 = vsel %vm904_vm5, %v2523_v50, 0.0 }
 0x697   : > { %v2527_v54 = vpop.eup %2526  ;;  %1293 = vadd.xlane.f32.xlu0 %v1292_v52  ;;  %1296 = vadd.xlane.f32.xlu1 %v1295_v53  ;;  %v1045_v55 = vsel %vm904_vm5, %v2525_v51, 0.0 }
 0x698   : > { %v1048_v56 = vsel %vm908_vm6, %v2527_v54, 0.0 }
 0x69b   : > { %1046 = vadd.xlane.f32.xlu0 %v1045_v55  ;;  %1049 = vadd.xlane.f32.xlu1 %v1048_v56 }
 0x6ac   : > { %1180 = vrot.lane.b32.xlu1 %v3244_v20, %s2817_s14 }
 0x6b0   : > { %1303 = vrot.lane.b32.xlu1 %v3244_v20, %s2818_s25 }
 0x6b1   : > { %1057 = vrot.lane.b32.xlu0 %v3244_v20, %s2816_s16 }
 0x71c   : > { %v1171_v57 = vpop.xlane.xlu0 %1170 }
 0x720   : > { %v1174_v60 = vpop.xlane.xlu1 %1173 }
 0x724   : > { %v1294_v61 = vpop.xlane.xlu0 %1293  ;;  %v1297_v0 = vpop.xlane.xlu1 %1296 }
 0x728   : > { %v1047_v1 = vpop.xlane.xlu0 %1046  ;;  %v1050_v5 = vpop.xlane.xlu1 %1049 }
 0x729   : > { %2528 = vrcp.f32 %v1047_v1 }
 0x72a   : > { %2530 = vrcp.f32 %v1050_v5 }
 0x72b   : > { %2532 = vrcp.f32 %v1174_v60 }
 0x72c   : > { %v1058_v6 = vpop.permute.xlu0 %1057  ;;  %2534 = vrcp.f32 %v1171_v57  ;;  %v1181_v12 = vpop.permute.xlu1 %1180 }
 0x72d   : > { %v1063_v8 = vand.u32 %v1058_v6, %v3248_v25  ;;  %2536 = vrcp.f32 %v1294_v61  ;;  %v1186_v15 = vand.u32 %v1181_v12, %v3248_v25 }
 0x72e   : > { %2538 = vrcp.f32 %v1297_v0 }
 0x72f   : > { %2264 = vmatpush3.bf16.msra.mxu1 %v1063_v8 }
 0x730   : > { %2275 = vmatprep.subr.bf16.mxu1 %v2812_v7  ;;  %v1304_v19 = vpop.permute.xlu1 %1303 }
 0x731   : > { %v1309_v24 = vand.u32 %v1304_v19, %v3248_v25  ;;  %v2457_v25 = vld [vmem:[%s3487_s7 + $0x8] sm:$0xff]  }
 0x732   : > { %2296 = vmatpush3.bf16.msra.mxu0 %v2457_v25  ;;  %v2472_v25 = vld [vmem:[%s3489_s9 + $0x24] ss:$8 sps:$4 sm:$0xff]  }
 0x733   : > { %v2529_v9 = vpop.eup %2528  ;;  %2297 = vmatprep.subr.bf16.mxu0 %v2812_v7 }
 0x734   : > { %v2531_v10 = vpop.eup %2530  ;;  %v1053_v11 = vmul.f32 %v2529_v9, %v2525_v51 }
 0x735   : > { %v1054_v20 = vmul.f32 %v2531_v10, %v2527_v54  ;;  %v2533_v14 = vpop.eup %2532  ;;  %v2117_v10 = vld [vmem:[#allocation10] ss:$0 sm:$0xff] }
 0x736   : > { %v2535_v16 = vpop.eup %2534  ;;  %v1178_v17 = vmul.f32 %v2533_v14, %v2519_v47  ;;  %2298 = vmatpush3.bf16.msra.mxu0 %v2458_v30  ;;  %v2470_v30 = vld [vmem:[%s3489_s9 + $0x20] ss:$8 sps:$4 sm:$0xff]  }
 0x737   : > { %v1055_v13 = vpack.c.bf16 %v1054_v20, %v1053_v11  ;;  %v1177_v18 = vmul.f32 %v2535_v16, %v2517_v45  ;;  %v2537_v21 = vpop.eup %2536  ;;  %2299 = vmatprep.subr.bf16.mxu0 %v2812_v7 }
 0x738   : > { %v2539_v23 = vpop.eup %2538  ;;  %v1300_v26 = vmul.f32 %v2537_v21, %v2523_v50 }
 0x739   : > { %2266 = vmatmul.mubr.msk.bf16.vlgmr.msra.gmra.mrb[16].mxu1 %vm904_vm5, %v1055_v13  ;;  %v1179_v22 = vpack.c.bf16 %v1178_v17, %v1177_v18  ;;  %v1301_v27 = vmul.f32 %v2539_v23, %v2521_v49  ;;  %v2464_v17 = vld [vmem:[%s3489_s9] ss:$8 sps:$4 sm:$0xff]   ;;  %v2469_v18 = vld [vmem:[%s3489_s9 + $0x14] ss:$8 sps:$4 sm:$0xff]  }
 0x73a   : > { %2276 = vmatpush3.bf16.msra.mxu1 %v1186_v15  ;;  %2277 = vmatprep.mubr.msk.bf16.mxu1 %vm2814_vm1, %v2812_v7 }
 0x73b   : > { %2287 = vmatprep.subr.bf16.mxu1 %v2812_v7  ;;  %v1302_v28 = vpack.c.bf16 %v1301_v27, %v1300_v26 }
 0x741   : > { %2278 = vmatmul.mubr.msk.bf16.vlgmr.msra.gmra.mrb[20].mxu1 %vm904_vm5, %v1179_v22 }
 0x742   : > { %2288 = vmatpush3.bf16.msra.mxu1 %v1309_v24  ;;  %2289 = vmatprep.mubr.msk.bf16.mxu1 %vm2814_vm1, %v2812_v7 }
 0x749   : > { %2290 = vmatmul.mubr.msk.bf16.vlgmr.msra.gmra.mrb[24].mxu1 %vm904_vm5, %v1302_v28 }
 0x74a   : > { %1682 = vmatprep.mubr.bf16.mxu1 %v2813_v34  ;;  %v2459_v34 = vld [vmem:[%s3487_s7 + $0x18] sm:$0xff]  }
 0x74b   : > { %2300 = vmatpush3.bf16.msra.mxu0 %v2459_v34  ;;  %v2475_v34 = vld [vmem:[%s3489_s9 + $0x34] ss:$8 sps:$4 sm:$0xff]  }
 0x74c   : > { %2301 = vmatprep.subr.bf16.mxu0 %v2812_v7 }
 0x74f   : > { %2302 = vmatpush3.bf16.msra.mxu0 %v2460_v31  ;;  %v2473_v31 = vld [vmem:[%s3489_s9 + $0x30] ss:$8 sps:$4 sm:$0xff]  }
 0x750   : > { %2303 = vmatprep.subr.bf16.mxu0 %v2812_v7 }
 0x753   : > { %2304 = vmatpush3.bf16.msra.mxu0 %v2461_v35  ;;  %v2481_v35 = vld [vmem:[%s3489_s9 + $0x54] ss:$8 sps:$4 sm:$0xff]  }
 0x754   : > { %2305 = vmatprep.subr.bf16.mxu0 %v2812_v7 }
 0x757   : > { %2306 = vmatpush3.bf16.msra.mxu0 %v2462_v39  ;;  %v2487_v39 = vld [vmem:[%s3489_s9 + $0x74] ss:$8 sps:$4 sm:$0xff]  }
 0x758   : > { %2307 = vmatprep.subr.bf16.mxu0 %v2812_v7 }
 0x75b   : > { %2308 = vmatpush3.bf16.msra.mxu0 %v2463_v42 }
 0x80c   : > { %v1099_v32 = vpop.f32.mrb[16].mxu1 }
 0x80d   : > { %v2267_v33 = vpop.f32.mrb[17].mxu1 }
 0x80e   : > { %v1102_v36 = vpop.f32.mrb[18].mxu1  ;;  %v2476_v33 = vld [vmem:[%s3489_s9 + $0x40] ss:$8 sps:$4 sm:$0xff]  }
 0x80f   : > { %v2409_v37 = vpack.i.bf16 %v1102_v36, %v1099_v32  ;;  %v2268_v38 = vpop.f32.mrb[19].mxu1  ;;  %v2478_v32 = vld [vmem:[%s3489_s9 + $0x44] ss:$8 sps:$4 sm:$0xff]   ;;  %v2479_v36 = vld [vmem:[%s3489_s9 + $0x50] ss:$8 sps:$4 sm:$0xff]  }
 0x810   : > { %v2482_v38 = vld [vmem:[%s3489_s9 + $0x60] ss:$8 sps:$4 sm:$0xff]  }
 0x811   : > { %2410 = vrot.lane.b32.xlu1 %v2409_v37, %s2818_s25  ;;  %v2484_v37 = vld [vmem:[%s3489_s9 + $0x64] ss:$8 sps:$4 sm:$0xff]  }
 0x814   : > { %v1222_v40 = vpop.f32.mrb[20].mxu1 }
 0x815   : > { %v2279_v41 = vpop.f32.mrb[21].mxu1 }
 0x816   : > { %v1225_v43 = vpop.f32.mrb[22].mxu1 }
 0x817   : > { %v2414_v44 = vpack.i.bf16 %v1225_v43, %v1222_v40  ;;  %v2280_v45 = vpop.f32.mrb[23].mxu1  ;;  %v2485_v40 = vld [vmem:[%s3489_s9 + $0x70] ss:$8 sps:$4 sm:$0xff]  }
 0x819   : > { %2415 = vrot.lane.b32.xlu0 %v2414_v44, %s2817_s14 }
 0x81c   : > { %v1345_v46 = vpop.f32.mrb[24].mxu1 }
 0x81d   : > { %v2291_v47 = vpop.f32.mrb[25].mxu1 }
 0x81e   : > { %v1348_v48 = vpop.f32.mrb[26].mxu1 }
 0x81f   : > { %v2419_v49 = vpack.i.bf16 %v1348_v48, %v1345_v46  ;;  %v2292_v50 = vpop.f32.mrb[27].mxu1 }
 0x821   : > { %2420 = vrot.lane.b32.xlu1 %v2419_v49, %s2816_s16  ;;  %v2126_v49 = vld [vmem:[#allocation6] ss:$0 sm:$0xff] }
 0x883   : > { %v2411_v51 = vpop.permute.xlu1 %2410 }
 0x884   : > { %v2413_v52 = vunpack.i.h.bf16 %v2411_v51  ;;  %v2412_v53 = vunpack.i.l.bf16 %v2411_v51 }
 0x886   : > { %v1377_v57 = vsel %vm856_vm2, %v3286_v3, %v2413_v52  ;;  %v1376_v60 = vsel %vm856_vm2, %v3284_v63, %v2412_v53  ;;  %v2127_v52 = vld [vmem:[#allocation7] ss:$0 sm:$0xff] }
 0x88b   : > { %v2416_v7 = vpop.permute.xlu0 %2415 }
 0x88c   : > { %v2418_v54 = vunpack.i.h.bf16 %v2416_v7  ;;  %v2417_v55 = vunpack.i.l.bf16 %v2416_v7 }
 0x88e   : > { %v1380_v1 = vsel %vm1378_vm7, %v1377_v57, %v2418_v54  ;;  %v1379_v5 = vsel %vm1378_vm7, %v1376_v60, %v2417_v55  ;;  %v2488_v57 = vld [vmem:[%s3491_s11 + $0x40] sm:$0xff]  }
 0x88f   : > { %v2489_v60 = vld [vmem:[%s3491_s11] sm:$0xff]   ;;  %2203 = vmatprep.subr.bf16.mxu0 %v2488_v57 }
 0x893   : > { %v2421_v56 = vpop.permute.xlu1 %2420 }
 0x894   : > { %v2423_v61 = vunpack.i.h.bf16 %v2421_v56  ;;  %v2422_v0 = vunpack.i.l.bf16 %v2421_v56 }
 0x896   : > { %v1383_v6 = vsel %vm1381_vm8, %v1380_v1, %v2423_v61  ;;  %v1382_v8 = vsel %vm1381_vm8, %v1379_v5, %v2422_v0  ;;  %v2490_v61 = vld [vmem:[%s3491_s11 + $0x48] sm:$0xff]   ;;  %v2492_v1 = vld [vmem:[%s3491_s11 + $0x50] sm:$0xff]  }
 0x897   : > { %v1384_v9 = vpack.c.bf16 %v1383_v6, %v1382_v8  ;;  %v2491_v0 = vld [vmem:[%s3491_s11 + $0x8] sm:$0xff]   ;;  %v2493_v5 = vld [vmem:[%s3491_s11 + $0x10] sm:$0xff]   ;;  %v2494_v6 = vld [vmem:[%s3491_s11 + $0x58] sm:$0xff]  }
 0x898   : > { %v2495_v8 = vld [vmem:[%s3491_s11 + $0x18] sm:$0xff]  }
 0x899   : > { %2310 = vmatmul.mubr.bf16.vlgmr.msra.gmra.mrb[12].mxu0 %v1384_v9  ;;  %v2496_v9 = vld [vmem:[%s3491_s11 + $0x60] sm:$0xff]  }
 0x89a   : > { %2204 = vmatpush3.bf16.msra.mxu0 %v2489_v60 }
 0x89b   : > { %2205 = vmatprep.subr.bf16.mxu0 %v2490_v61 }
 0x89e   : > { %2206 = vmatpush3.bf16.msra.mxu0 %v2491_v0 }
 0x89f   : > { %2207 = vmatprep.subr.bf16.mxu0 %v2492_v1  ;;  %v2144_v1 = vld [vmem:[#allocation13] ss:$0 sm:$0xff] }
 0x8a2   : > { %2208 = vmatpush3.bf16.msra.mxu0 %v2493_v5 }
 0x8a3   : > { %2209 = vmatprep.subr.bf16.mxu0 %v2494_v6 }
 0x8a6   : > { %2210 = vmatpush3.bf16.msra.mxu0 %v2495_v8 }
 0x8a7   : > { %2211 = vmatprep.subr.bf16.mxu0 %v2496_v9 }
 0x96c   : > { %v1490_v11 = vpop.f32.mrb[12].mxu0 }
 0x96d   : > { %v1491_v20 = vadd.f32 %v2117_v10, %v1490_v11  ;;  %v2311_v12 = vpop.f32.mrb[13].mxu0  ;;  %v2498_v11 = vld [vmem:[%s3491_s11 + $0x68] sm:$0xff]  }
 0x96e   : > { %v1493_v13 = vpop.f32.mrb[14].mxu0  ;;  %v2500_v12 = vld [vmem:[%s3491_s11 + $0x70] sm:$0xff]  }
 0x96f   : > { %v3358_v14 = vadd.f32 %v1491_v20, %v3130_v4  ;;  %v1494_v3 = vadd.f32 %v2117_v10, %v1493_v13  ;;  %v2312_v15 = vpop.f32.mrb[15].mxu0  ;;  %v2466_v4 = vld [vmem:[%s3489_s9 + $0x4] ss:$8 sps:$4 sm:$0xff]   ;;  %v2501_v13 = vld [vmem:[%s3491_s11 + $0x30] sm:$0xff]  }
 0x970   : > { %1650 = vmatprep.subr.bf16.mxu1 %v2466_v4  ;;  %v2497_v10 = vld [vmem:[%s3491_s11 + $0x20] sm:$0xff]   ;;  %v2499_v20 = vld [vmem:[%s3491_s11 + $0x28] sm:$0xff]   ;;  %v2503_v15 = vld [vmem:[%s3491_s11 + $0x38] sm:$0xff]  }
 0x971   : > { %v3361_v63 = vadd.f32 %v1494_v3, %v3126_v2  ;;  %1501 = vadd.xlane.f32.xlu1 %v3358_v14  ;;  %1651 = vmatpush1.bf16.msra.mxu1 %v2464_v17  ;;  %v2467_v2 = vld [vmem:[%s3489_s9 + $0x10] ss:$8 sps:$4 sm:$0xff]  }
 0x972   : > { %1652 = vmatprep.subr.bf16.mxu1 %v2469_v18  ;;  %2212 = vmatpush3.bf16.msra.mxu0 %v2497_v10  ;;  %v2502_v3 = vld [vmem:[%s3491_s11 + $0x78] sm:$0xff]  }
 0x973   : > { %v1503_v16 = vsel %vm551_vm0, %v3361_v63, 0.0  ;;  %2213 = vmatprep.subr.bf16.mxu0 %v2498_v11 }
 0x974   : > { %1504 = vadd.xlane.f32.xlu0 %v1503_v16  ;;  %v1558_v16 = vld [vmem:[#allocation12] sm:$0x3] }
 0x975   : > { %1653 = vmatpush1.bf16.msra.mxu1 %v2467_v2  ;;  %v1563_v17 = vrot.slane %v1558_v16, %v628_v59  ;;  %v1567_v4 = vrot.slane %v1558_v16, %v632_v62 }
 0x976   : > { %1654 = vmatprep.subr.bf16.mxu1 %v2472_v25  ;;  %2214 = vmatpush3.bf16.msra.mxu0 %v2499_v20 }
 0x977   : > { %2215 = vmatprep.subr.bf16.mxu0 %v2500_v12 }
 0x979   : > { %1655 = vmatpush1.bf16.msra.mxu1 %v2470_v30 }
 0x97a   : > { %1656 = vmatprep.subr.bf16.mxu1 %v2475_v34  ;;  %2216 = vmatpush3.bf16.msra.mxu0 %v2501_v13 }
 0x97b   : > { %2217 = vmatprep.subr.bf16.mxu0 %v2502_v3 }
 0x97d   : > { %1657 = vmatpush1.bf16.msra.mxu1 %v2473_v31 }
 0x97e   : > { %1658 = vmatprep.subr.bf16.mxu1 %v2478_v32  ;;  %2218 = vmatpush3.bf16.msra.mxu0 %v2503_v15  ;;  %v1921_v15 = vld [vmem:[%s541_s26 + $0x4] sm:$0x1] }
 0x981   : > { %1659 = vmatpush1.bf16.msra.mxu1 %v2476_v33 }
 0x982   : > { %1660 = vmatprep.subr.bf16.mxu1 %v2481_v35 }
 0x985   : > { %1661 = vmatpush1.bf16.msra.mxu1 %v2479_v36 }
 0x986   : > { %1662 = vmatprep.subr.bf16.mxu1 %v2484_v37 }
 0x989   : > { %1663 = vmatpush1.bf16.msra.mxu1 %v2482_v38 }
 0x98a   : > { %1664 = vmatprep.subr.bf16.mxu1 %v2487_v39 }
 0x98d   : > { %1665 = vmatpush1.bf16.msra.mxu1 %v2485_v40 }
 0x9fe   : > { %v1502_v19 = vpop.xlane.xlu1 %1501 }
 0x9ff   : > { %v1506_v21 = vmul.f32 0.0078125, %v1502_v19 }
 0xa01   : > { %v1508_v22 = vsub.f32 %v3358_v14, %v1506_v21  ;;  %v1505_v23 = vpop.xlane.xlu0 %1504 }
 0xa02   : > { %v1507_v24 = vmul.f32 0.0078125, %v1505_v23 }
 0xa03   : > { %v1510_v26 = vmul.f32 %v1508_v22, %v1508_v22 }
 0xa04   : > { %v1509_v27 = vsub.f32 %v3361_v63, %v1507_v24 }
 0xa05   : > { %1512 = vadd.xlane.f32.xlu0 %v1510_v26 }
 0xa06   : > { %v1511_v28 = vmul.f32 %v1509_v27, %v1509_v27 }
 0xa08   : > { %v1514_v29 = vsel %vm551_vm0, %v1511_v28, 0.0 }
 0xa09   : > { %1515 = vadd.xlane.f32.xlu0 %v1514_v29 }
 0xa92   : > { %v1513_v41 = vpop.xlane.xlu0 %1512 }
 0xa93   : > { %v1517_v42 = vmul.f32 0.0078125, %v1513_v41 }
 0xa95   : > { %v1519_v43 = vadd.f32 1e-05, %v1517_v42 }
 0xa96   : > { %v1516_v44 = vpop.xlane.xlu0 %1515 }
 0xa97   : > { %2540 = vrsqrt.f32 %v1519_v43  ;;  %v1518_v45 = vmul.f32 0.0078125, %v1516_v44 }
 0xa99   : > { %v1520_v46 = vadd.f32 1e-05, %v1518_v45 }
 0xa9b   : > { %2542 = vrsqrt.f32 %v1520_v46 }
 0xaa1   : > { %v2541_v47 = vpop.eup %2540 }
 0xaa2   : > { %v1523_v48 = vmul.f32 %v2541_v47, %v1508_v22 }
 0xaa4   : > { %v1531_v7 = vmul.f32 %v2126_v49, %v1523_v48 }
 0xaa5   : > { %v2543_v50 = vpop.eup %2542 }
 0xaa6   : > { %v1524_v51 = vmul.f32 %v2543_v50, %v1509_v27  ;;  %v1539_v54 = vadd.f32 %v2127_v52, %v1531_v7 }
 0xaa8   : > { %v1532_v53 = vmul.f32 %v2126_v49, %v1524_v51 }
 0xaaa   : > { %v1540_v55 = vadd.f32 %v2127_v52, %v1532_v53 }
 0xaac   : > { %v1541_v56 = vpack.c.bf16 %v1540_v55, %v1539_v54 }
 0xaae   : > { %1683 = vmatmul.mubr.bf16.vlgmr.msra.gmra.mrb[28].mxu1 %v1541_v56 }
 0xb81   : > { %v1684_v18 = vpop.f32.mrb[28].mxu1 }
 0xb82   : > { %v1685_v2 = vadd.f32 %v1684_v18, %v1563_v17  ;;  %v1686_v19 = vpop.f32.mrb[29].mxu1 }
 0xb83   : > { %v1687_v21 = vadd.f32 %v1686_v19, %v1567_v4  ;;  %v1688_v22 = vpop.f32.mrb[30].mxu1 }
 0xb84   : > { %v1697_v23 = vmul.f32 0.044715, %v1685_v2  ;;  %v1689_v24 = vadd.f32 %v1688_v22, %v1563_v17  ;;  %v1690_v26 = vpop.f32.mrb[31].mxu1  ;;  %v1693_v49 = vmul.f32 0.5, %v1685_v2 }
 0xb85   : > { %v1698_v27 = vmul.f32 0.044715, %v1687_v21  ;;  %v1691_v28 = vadd.f32 %v1690_v26, %v1567_v4  ;;  %v1694_v7 = vmul.f32 0.5, %v1687_v21 }
 0xb86   : > { %v1701_v29 = vmul.f32 %v1697_v23, %v1685_v2  ;;  %v1699_v25 = vmul.f32 0.044715, %v1689_v24  ;;  %v1695_v50 = vmul.f32 0.5, %v1689_v24 }
 0xb87   : > { %v1702_v30 = vmul.f32 %v1698_v27, %v1687_v21  ;;  %v1700_v34 = vmul.f32 0.044715, %v1691_v28  ;;  %v1696_v52 = vmul.f32 0.5, %v1691_v28 }
 0xb88   : > { %v1705_v31 = vmul.f32 %v1701_v29, %v1685_v2  ;;  %v1703_v32 = vmul.f32 %v1699_v25, %v1689_v24 }
 0xb89   : > { %v1706_v59 = vmul.f32 %v1702_v30, %v1687_v21  ;;  %v1704_v33 = vmul.f32 %v1700_v34, %v1691_v28 }
 0xb8a   : > { %v1709_v58 = vadd.f32 %v1705_v31, %v1685_v2  ;;  %v1707_v62 = vmul.f32 %v1703_v32, %v1689_v24 }
 0xb8b   : > { %v1708_v35 = vmul.f32 %v1704_v33, %v1691_v28  ;;  %v1710_v36 = vadd.f32 %v1706_v59, %v1687_v21 }
 0xb8c   : > { %v1713_v37 = vmul.f32 0.7978846, %v1709_v58  ;;  %v1711_v38 = vadd.f32 %v1707_v62, %v1689_v24 }
 0xb8d   : > { %v1712_v39 = vadd.f32 %v1708_v35, %v1691_v28  ;;  %v1714_v40 = vmul.f32 0.7978846, %v1710_v36 }
 0xb8e   : > { %2544 = vtanh.f32 %v1713_v37  ;;  %v1715_v41 = vmul.f32 0.7978846, %v1711_v38 }
 0xb8f   : > { %v1716_v42 = vmul.f32 0.7978846, %v1712_v39  ;;  %2546 = vtanh.f32 %v1714_v40 }
 0xb90   : > { %2548 = vtanh.f32 %v1715_v41 }
 0xb91   : > { %2550 = vtanh.f32 %v1716_v42 }
 0xb98   : > { %v2545_v43 = vpop.eup %2544 }
 0xb99   : > { %v2547_v44 = vpop.eup %2546  ;;  %v1721_v45 = vadd.f32 1.0, %v2545_v43 }
 0xb9a   : > { %v2549_v46 = vpop.eup %2548  ;;  %v1722_v47 = vadd.f32 1.0, %v2547_v44 }
 0xb9b   : > { %v2551_v48 = vpop.eup %2550  ;;  %v1723_v51 = vadd.f32 1.0, %v2549_v46  ;;  %v1725_v54 = vmul.f32 %v1721_v45, %v1693_v49 }
 0xb9c   : > { %v1724_v53 = vadd.f32 1.0, %v2551_v48  ;;  %v1726_v56 = vmul.f32 %v1722_v47, %v1694_v7 }
 0xb9d   : > { %v1727_v55 = vmul.f32 %v1723_v51, %v1695_v50 }
 0xb9e   : > { %v1728_v57 = vmul.f32 %v1724_v53, %v1696_v52 }
 0xb9f   : > { %v1729_v60 = vpack.c.bf16 %v1727_v55, %v1725_v54 }
 0xba0   : > { %v1730_v61 = vpack.c.bf16 %v1728_v57, %v1726_v56 }
 0xba2   : > { %1898 = vmatprep.mubr.bf16.mxu0 %v1730_v61 }
 0xba3   : > { %1899 = vmatmul.mubr.bf16.vlgmr.msra.gmra.mrb[16].mxu0 %v1729_v60 }
 0xc76   : > { %v2219_v0 = vpop.f32.mrb[16].mxu0 }
 0xc77   : > { %v2220_v5 = vpop.f32.mrb[17].mxu0 }
 0xc78   : > { %v2221_v6 = vadd.f32 %v2220_v5, %v2219_v0  ;;  %v2222_v8 = vpop.f32.mrb[18].mxu0 }
 0xc79   : > { %v2223_v9 = vpop.f32.mrb[19].mxu0 }
 0xc7a   : > { %v1901_v10 = vadd.f32 %v2221_v6, %v2144_v1  ;;  %v2224_v11 = vadd.f32 %v2223_v9, %v2222_v8 }
 0xc7c   : > { %v1907_v20 = vadd.f32 %v1901_v10, %v3358_v14  ;;  %v1904_v12 = vadd.f32 %v2224_v11, %v2144_v1 }
 0xc7e   : > { %v2167_v13 = vpack.c.bf16 %v1907_v20, %v1907_v20  ;;  %v1908_v3 = vadd.f32 %v1904_v12, %v3361_v63 }
 0xc80   : > { %1917 = vst [vmem:[%s541_s26] sm:$0xf] %v2167_v13  ;;  %v2168_v16 = vpack.c.bf16 %v1908_v3, %v1908_v3 }
 0xc82   : > { %v1922_v17 = vsel %vm1920_vm10, %v2168_v16, %v1921_v15 }
 0xc83   : > { %1923 = vst [vmem:[%s541_s26 + $0x4] sm:$0x1] %v1922_v17 }
 0xc84 PF: > { %s3512_s28 = sld [smem:[#allocation20_spill]] }
 0xc8a   : > { %s28_s25 = sadd.s32 1, %s3512_s28  }
 0xc8b   : > { %p25_p13 = scmp.ge.s32.totalorder %s28_s25, 8  }
 0xc8d   :  { %27 = sbr.rel (!%p25_p13) target bundleno = 5 (0x5), region = 135 }
 0xc94   :  { %1945 = vsyncpa [#allocation3], 1 }
 0xc95   :  { %1947 = vsyncpa [#allocation3 + $0x1], 1 }
 0xc96   :  { %1948 = vsyncpa [#allocation5], 1 }
 0xc97   :  { %1949 = vsyncpa [#allocation8], 1 }
 0xc98   :  { %1950 = vsyncpa [#allocation11], 1 }
 0xc99   :  { %1951 = vsyncpa [#allocation14], 1 }

</bundles_post_ra>
